<compile_context>
chip_gen: v6e
topology: v6e:2x2x1
jax: 0.10.0
libtpu: 0.0.40
codegen_flags: <defaults>
</compile_context>

<pallas_src>
import math
from functools import partial

import jax
import jax.numpy as jnp
from jax import lax
from jax.experimental import pallas as pl
from jax.experimental.pallas import tpu as pltpu


def _layernorm(x, gamma, beta, eps):
    mean = jnp.mean(x, axis=-1, keepdims=True)
    var = jnp.mean((x - mean) ** 2, axis=-1, keepdims=True)
    return (x - mean) * lax.rsqrt(var + eps) * gamma + beta


def _gelu_exact(x):
    # nn.GELU() default = exact (erf) form
    return 0.5 * x * (1.0 + lax.erf(x / jnp.sqrt(2.0).astype(x.dtype)))


def bert_layer_kernel(
    x_ref,
    wqkv_ref, bqkv_ref,
    wao_ref, bao_ref, g1_ref, b1_ref,
    wi_ref, bi_ref, wo2_ref, bo2_ref, g2_ref, b2_ref,
    out_ref,
    *, B, N, C, num_heads, head_dim, ln_eps,
):
    bf16 = jnp.bfloat16
    x = x_ref[...]  # (B*N, C) float32

    def dot_bf16(a_f32, w_ref):
        # bf16 operands, f32 accumulation on the MXU.
        return jnp.dot(a_f32.astype(bf16), w_ref[...],
                       preferred_element_type=jnp.float32)

    # --- BertSelfAttention: fused QKV projection --------------------------
    qkv = dot_bf16(x, wqkv_ref) + bqkv_ref[...]          # (B*N, 3C) f32

    H, Dh = num_heads, head_dim
    scale = 1.0 / math.sqrt(Dh)

    # Gather heads into a single batched (B*H, N, Dh) operand (static slices).
    q_parts, k_parts, v_parts = [], [], []
    for b in range(B):
        r0 = b * N
        for h in range(H):
            c0 = h * Dh
            q_parts.append(qkv[r0:r0 + N, c0:c0 + Dh])
            k_parts.append(qkv[r0:r0 + N, C + c0:C + c0 + Dh])
            v_parts.append(qkv[r0:r0 + N, 2 * C + c0:2 * C + c0 + Dh])
    qh = jnp.stack(q_parts, axis=0).astype(bf16)          # (B*H, N, Dh)
    kh = jnp.stack(k_parts, axis=0).astype(bf16)
    vh = jnp.stack(v_parts, axis=0).astype(bf16)

    # Batched scores: contract head_dim directly (no explicit K transpose).
    s = jnp.einsum("gqd,gkd->gqk", qh, kh,
                   preferred_element_type=jnp.float32) * scale   # (B*H, N, N)
    s = s - jnp.max(s, axis=-1, keepdims=True)
    p = jnp.exp(s)
    p = p * pl.reciprocal(jnp.sum(p, axis=-1, keepdims=True), approx=True)
    ctx = jnp.einsum("gqk,gkd->gqd", p.astype(bf16), vh,
                     preferred_element_type=jnp.float32)          # (B*H, N, Dh)

    # Reassemble heads back onto the lane axis -> (B*N, C).
    ctx_full = jnp.concatenate(
        [jnp.concatenate([ctx[b * H + h] for h in range(H)], axis=-1)
         for b in range(B)],
        axis=0)

    # --- BertSelfOutput: dense + residual + LayerNorm ----------------------
    attn_dense = dot_bf16(ctx_full, wao_ref) + bao_ref[...]
    h1 = _layernorm(attn_dense + x, g1_ref[...], b1_ref[...], ln_eps)

    # --- BertIntermediate: dense + GELU (exact erf) ------------------------
    inter = _gelu_exact(dot_bf16(h1, wi_ref) + bi_ref[...])

    # --- BertOutput: dense + residual + LayerNorm --------------------------
    out_dense = dot_bf16(inter, wo2_ref) + bo2_ref[...]
    out = _layernorm(out_dense + h1, g2_ref[...], b2_ref[...], ln_eps)

    out_ref[...] = out.astype(out_ref.dtype)


def bert_layer(x, params, *, num_heads, ln_eps=1e-6):
    B, N, C = x.shape
    I = params["wi"].shape[1]
    head_dim = C // num_heads
    bf16 = jnp.bfloat16

    # Pack QKV weights (stored pre-transposed as (in, out)); weights -> bf16.
    wqkv = jnp.concatenate([params["wq"], params["wk"], params["wv"]],
                           axis=1).astype(bf16)                  # (C, 3C)
    bqkv = jnp.concatenate([params["bq"], params["bk"], params["bv"]],
                           axis=1).astype(jnp.float32)           # (1, 3C)
    wao = params["wao"].astype(bf16)
    wi = params["wi"].astype(bf16)
    wo2 = params["wo2"].astype(bf16)

    # Fold batch into the row axis for all dense layers.
    x2d = x.reshape(B * N, C).astype(jnp.float32)

    def fs(shape):
        return pl.BlockSpec(shape, lambda i, _shape=shape: (0,) * len(_shape))

    in_specs = [
        fs((B * N, C)),                    # x (rows = B*N)
        fs((C, 3 * C)), fs((1, 3 * C)),    # wqkv, bqkv
        fs((C, C)), fs((1, C)),            # wao, bao
        fs((1, C)), fs((1, C)),            # ln1 gamma, beta
        fs((C, I)), fs((1, I)),            # wi, bi
        fs((I, C)), fs((1, C)),            # wo2, bo2
        fs((1, C)), fs((1, C)),            # ln2 gamma, beta
    ]

    kernel = partial(
        bert_layer_kernel,
        B=B, N=N, C=C,
        num_heads=num_heads,
        head_dim=head_dim,
        ln_eps=ln_eps,
    )

    out2d = pl.pallas_call(
        kernel,
        out_shape=jax.ShapeDtypeStruct((B * N, C), jnp.float32),
        grid_spec=pltpu.PrefetchScalarGridSpec(
            num_scalar_prefetch=0,
            grid=(1,),
            in_specs=in_specs,
            out_specs=fs((B * N, C)),
        ),
        compiler_params=pltpu.CompilerParams(
            dimension_semantics=("arbitrary",),
            vmem_limit_bytes=48 * 1024 * 1024,
        ),
    )(
        x2d,
        wqkv, bqkv,
        wao, params["bao"], params["g1"], params["b1"],
        wi, params["bi"], wo2, params["bo2"],
        params["g2"], params["b2"],
    )

    return out2d.reshape(B, N, C)


def reference_bert_layer(x, params, *, num_heads, ln_eps=1e-6):
    """Pure-JAX f32 reference mirroring the PyTorch forward (inference mode)."""
    B, N, C = x.shape
    Dh = C // num_heads

    def ln(v, g, b):
        m = jnp.mean(v, axis=-1, keepdims=True)
        var = jnp.mean((v - m) ** 2, axis=-1, keepdims=True)
        return (v - m) / jnp.sqrt(var + ln_eps) * g + b

    q = x @ params["wq"] + params["bq"]
    k = x @ params["wk"] + params["bk"]
    v = x @ params["wv"] + params["bv"]
    q = q.reshape(B, N, num_heads, Dh).transpose(0, 2, 1, 3)
    k = k.reshape(B, N, num_heads, Dh).transpose(0, 2, 1, 3)
    v = v.reshape(B, N, num_heads, Dh).transpose(0, 2, 1, 3)
    s = (q @ jnp.swapaxes(k, -1, -2)) / math.sqrt(Dh)
    p = jax.nn.softmax(s, axis=-1)
    ctx = (p @ v).transpose(0, 2, 1, 3).reshape(B, N, C)

    attn_dense = ctx @ params["wao"] + params["bao"]
    h1 = ln(attn_dense + x, params["g1"], params["b1"])

    inter = jax.nn.gelu(h1 @ params["wi"] + params["bi"], approximate=False)
    out = ln(inter @ params["wo2"] + params["bo2"] + h1, params["g2"], params["b2"])
    return out


def init_params(key, hidden_size, intermediate_size):
    C, I = hidden_size, intermediate_size
    keys = jax.random.split(key, 12)
    s = 0.02

    def w(k, shape):
        return (s * jax.random.normal(k, shape)).astype(jnp.float32)

    return {
        "wq": w(keys[0], (C, C)), "bq": w(keys[1], (1, C)),
        "wk": w(keys[2], (C, C)), "bk": w(keys[3], (1, C)),
        "wv": w(keys[4], (C, C)), "bv": w(keys[5], (1, C)),
        "wao": w(keys[6], (C, C)), "bao": w(keys[7], (1, C)),
        "g1": jnp.ones((1, C), jnp.float32), "b1": jnp.zeros((1, C), jnp.float32),
        "wi": w(keys[8], (C, I)), "bi": w(keys[9], (1, I)),
        "wo2": w(keys[10], (I, C)), "bo2": w(keys[11], (1, C)),
        "g2": jnp.ones((1, C), jnp.float32), "b2": jnp.zeros((1, C), jnp.float32),
    }


if __name__ == "__main__":
    # Small shapes consistent with BertLayer (non-windowed path): B=2, H=W=8,
    # N = H*W = 64 tokens, hidden=64, heads=4, intermediate=128.
    B, Himg, Wimg = 2, 8, 8
    N = Himg * Wimg
    hidden_size = 64
    intermediate_size = 128
    num_heads = 4

    key = jax.random.PRNGKey(0)
    kx, kp = jax.random.split(key)
    x = jax.random.normal(kx, (B, N, hidden_size), dtype=jnp.float32)
    params = init_params(kp, hidden_size, intermediate_size)

    out = bert_layer(x, params, num_heads=num_heads)
    out = jax.block_until_ready(out)

    ref = reference_bert_layer(x, params, num_heads=num_heads)
    assert out.shape == (B, N, hidden_size)
    # Tolerance accounts for bf16 matmul operands (f32 accumulation) and the
    # EUP approximate reciprocal in the softmax; structural errors would be O(1).
    err = float(jnp.max(jnp.abs(out - ref)))
    assert err < 1e-2, err
    print("KERNEL_OK")
</pallas_src>

<mosaic_0001>
module attributes {stable_mosaic.version = 11 : i64} {
  func.func @bert_layer_kernel(%arg0: i32, %arg1: memref<128x64xf32, #tpu.memory_space<vmem>>, %arg2: memref<64x192xbf16, #tpu.memory_space<vmem>>, %arg3: memref<1x192xf32, #tpu.memory_space<vmem>>, %arg4: memref<64x64xbf16, #tpu.memory_space<vmem>>, %arg5: memref<1x64xf32, #tpu.memory_space<vmem>>, %arg6: memref<1x64xf32, #tpu.memory_space<vmem>>, %arg7: memref<1x64xf32, #tpu.memory_space<vmem>>, %arg8: memref<64x128xbf16, #tpu.memory_space<vmem>>, %arg9: memref<1x128xf32, #tpu.memory_space<vmem>>, %arg10: memref<128x64xbf16, #tpu.memory_space<vmem>>, %arg11: memref<1x64xf32, #tpu.memory_space<vmem>>, %arg12: memref<1x64xf32, #tpu.memory_space<vmem>>, %arg13: memref<1x64xf32, #tpu.memory_space<vmem>>, %arg14: memref<128x64xf32, #tpu.memory_space<vmem>>) attributes {dimension_semantics = [#tpu.dimension_semantics<arbitrary>], iteration_bounds = array<i64: 1>, scalar_prefetch = 0 : i64, scratch_operands = 0 : i64, tpu.core_type = #tpu.core_type<tc>, window_params = [{pipeline_mode = #tpu.pipeline_mode<synchronous>, transform_indices = @transform_0, window_bounds = array<i64: 128, 64>}, {pipeline_mode = #tpu.pipeline_mode<synchronous>, transform_indices = @transform_1, window_bounds = array<i64: 64, 192>}, {pipeline_mode = #tpu.pipeline_mode<synchronous>, transform_indices = @transform_2, window_bounds = array<i64: 1, 192>}, {pipeline_mode = #tpu.pipeline_mode<synchronous>, transform_indices = @transform_3, window_bounds = array<i64: 64, 64>}, {pipeline_mode = #tpu.pipeline_mode<synchronous>, transform_indices = @transform_4, window_bounds = array<i64: 1, 64>}, {pipeline_mode = #tpu.pipeline_mode<synchronous>, transform_indices = @transform_5, window_bounds = array<i64: 1, 64>}, {pipeline_mode = #tpu.pipeline_mode<synchronous>, transform_indices = @transform_6, window_bounds = array<i64: 1, 64>}, {pipeline_mode = #tpu.pipeline_mode<synchronous>, transform_indices = @transform_7, window_bounds = array<i64: 64, 128>}, {pipeline_mode = #tpu.pipeline_mode<synchronous>, transform_indices = @transform_8, window_bounds = array<i64: 1, 128>}, {pipeline_mode = #tpu.pipeline_mode<synchronous>, transform_indices = @transform_9, window_bounds = array<i64: 128, 64>}, {pipeline_mode = #tpu.pipeline_mode<synchronous>, transform_indices = @transform_10, window_bounds = array<i64: 1, 64>}, {pipeline_mode = #tpu.pipeline_mode<synchronous>, transform_indices = @transform_11, window_bounds = array<i64: 1, 64>}, {pipeline_mode = #tpu.pipeline_mode<synchronous>, transform_indices = @transform_12, window_bounds = array<i64: 1, 64>}, {pipeline_mode = #tpu.pipeline_mode<synchronous>, transform_indices = @transform_13, window_bounds = array<i64: 128, 64>}]} {
    %c0 = arith.constant 0 : index
    %c0_0 = arith.constant 0 : index
    %0 = vector.load %arg1[%c0, %c0_0] : memref<128x64xf32, #tpu.memory_space<vmem>>, vector<128x64xf32>
    %1 = arith.truncf %0 : vector<128x64xf32> to vector<128x64xbf16>
    %c0_1 = arith.constant 0 : index
    %c0_2 = arith.constant 0 : index
    %2 = vector.load %arg2[%c0_1, %c0_2] : memref<64x192xbf16, #tpu.memory_space<vmem>>, vector<64x192xbf16>
    %cst = arith.constant dense<0.000000e+00> : vector<128x192xf32>
    %3 = tpu.matmul %1, %2, %cst {dimension_numbers = #tpu.dot_dimension_numbers<[1], [0], [0], [1], [0, 0, 1, 1], [], []>} : vector<128x64xbf16>, vector<64x192xbf16>, vector<128x192xf32> -> vector<128x192xf32>
    %c0_3 = arith.constant 0 : index
    %c0_4 = arith.constant 0 : index
    %4 = vector.load %arg3[%c0_3, %c0_4] : memref<1x192xf32, #tpu.memory_space<vmem>>, vector<1x192xf32>
    %5 = vector.broadcast %4 : vector<1x192xf32> to vector<128x192xf32>
    %6 = arith.addf %3, %5 : vector<128x192xf32>
    %7 = vector.extract_strided_slice %6 {offsets = [0, 0], sizes = [64, 16], strides = [1, 1]} : vector<128x192xf32> to vector<64x16xf32>
    %8 = vector.extract_strided_slice %6 {offsets = [0, 64], sizes = [64, 16], strides = [1, 1]} : vector<128x192xf32> to vector<64x16xf32>
    %9 = vector.extract_strided_slice %6 {offsets = [0, 128], sizes = [64, 16], strides = [1, 1]} : vector<128x192xf32> to vector<64x16xf32>
    %10 = vector.extract_strided_slice %6 {offsets = [0, 16], sizes = [64, 16], strides = [1, 1]} : vector<128x192xf32> to vector<64x16xf32>
    %11 = vector.extract_strided_slice %6 {offsets = [0, 80], sizes = [64, 16], strides = [1, 1]} : vector<128x192xf32> to vector<64x16xf32>
    %12 = vector.extract_strided_slice %6 {offsets = [0, 144], sizes = [64, 16], strides = [1, 1]} : vector<128x192xf32> to vector<64x16xf32>
    %13 = vector.extract_strided_slice %6 {offsets = [0, 32], sizes = [64, 16], strides = [1, 1]} : vector<128x192xf32> to vector<64x16xf32>
    %14 = vector.extract_strided_slice %6 {offsets = [0, 96], sizes = [64, 16], strides = [1, 1]} : vector<128x192xf32> to vector<64x16xf32>
    %15 = vector.extract_strided_slice %6 {offsets = [0, 160], sizes = [64, 16], strides = [1, 1]} : vector<128x192xf32> to vector<64x16xf32>
    %16 = vector.extract_strided_slice %6 {offsets = [0, 48], sizes = [64, 16], strides = [1, 1]} : vector<128x192xf32> to vector<64x16xf32>
    %17 = vector.extract_strided_slice %6 {offsets = [0, 112], sizes = [64, 16], strides = [1, 1]} : vector<128x192xf32> to vector<64x16xf32>
    %18 = vector.extract_strided_slice %6 {offsets = [0, 176], sizes = [64, 16], strides = [1, 1]} : vector<128x192xf32> to vector<64x16xf32>
    %19 = vector.extract_strided_slice %6 {offsets = [64, 0], sizes = [64, 16], strides = [1, 1]} : vector<128x192xf32> to vector<64x16xf32>
    %20 = vector.extract_strided_slice %6 {offsets = [64, 64], sizes = [64, 16], strides = [1, 1]} : vector<128x192xf32> to vector<64x16xf32>
    %21 = vector.extract_strided_slice %6 {offsets = [64, 128], sizes = [64, 16], strides = [1, 1]} : vector<128x192xf32> to vector<64x16xf32>
    %22 = vector.extract_strided_slice %6 {offsets = [64, 16], sizes = [64, 16], strides = [1, 1]} : vector<128x192xf32> to vector<64x16xf32>
    %23 = vector.extract_strided_slice %6 {offsets = [64, 80], sizes = [64, 16], strides = [1, 1]} : vector<128x192xf32> to vector<64x16xf32>
    %24 = vector.extract_strided_slice %6 {offsets = [64, 144], sizes = [64, 16], strides = [1, 1]} : vector<128x192xf32> to vector<64x16xf32>
    %25 = vector.extract_strided_slice %6 {offsets = [64, 32], sizes = [64, 16], strides = [1, 1]} : vector<128x192xf32> to vector<64x16xf32>
    %26 = vector.extract_strided_slice %6 {offsets = [64, 96], sizes = [64, 16], strides = [1, 1]} : vector<128x192xf32> to vector<64x16xf32>
    %27 = vector.extract_strided_slice %6 {offsets = [64, 160], sizes = [64, 16], strides = [1, 1]} : vector<128x192xf32> to vector<64x16xf32>
    %28 = vector.extract_strided_slice %6 {offsets = [64, 48], sizes = [64, 16], strides = [1, 1]} : vector<128x192xf32> to vector<64x16xf32>
    %29 = vector.extract_strided_slice %6 {offsets = [64, 112], sizes = [64, 16], strides = [1, 1]} : vector<128x192xf32> to vector<64x16xf32>
    %30 = vector.extract_strided_slice %6 {offsets = [64, 176], sizes = [64, 16], strides = [1, 1]} : vector<128x192xf32> to vector<64x16xf32>
    %31 = vector.shape_cast %7 : vector<64x16xf32> to vector<1x64x16xf32>
    %32 = vector.shape_cast %10 : vector<64x16xf32> to vector<1x64x16xf32>
    %33 = vector.shape_cast %13 : vector<64x16xf32> to vector<1x64x16xf32>
    %34 = vector.shape_cast %16 : vector<64x16xf32> to vector<1x64x16xf32>
    %35 = vector.shape_cast %19 : vector<64x16xf32> to vector<1x64x16xf32>
    %36 = vector.shape_cast %22 : vector<64x16xf32> to vector<1x64x16xf32>
    %37 = vector.shape_cast %25 : vector<64x16xf32> to vector<1x64x16xf32>
    %38 = vector.shape_cast %28 : vector<64x16xf32> to vector<1x64x16xf32>
    %39 = tpu.concatenate %31, %32, %33, %34, %35, %36, %37, %38 in 0 : vector<1x64x16xf32>, vector<1x64x16xf32>, vector<1x64x16xf32>, vector<1x64x16xf32>, vector<1x64x16xf32>, vector<1x64x16xf32>, vector<1x64x16xf32>, vector<1x64x16xf32> -> vector<8x64x16xf32>
    %40 = arith.truncf %39 : vector<8x64x16xf32> to vector<8x64x16xbf16>
    %41 = vector.shape_cast %8 : vector<64x16xf32> to vector<1x64x16xf32>
    %42 = vector.shape_cast %11 : vector<64x16xf32> to vector<1x64x16xf32>
    %43 = vector.shape_cast %14 : vector<64x16xf32> to vector<1x64x16xf32>
    %44 = vector.shape_cast %17 : vector<64x16xf32> to vector<1x64x16xf32>
    %45 = vector.shape_cast %20 : vector<64x16xf32> to vector<1x64x16xf32>
    %46 = vector.shape_cast %23 : vector<64x16xf32> to vector<1x64x16xf32>
    %47 = vector.shape_cast %26 : vector<64x16xf32> to vector<1x64x16xf32>
    %48 = vector.shape_cast %29 : vector<64x16xf32> to vector<1x64x16xf32>
    %49 = tpu.concatenate %41, %42, %43, %44, %45, %46, %47, %48 in 0 : vector<1x64x16xf32>, vector<1x64x16xf32>, vector<1x64x16xf32>, vector<1x64x16xf32>, vector<1x64x16xf32>, vector<1x64x16xf32>, vector<1x64x16xf32>, vector<1x64x16xf32> -> vector<8x64x16xf32>
    %50 = arith.truncf %49 : vector<8x64x16xf32> to vector<8x64x16xbf16>
    %51 = vector.shape_cast %9 : vector<64x16xf32> to vector<1x64x16xf32>
    %52 = vector.shape_cast %12 : vector<64x16xf32> to vector<1x64x16xf32>
    %53 = vector.shape_cast %15 : vector<64x16xf32> to vector<1x64x16xf32>
    %54 = vector.shape_cast %18 : vector<64x16xf32> to vector<1x64x16xf32>
    %55 = vector.shape_cast %21 : vector<64x16xf32> to vector<1x64x16xf32>
    %56 = vector.shape_cast %24 : vector<64x16xf32> to vector<1x64x16xf32>
    %57 = vector.shape_cast %27 : vector<64x16xf32> to vector<1x64x16xf32>
    %58 = vector.shape_cast %30 : vector<64x16xf32> to vector<1x64x16xf32>
    %59 = tpu.concatenate %51, %52, %53, %54, %55, %56, %57, %58 in 0 : vector<1x64x16xf32>, vector<1x64x16xf32>, vector<1x64x16xf32>, vector<1x64x16xf32>, vector<1x64x16xf32>, vector<1x64x16xf32>, vector<1x64x16xf32>, vector<1x64x16xf32> -> vector<8x64x16xf32>
    %60 = arith.truncf %59 : vector<8x64x16xf32> to vector<8x64x16xbf16>
    "tpu.trace_start"() <{level = 10 : i32, message = "gqd,gkd->gqk"}> : () -> ()
    %cst_5 = arith.constant dense<0.000000e+00> : vector<8x64x64xf32>
    %61 = tpu.matmul %40, %50, %cst_5 {dimension_numbers = #tpu.dot_dimension_numbers<[2], [2], [1], [1], [0, 0, 0, 1, 1, 1], [0], [0]>} : vector<8x64x16xbf16>, vector<8x64x16xbf16>, vector<8x64x64xf32> -> vector<8x64x64xf32>
    "tpu.trace_stop"() : () -> ()
    %cst_6 = arith.constant 2.500000e-01 : f32
    %62 = vector.broadcast %cst_6 : f32 to vector<8x64x64xf32>
    %63 = arith.mulf %61, %62 : vector<8x64x64xf32>
    %cst_7 = arith.constant dense<0xFF800000> : vector<8x64xf32>
    %64 = vector.multi_reduction <maximumf>, %63, %cst_7 [2] : vector<8x64x64xf32> to vector<8x64xf32>
    %65 = vector.shape_cast %64 : vector<8x64xf32> to vector<8x64x1xf32>
    %66 = vector.broadcast %65 : vector<8x64x1xf32> to vector<8x64x64xf32>
    %67 = arith.subf %63, %66 : vector<8x64x64xf32>
    %68 = math.exp %67 : vector<8x64x64xf32>
    %cst_8 = arith.constant dense<0.000000e+00> : vector<8x64xf32>
    %69 = vector.multi_reduction <add>, %68, %cst_8 [2] : vector<8x64x64xf32> to vector<8x64xf32>
    %70 = vector.shape_cast %69 : vector<8x64xf32> to vector<8x64x1xf32>
    %71 = tpu.reciprocal %70 {approx = true} : vector<8x64x1xf32> -> vector<8x64x1xf32>
    %72 = vector.broadcast %71 : vector<8x64x1xf32> to vector<8x64x64xf32>
    %73 = arith.mulf %68, %72 : vector<8x64x64xf32>
    %74 = arith.truncf %73 : vector<8x64x64xf32> to vector<8x64x64xbf16>
    "tpu.trace_start"() <{level = 10 : i32, message = "gqk,gkd->gqd"}> : () -> ()
    %cst_9 = arith.constant dense<0.000000e+00> : vector<8x64x16xf32>
    %75 = tpu.matmul %74, %60, %cst_9 {dimension_numbers = #tpu.dot_dimension_numbers<[2], [1], [1], [2], [0, 0, 0, 1, 1, 2], [0], [0]>} : vector<8x64x64xbf16>, vector<8x64x16xbf16>, vector<8x64x16xf32> -> vector<8x64x16xf32>
    "tpu.trace_stop"() : () -> ()
    %76 = vector.extract_strided_slice %75 {offsets = [0, 0, 0], sizes = [1, 64, 16], strides = [1, 1, 1]} : vector<8x64x16xf32> to vector<1x64x16xf32>
    %77 = vector.shape_cast %76 : vector<1x64x16xf32> to vector<64x16xf32>
    %78 = vector.extract_strided_slice %75 {offsets = [1, 0, 0], sizes = [1, 64, 16], strides = [1, 1, 1]} : vector<8x64x16xf32> to vector<1x64x16xf32>
    %79 = vector.shape_cast %78 : vector<1x64x16xf32> to vector<64x16xf32>
    %80 = vector.extract_strided_slice %75 {offsets = [2, 0, 0], sizes = [1, 64, 16], strides = [1, 1, 1]} : vector<8x64x16xf32> to vector<1x64x16xf32>
    %81 = vector.shape_cast %80 : vector<1x64x16xf32> to vector<64x16xf32>
    %82 = vector.extract_strided_slice %75 {offsets = [3, 0, 0], sizes = [1, 64, 16], strides = [1, 1, 1]} : vector<8x64x16xf32> to vector<1x64x16xf32>
    %83 = vector.shape_cast %82 : vector<1x64x16xf32> to vector<64x16xf32>
    %84 = tpu.concatenate %77, %79, %81, %83 in 1 : vector<64x16xf32>, vector<64x16xf32>, vector<64x16xf32>, vector<64x16xf32> -> vector<64x64xf32>
    %85 = vector.extract_strided_slice %75 {offsets = [4, 0, 0], sizes = [1, 64, 16], strides = [1, 1, 1]} : vector<8x64x16xf32> to vector<1x64x16xf32>
    %86 = vector.shape_cast %85 : vector<1x64x16xf32> to vector<64x16xf32>
    %87 = vector.extract_strided_slice %75 {offsets = [5, 0, 0], sizes = [1, 64, 16], strides = [1, 1, 1]} : vector<8x64x16xf32> to vector<1x64x16xf32>
    %88 = vector.shape_cast %87 : vector<1x64x16xf32> to vector<64x16xf32>
    %89 = vector.extract_strided_slice %75 {offsets = [6, 0, 0], sizes = [1, 64, 16], strides = [1, 1, 1]} : vector<8x64x16xf32> to vector<1x64x16xf32>
    %90 = vector.shape_cast %89 : vector<1x64x16xf32> to vector<64x16xf32>
    %91 = vector.extract_strided_slice %75 {offsets = [7, 0, 0], sizes = [1, 64, 16], strides = [1, 1, 1]} : vector<8x64x16xf32> to vector<1x64x16xf32>
    %92 = vector.shape_cast %91 : vector<1x64x16xf32> to vector<64x16xf32>
    %93 = tpu.concatenate %86, %88, %90, %92 in 1 : vector<64x16xf32>, vector<64x16xf32>, vector<64x16xf32>, vector<64x16xf32> -> vector<64x64xf32>
    %94 = tpu.concatenate %84, %93 in 0 : vector<64x64xf32>, vector<64x64xf32> -> vector<128x64xf32>
    %95 = arith.truncf %94 : vector<128x64xf32> to vector<128x64xbf16>
    %c0_10 = arith.constant 0 : index
    %c0_11 = arith.constant 0 : index
    %96 = vector.load %arg4[%c0_10, %c0_11] : memref<64x64xbf16, #tpu.memory_space<vmem>>, vector<64x64xbf16>
    %cst_12 = arith.constant dense<0.000000e+00> : vector<128x64xf32>
    %97 = tpu.matmul %95, %96, %cst_12 {dimension_numbers = #tpu.dot_dimension_numbers<[1], [0], [0], [1], [0, 0, 1, 1], [], []>} : vector<128x64xbf16>, vector<64x64xbf16>, vector<128x64xf32> -> vector<128x64xf32>
    %c0_13 = arith.constant 0 : index
    %c0_14 = arith.constant 0 : index
    %98 = vector.load %arg5[%c0_13, %c0_14] : memref<1x64xf32, #tpu.memory_space<vmem>>, vector<1x64xf32>
    %99 = vector.broadcast %98 : vector<1x64xf32> to vector<128x64xf32>
    %100 = arith.addf %97, %99 : vector<128x64xf32>
    %101 = arith.addf %100, %0 : vector<128x64xf32>
    %c0_15 = arith.constant 0 : index
    %c0_16 = arith.constant 0 : index
    %102 = vector.load %arg6[%c0_15, %c0_16] : memref<1x64xf32, #tpu.memory_space<vmem>>, vector<1x64xf32>
    %c0_17 = arith.constant 0 : index
    %c0_18 = arith.constant 0 : index
    %103 = vector.load %arg7[%c0_17, %c0_18] : memref<1x64xf32, #tpu.memory_space<vmem>>, vector<1x64xf32>
    %cst_19 = arith.constant dense<0.000000e+00> : vector<128xf32>
    %104 = vector.multi_reduction <add>, %101, %cst_19 [1] : vector<128x64xf32> to vector<128xf32>
    %105 = vector.shape_cast %104 : vector<128xf32> to vector<128x1xf32>
    %cst_20 = arith.constant 6.400000e+01 : f32
    %106 = vector.broadcast %cst_20 : f32 to vector<128x1xf32>
    %107 = arith.divf %105, %106 : vector<128x1xf32>
    %108 = vector.broadcast %107 : vector<128x1xf32> to vector<128x64xf32>
    %109 = arith.subf %101, %108 : vector<128x64xf32>
    %110 = arith.mulf %109, %109 : vector<128x64xf32>
    %cst_21 = arith.constant dense<0.000000e+00> : vector<128xf32>
    %111 = vector.multi_reduction <add>, %110, %cst_21 [1] : vector<128x64xf32> to vector<128xf32>
    %112 = vector.shape_cast %111 : vector<128xf32> to vector<128x1xf32>
    %cst_22 = arith.constant 6.400000e+01 : f32
    %113 = vector.broadcast %cst_22 : f32 to vector<128x1xf32>
    %114 = arith.divf %112, %113 : vector<128x1xf32>
    %115 = vector.broadcast %107 : vector<128x1xf32> to vector<128x64xf32>
    %116 = arith.subf %101, %115 : vector<128x64xf32>
    %cst_23 = arith.constant 9.99999997E-7 : f32
    %117 = vector.broadcast %cst_23 : f32 to vector<128x1xf32>
    %118 = arith.addf %114, %117 : vector<128x1xf32>
    %119 = math.rsqrt %118 : vector<128x1xf32>
    %120 = vector.broadcast %119 : vector<128x1xf32> to vector<128x64xf32>
    %121 = arith.mulf %116, %120 : vector<128x64xf32>
    %122 = vector.broadcast %102 : vector<1x64xf32> to vector<128x64xf32>
    %123 = arith.mulf %121, %122 : vector<128x64xf32>
    %124 = vector.broadcast %103 : vector<1x64xf32> to vector<128x64xf32>
    %125 = arith.addf %123, %124 : vector<128x64xf32>
    %126 = arith.truncf %125 : vector<128x64xf32> to vector<128x64xbf16>
    %c0_24 = arith.constant 0 : index
    %c0_25 = arith.constant 0 : index
    %127 = vector.load %arg8[%c0_24, %c0_25] : memref<64x128xbf16, #tpu.memory_space<vmem>>, vector<64x128xbf16>
    %cst_26 = arith.constant dense<0.000000e+00> : vector<128x128xf32>
    %128 = tpu.matmul %126, %127, %cst_26 {dimension_numbers = #tpu.dot_dimension_numbers<[1], [0], [0], [1], [0, 0, 1, 1], [], []>} : vector<128x64xbf16>, vector<64x128xbf16>, vector<128x128xf32> -> vector<128x128xf32>
    %c0_27 = arith.constant 0 : index
    %c0_28 = arith.constant 0 : index
    %129 = vector.load %arg9[%c0_27, %c0_28] : memref<1x128xf32, #tpu.memory_space<vmem>>, vector<1x128xf32>
    %130 = vector.broadcast %129 : vector<1x128xf32> to vector<128x128xf32>
    %131 = arith.addf %128, %130 : vector<128x128xf32>
    %cst_29 = arith.constant 5.000000e-01 : f32
    %132 = vector.broadcast %cst_29 : f32 to vector<128x128xf32>
    %133 = arith.mulf %132, %131 : vector<128x128xf32>
    %cst_30 = arith.constant 2.000000e+00 : f32
    %134 = math.sqrt %cst_30 : f32
    %135 = vector.broadcast %134 : f32 to vector<128x128xf32>
    %136 = arith.divf %131, %135 : vector<128x128xf32>
    %137 = math.erf %136 : vector<128x128xf32>
    %cst_31 = arith.constant 1.000000e+00 : f32
    %138 = vector.broadcast %cst_31 : f32 to vector<128x128xf32>
    %139 = arith.addf %138, %137 : vector<128x128xf32>
    %140 = arith.mulf %133, %139 : vector<128x128xf32>
    %141 = arith.truncf %140 : vector<128x128xf32> to vector<128x128xbf16>
    %c0_32 = arith.constant 0 : index
    %c0_33 = arith.constant 0 : index
    %142 = vector.load %arg10[%c0_32, %c0_33] : memref<128x64xbf16, #tpu.memory_space<vmem>>, vector<128x64xbf16>
    %cst_34 = arith.constant dense<0.000000e+00> : vector<128x64xf32>
    %143 = tpu.matmul %141, %142, %cst_34 {dimension_numbers = #tpu.dot_dimension_numbers<[1], [0], [0], [1], [0, 0, 1, 1], [], []>} : vector<128x128xbf16>, vector<128x64xbf16>, vector<128x64xf32> -> vector<128x64xf32>
    %c0_35 = arith.constant 0 : index
    %c0_36 = arith.constant 0 : index
    %144 = vector.load %arg11[%c0_35, %c0_36] : memref<1x64xf32, #tpu.memory_space<vmem>>, vector<1x64xf32>
    %145 = vector.broadcast %144 : vector<1x64xf32> to vector<128x64xf32>
    %146 = arith.addf %143, %145 : vector<128x64xf32>
    %147 = arith.addf %146, %125 : vector<128x64xf32>
    %c0_37 = arith.constant 0 : index
    %c0_38 = arith.constant 0 : index
    %148 = vector.load %arg12[%c0_37, %c0_38] : memref<1x64xf32, #tpu.memory_space<vmem>>, vector<1x64xf32>
    %c0_39 = arith.constant 0 : index
    %c0_40 = arith.constant 0 : index
    %149 = vector.load %arg13[%c0_39, %c0_40] : memref<1x64xf32, #tpu.memory_space<vmem>>, vector<1x64xf32>
    %cst_41 = arith.constant dense<0.000000e+00> : vector<128xf32>
    %150 = vector.multi_reduction <add>, %147, %cst_41 [1] : vector<128x64xf32> to vector<128xf32>
    %151 = vector.shape_cast %150 : vector<128xf32> to vector<128x1xf32>
    %cst_42 = arith.constant 6.400000e+01 : f32
    %152 = vector.broadcast %cst_42 : f32 to vector<128x1xf32>
    %153 = arith.divf %151, %152 : vector<128x1xf32>
    %154 = vector.broadcast %153 : vector<128x1xf32> to vector<128x64xf32>
    %155 = arith.subf %147, %154 : vector<128x64xf32>
    %156 = arith.mulf %155, %155 : vector<128x64xf32>
    %cst_43 = arith.constant dense<0.000000e+00> : vector<128xf32>
    %157 = vector.multi_reduction <add>, %156, %cst_43 [1] : vector<128x64xf32> to vector<128xf32>
    %158 = vector.shape_cast %157 : vector<128xf32> to vector<128x1xf32>
    %cst_44 = arith.constant 6.400000e+01 : f32
    %159 = vector.broadcast %cst_44 : f32 to vector<128x1xf32>
    %160 = arith.divf %158, %159 : vector<128x1xf32>
    %161 = vector.broadcast %153 : vector<128x1xf32> to vector<128x64xf32>
    %162 = arith.subf %147, %161 : vector<128x64xf32>
    %cst_45 = arith.constant 9.99999997E-7 : f32
    %163 = vector.broadcast %cst_45 : f32 to vector<128x1xf32>
    %164 = arith.addf %160, %163 : vector<128x1xf32>
    %165 = math.rsqrt %164 : vector<128x1xf32>
    %166 = vector.broadcast %165 : vector<128x1xf32> to vector<128x64xf32>
    %167 = arith.mulf %162, %166 : vector<128x64xf32>
    %168 = vector.broadcast %148 : vector<1x64xf32> to vector<128x64xf32>
    %169 = arith.mulf %167, %168 : vector<128x64xf32>
    %170 = vector.broadcast %149 : vector<1x64xf32> to vector<128x64xf32>
    %171 = arith.addf %169, %170 : vector<128x64xf32>
    %c0_46 = arith.constant 0 : index
    %c0_47 = arith.constant 0 : index
    %172 = vector.load %arg14[%c0_46, %c0_47] : memref<128x64xf32, #tpu.memory_space<vmem>>, vector<128x64xf32>
    tpu.vector_store %arg14[%c0_46, %c0_47], %171 {strides = array<i32>} : memref<128x64xf32, #tpu.memory_space<vmem>>, vector<128x64xf32>,
    return
  }
  func.func @transform_0(%arg0: i32) -> (i32, i32) {
    %c0_i32 = arith.constant 0 : i32
    %c0_i32_0 = arith.constant 0 : i32
    %c0_i32_1 = arith.constant 0 : i32
    return %c0_i32, %c0_i32_0 : i32, i32
  }
  func.func @transform_1(%arg0: i32) -> (i32, i32) {
    %c0_i32 = arith.constant 0 : i32
    %c0_i32_0 = arith.constant 0 : i32
    %c0_i32_1 = arith.constant 0 : i32
    return %c0_i32, %c0_i32_0 : i32, i32
  }
  func.func @transform_2(%arg0: i32) -> (i32, i32) {
    %c0_i32 = arith.constant 0 : i32
    %c0_i32_0 = arith.constant 0 : i32
    %c0_i32_1 = arith.constant 0 : i32
    return %c0_i32, %c0_i32_0 : i32, i32
  }
  func.func @transform_3(%arg0: i32) -> (i32, i32) {
    %c0_i32 = arith.constant 0 : i32
    %c0_i32_0 = arith.constant 0 : i32
    %c0_i32_1 = arith.constant 0 : i32
    return %c0_i32, %c0_i32_0 : i32, i32
  }
  func.func @transform_4(%arg0: i32) -> (i32, i32) {
    %c0_i32 = arith.constant 0 : i32
    %c0_i32_0 = arith.constant 0 : i32
    %c0_i32_1 = arith.constant 0 : i32
    return %c0_i32, %c0_i32_0 : i32, i32
  }
  func.func @transform_5(%arg0: i32) -> (i32, i32) {
    %c0_i32 = arith.constant 0 : i32
    %c0_i32_0 = arith.constant 0 : i32
    %c0_i32_1 = arith.constant 0 : i32
    return %c0_i32, %c0_i32_0 : i32, i32
  }
  func.func @transform_6(%arg0: i32) -> (i32, i32) {
    %c0_i32 = arith.constant 0 : i32
    %c0_i32_0 = arith.constant 0 : i32
    %c0_i32_1 = arith.constant 0 : i32
    return %c0_i32, %c0_i32_0 : i32, i32
  }
  func.func @transform_7(%arg0: i32) -> (i32, i32) {
    %c0_i32 = arith.constant 0 : i32
    %c0_i32_0 = arith.constant 0 : i32
    %c0_i32_1 = arith.constant 0 : i32
    return %c0_i32, %c0_i32_0 : i32, i32
  }
  func.func @transform_8(%arg0: i32) -> (i32, i32) {
    %c0_i32 = arith.constant 0 : i32
    %c0_i32_0 = arith.constant 0 : i32
    %c0_i32_1 = arith.constant 0 : i32
    return %c0_i32, %c0_i32_0 : i32, i32
  }
  func.func @transform_9(%arg0: i32) -> (i32, i32) {
    %c0_i32 = arith.constant 0 : i32
    %c0_i32_0 = arith.constant 0 : i32
    %c0_i32_1 = arith.constant 0 : i32
    return %c0_i32, %c0_i32_0 : i32, i32
  }
  func.func @transform_10(%arg0: i32) -> (i32, i32) {
    %c0_i32 = arith.constant 0 : i32
    %c0_i32_0 = arith.constant 0 : i32
    %c0_i32_1 = arith.constant 0 : i32
    return %c0_i32, %c0_i32_0 : i32, i32
  }
  func.func @transform_11(%arg0: i32) -> (i32, i32) {
    %c0_i32 = arith.constant 0 : i32
    %c0_i32_0 = arith.constant 0 : i32
    %c0_i32_1 = arith.constant 0 : i32
    return %c0_i32, %c0_i32_0 : i32, i32
  }
  func.func @transform_12(%arg0: i32) -> (i32, i32) {
    %c0_i32 = arith.constant 0 : i32
    %c0_i32_0 = arith.constant 0 : i32
    %c0_i32_1 = arith.constant 0 : i32
    return %c0_i32, %c0_i32_0 : i32, i32
  }
  func.func @transform_13(%arg0: i32) -> (i32, i32) {
    %c0_i32 = arith.constant 0 : i32
    %c0_i32_0 = arith.constant 0 : i32
    %c0_i32_1 = arith.constant 0 : i32
    return %c0_i32, %c0_i32_0 : i32, i32
  }
}

</mosaic_0001>

<bundles_post_ra>
// kernel: tpu_custom_call.1
= control target key start
LH: loop header
LB: loop body
LE: loop exit
PB: predicated region body
PF: predicated region fallthrough
CT: control target
= control target key end

     0   :  { %v5707_v1 = vmov 0   ;;  %vm129_vm0 = vcmask 523264   ;;  %v79_v33 = vlaneseq  ;;  %vm663_vm1 = vcmask 130048   ;;  %s5709_s22 = smov 96   ;;  %s5710_s23 = smov 64   ;;  %s8012_s1 = inlined_call_operand.vmem [shape: bf16[64,192], index: 1, kind: input, shape index: {}]   ;;  %s8013_s0 = inlined_call_operand.vmem [shape: f32[128,64], index: 0, kind: input, shape index: {}]   ;;  %s8014_s2 = inlined_call_operand.vmem [shape: f32[1,192], index: 2, kind: input, shape index: {}]   ;;  %s8015_s3 = inlined_call_operand.vmem [shape: bf16[64,64], index: 3, kind: input, shape index: {}]   ;;  %s8016_s4 = inlined_call_operand.vmem [shape: f32[1,64], index: 4, kind: input, shape index: {}]   ;;  %s8017_s7 = inlined_call_operand.vmem [shape: bf16[64,128], index: 7, kind: input, shape index: {}]   ;;  %s8018_s5 = inlined_call_operand.vmem [shape: f32[1,64], index: 5, kind: input, shape index: {}]   ;;  %s8019_s6 = inlined_call_operand.vmem [shape: f32[1,64], index: 6, kind: input, shape index: {}]   ;;  %s8020_s9 = inlined_call_operand.vmem [shape: bf16[128,64], index: 9, kind: input, shape index: {}]   ;;  %s8021_s8 = inlined_call_operand.vmem [shape: f32[1,128], index: 8, kind: input, shape index: {}]   ;;  %s8022_s10 = inlined_call_operand.vmem [shape: f32[1,64], index: 10, kind: input, shape index: {}]   ;;  %s8023_s11 = inlined_call_operand.vmem [shape: f32[1,64], index: 11, kind: input, shape index: {}]   ;;  %s8024_s12 = inlined_call_operand.vmem [shape: f32[1,64], index: 12, kind: input, shape index: {}]   ;;  %s8025_s13 = inlined_call_operand.vmem [shape: f32[128,64], index: 13, kind: output, shape index: {}]  }
   0x1   :  { %v5311_v0 = vld [vmem:[%s8012_s1 + $0x34] ss:$8 sps:$4 sm:$0xff]   ;;  %186 = vmatprep.mubr.bf16.mxu0 %v5707_v1  ;;  %v5313_v2 = vld [vmem:[%s8012_s1 + $0x30] ss:$8 sps:$4 sm:$0xff]   ;;  %v5314_v3 = vld [vmem:[%s8012_s1 + $0x24] ss:$8 sps:$4 sm:$0xff]  }
   0x2   :  { %162 = vmatprep.subr.bf16.mxu0 %v5311_v0  ;;  %v5316_v4 = vld [vmem:[%s8012_s1 + $0x20] ss:$8 sps:$4 sm:$0xff]   ;;  %v5317_v5 = vld [vmem:[%s8012_s1 + $0x14] ss:$8 sps:$4 sm:$0xff]   ;;  %v5319_v6 = vld [vmem:[%s8012_s1 + $0x10] ss:$8 sps:$4 sm:$0xff]  }
   0x3   :  { %163 = vmatpush1.bf16.msra.mxu0 %v5313_v2  ;;  %v5320_v7 = vld [vmem:[%s8012_s1 + $0x4] ss:$8 sps:$4 sm:$0xff]   ;;  %v5322_v8 = vld [vmem:[%s8012_s1] ss:$8 sps:$4 sm:$0xff]   ;;  %v47_v12 = vld [vmem:[%s8013_s0 + $0x10] sm:$0xff]  ;;  %v80_v34 = vshrl.u32 %v79_v33, 7 }
   0x4   :  { %164 = vmatprep.subr.bf16.mxu0 %v5314_v3  ;;  %v45_v9 = vld [vmem:[%s8013_s0] sm:$0xff]  ;;  %v46_v10 = vld [vmem:[%s8013_s0 + $0x8] sm:$0xff]  ;;  %v48_v13 = vld [vmem:[%s8013_s0 + $0x18] sm:$0xff]  ;;  %s5711_s24 = smov 80   ;;  %s5712_s25 = smov 16   ;;  %vm2980_vm2 = vcmask 261120  }
   0x5   :  { %v61_v11 = vpack.c.bf16 %v46_v10, %v45_v9  ;;  %v62_v14 = vpack.c.bf16 %v48_v13, %v47_v12  ;;  %v49_v15 = vld [vmem:[%s8013_s0 + $0x20] sm:$0xff]  ;;  %v50_v16 = vld [vmem:[%s8013_s0 + $0x28] sm:$0xff]  ;;  %v51_v18 = vld [vmem:[%s8013_s0 + $0x30] sm:$0xff]  ;;  %v81_v35 = vsub.s32 0, %v80_v34  ;;  %v85_v38 = vsub.s32 1, %v80_v34  ;;  %s5713_s26 = smov 32  }
   0x6   :  { %v63_v17 = vpack.c.bf16 %v50_v16, %v49_v15  ;;  %v52_v19 = vld [vmem:[%s8013_s0 + $0x38] sm:$0xff]  ;;  %v53_v21 = vld [vmem:[%s8013_s0 + $0x40] sm:$0xff]  ;;  %v54_v22 = vld [vmem:[%s8013_s0 + $0x48] sm:$0xff]  ;;  %s5714_s17 = smov 48   ;;  %vm2989_vm3 = vcmask 392192  }
   0x7   :  { %165 = vmatpush1.bf16.msra.mxu0 %v5316_v4  ;;  %v64_v20 = vpack.c.bf16 %v52_v19, %v51_v18  ;;  %v65_v23 = vpack.c.bf16 %v54_v22, %v53_v21  ;;  %v55_v24 = vld [vmem:[%s8013_s0 + $0x50] sm:$0xff]  ;;  %v56_v25 = vld [vmem:[%s8013_s0 + $0x58] sm:$0xff]  ;;  %v57_v27 = vld [vmem:[%s8013_s0 + $0x60] sm:$0xff] }
   0x8   :  { %166 = vmatprep.subr.bf16.mxu0 %v5317_v5  ;;  %v66_v26 = vpack.c.bf16 %v56_v25, %v55_v24  ;;  %v58_v28 = vld [vmem:[%s8013_s0 + $0x68] sm:$0xff]  ;;  %v59_v30 = vld [vmem:[%s8013_s0 + $0x70] sm:$0xff]  ;;  %v60_v31 = vld [vmem:[%s8013_s0 + $0x78] sm:$0xff] }
   0x9   :  { %v67_v29 = vpack.c.bf16 %v58_v28, %v57_v27  ;;  %v68_v32 = vpack.c.bf16 %v60_v31, %v59_v30  ;;  %v77_v36 = vld [vmem:[%s8014_s2] sm:$0x3]  ;;  %s5708_s2 = smov 112  }
   0xa   :  { %v5868_v39 = vrot.slane %v77_v36, %v81_v35  ;;  %v5870_v41 = vrot.slane %v77_v36, %v85_v38 }
   0xb   :  { %167 = vmatpush1.bf16.msra.mxu0 %v5319_v6 }
   0xc   :  { %168 = vmatprep.subr.bf16.mxu0 %v5320_v7 }
   0xf   :  { %169 = vmatpush1.bf16.msra.mxu0 %v5322_v8 }
  0x12   :  { %4280 = vmatmul.mubr.msk.bf16.vlgmr.msra.gmra.mxu0 %vm129_vm0, %v61_v11 }
  0x13   :  { %196 = vmatprep.mubr.bf16.mxu0 %v5707_v1 }
  0x1a   :  { %4281 = vmatmul.mubr.msk.bf16.gmra.mxu0 %vm129_vm0, %v62_v14 }
  0x1b   :  { %206 = vmatprep.mubr.bf16.mxu0 %v5707_v1 }
  0x22   :  { %4282 = vmatmul.mubr.msk.bf16.gmra.mxu0 %vm129_vm0, %v63_v17 }
  0x23   :  { %216 = vmatprep.mubr.bf16.mxu0 %v5707_v1 }
  0x2a   :  { %4283 = vmatmul.mubr.msk.bf16.gmra.mxu0 %vm129_vm0, %v64_v20 }
  0x2b   :  { %226 = vmatprep.mubr.bf16.mxu0 %v5707_v1 }
  0x32   :  { %4284 = vmatmul.mubr.msk.bf16.gmra.mxu0 %vm129_vm0, %v65_v23 }
  0x33   :  { %236 = vmatprep.mubr.bf16.mxu0 %v5707_v1 }
  0x3a   :  { %4285 = vmatmul.mubr.msk.bf16.gmra.mxu0 %vm129_vm0, %v66_v26 }
  0x3b   :  { %246 = vmatprep.mubr.bf16.mxu0 %v5707_v1 }
  0x42   :  { %4286 = vmatmul.mubr.msk.bf16.gmra.mxu0 %vm129_vm0, %v67_v29 }
  0x43   :  { %256 = vmatprep.mubr.bf16.mxu0 %v5707_v1 }
  0x4a   :  { %4287 = vmatmul.mubr.msk.bf16.gmra.mxu0 %vm129_vm0, %v68_v32 }
  0xd2   :  { %v188_v37 = vpop.f32.mrf.mxu0 }
  0xd3   :  { %v189_v43 = vadd.f32 %v188_v37, %v5868_v39 }
  0xd4   :  { %v190_v40 = vpop.f32.mrf.mxu0 }
  0xd5   :  { %v5880_v48 = vadd.f32 %v190_v40, %v5870_v41 }
  0xd6   :  { %v192_v42 = vpop.f32.mrf.mxu0 }
  0xd7   :  { %v193_v44 = vadd.f32 %v192_v42, %v5868_v39 }
  0xd8   :  { %v194_v45 = vpop.f32.mrf.mxu0 }
  0xd9   :  { %v5875_v46 = vadd.f32 %v194_v45, %v5870_v41  ;;  %v5877_v47 = vpack.c.bf16 %v193_v44, %v189_v43  ;;  %v5906_v63 = vpack.i.bf16 %v193_v44, %v189_v43 }
  0xda   :  { %v198_v49 = vpop.f32.mrf.mxu0 }
  0xdb   :  { %4567 = vmatprep.mubr.msk.bf16.mxu1 %vm663_vm1, %v5877_v47  ;;  %v5886_v51 = vpack.c.bf16 %v5875_v46, %v5880_v48  ;;  %v5889_v53 = vadd.f32 %v198_v49, %v5868_v39 }
  0xdc   :  { %v200_v50 = vpop.f32.mrf.mxu0 }
  0xdd   :  { %v201_v56 = vadd.f32 %v200_v50, %v5870_v41 }
  0xde   :  { %v202_v52 = vpop.f32.mrf.mxu0 }
  0xdf   :  { %v5892_v54 = vadd.f32 %v202_v52, %v5868_v39 }
  0xe0   :  { %v204_v55 = vpop.f32.mrf.mxu0 }
  0xe1   :  { %v205_v57 = vadd.f32 %v204_v55, %v5870_v41  ;;  %v5898_v58 = vpack.i.bf16 %v5892_v54, %v5889_v53 }
  0xe2   :  { %v208_v59 = vpop.f32.mrf.mxu0 }
  0xe3   :  { %4962 = vrot.lane.b32.xlu1 %v5898_v58, %s5708_s2  ;;  %v5902_v60 = vpack.i.bf16 %v205_v57, %v201_v56  ;;  %v5904_v62 = vpack.c.bf16 %v205_v57, %v201_v56  ;;  %v209_v17 = vadd.f32 %v208_v59, %v5868_v39  ;;  %v5970_v56 = vpack.c.bf16 %v5892_v54, %v5889_v53 }
  0xe4   :  { %v210_v61 = vpop.f32.mrf.mxu0 }
  0xe5   :  { %v211_v2 = vadd.f32 %v210_v61, %v5870_v41 }
  0xe6   :  { %v212_v0 = vpop.f32.mrf.mxu0 }
  0xe7   :  { %4967 = vrot.lane.b32.xlu1 %v5906_v63, %s5708_s2  ;;  %v213_v11 = vadd.f32 %v212_v0, %v5868_v39 }
  0xe8   :  { %v214_v1 = vpop.f32.mrf.mxu0 }
  0xe9   :  { %v215_v3 = vadd.f32 %v214_v1, %v5870_v41  ;;  %v4956_v21 = vpack.i.bf16 %v213_v11, %v209_v17  ;;  %v5928_v22 = vpack.c.bf16 %v213_v11, %v209_v17 }
  0xea   :  { %v218_v4 = vpop.f32.mrf.mxu0 }
  0xeb   :  { %v5912_v5 = vpack.i.bf16 %v215_v3, %v211_v2  ;;  %v5914_v7 = vpack.c.bf16 %v215_v3, %v211_v2  ;;  %v219_v9 = vadd.f32 %v218_v4, %v5868_v39 }
  0xec   :  { %v220_v6 = vpop.f32.mrf.mxu0 }
  0xed   :  { %v221_v13 = vadd.f32 %v220_v6, %v5870_v41 }
  0xee   :  { %v222_v8 = vpop.f32.mrf.mxu0 }
  0xef   :  { %v223_v10 = vadd.f32 %v222_v8, %v5868_v39 }
  0xf0   :  { %v224_v12 = vpop.f32.mrf.mxu0 }
  0xf1   :  { %v225_v14 = vadd.f32 %v224_v12, %v5870_v41  ;;  %v4951_v15 = vpack.i.bf16 %v223_v10, %v219_v9  ;;  %v5936_v28 = vpack.c.bf16 %v223_v10, %v219_v9 }
  0xf2   :  { %v228_v16 = vpop.f32.mrf.mxu0 }
  0xf3   :  { %4952 = vrot.lane.b32.xlu0 %v4951_v15, %s5708_s2  ;;  %4972 = vrot.lane.b32.xlu1 %v4951_v15, %s5709_s22  ;;  %v5924_v18 = vpack.i.bf16 %v225_v14, %v221_v13  ;;  %v5926_v20 = vpack.c.bf16 %v225_v14, %v221_v13  ;;  %v229_v24 = vadd.f32 %v228_v16, %v5868_v39 }
  0xf4   :  { %v230_v19 = vpop.f32.mrf.mxu0 }
  0xf5   :  { %v231_v25 = vadd.f32 %v230_v19, %v5870_v41 }
  0xf6   :  { %v232_v23 = vpop.f32.mrf.mxu0 }
  0xf7   :  { %4957 = vrot.lane.b32.xlu0 %v4956_v21, %s5708_s2  ;;  %659 = vrot.lane.b32.xlu1 %v5928_v22, %s5710_s23  ;;  %v233_v26 = vadd.f32 %v232_v23, %v5868_v39 }
  0xf8   :  { %v234_v27 = vpop.f32.mrf.mxu0 }
  0xf9   :  { %v235_v29 = vadd.f32 %v234_v27, %v5870_v41  ;;  %v5939_v30 = vpack.i.bf16 %v233_v26, %v229_v24  ;;  %v5941_v32 = vpack.c.bf16 %v233_v26, %v229_v24 }
  0xfa   :  { %v238_v31 = vpop.f32.mrf.mxu0 }
  0xfb   :  { %661 = vrot.lane.b32.xlu0 %v5936_v28, %s5710_s23  ;;  %4987 = vrot.lane.b32.xlu1 %v4956_v21, %s5711_s24  ;;  %v5946_v33 = vpack.i.bf16 %v235_v29, %v231_v25  ;;  %v5948_v35 = vpack.c.bf16 %v235_v29, %v231_v25  ;;  %v239_v37 = vadd.f32 %v238_v31, %v5868_v39 }
  0xfc   :  { %v240_v34 = vpop.f32.mrf.mxu0 }
  0xfd   :  { %8083 = vst [vmem:[#allocation2_spill] sm:$0xff] %v5946_v33  ;;  %8084 = vst [vmem:[#allocation3_spill] sm:$0xff] %v5948_v35  ;;  %v241_v38 = vadd.f32 %v240_v34, %v5870_v41 }
  0xfe   :  { %v242_v36 = vpop.f32.mrf.mxu0 }
  0xff   :  { %4977 = vrot.lane.b32.xlu0 %v4951_v15, %s5711_s24  ;;  %4992 = vrot.lane.b32.xlu1 %v5898_v58, %s5709_s22  ;;  %v243_v40 = vadd.f32 %v242_v36, %v5868_v39 }
 0x100   :  { %v244_v42 = vpop.f32.mrf.mxu0 }
 0x101   :  { %v245_v43 = vadd.f32 %v244_v42, %v5870_v41  ;;  %v5957_v44 = vpack.i.bf16 %v243_v40, %v239_v37  ;;  %v5959_v49 = vpack.c.bf16 %v243_v40, %v239_v37 }
 0x102   :  { %v248_v45 = vpop.f32.mrf.mxu0 }
 0x103   :  { %4982 = vrot.lane.b32.xlu0 %v4956_v21, %s5709_s22  ;;  %655 = vrot.lane.b32.xlu1 %v5877_v47, %s5710_s23  ;;  %v5964_v50 = vpack.i.bf16 %v245_v43, %v241_v38  ;;  %v5966_v55 = vpack.c.bf16 %v245_v43, %v241_v38  ;;  %v249_v59 = vadd.f32 %v248_v45, %v5868_v39 }
 0x104   :  { %v250_v52 = vpop.f32.mrf.mxu0 }
 0x105   :  { %8085 = vst [vmem:[#allocation4_spill] sm:$0xff] %v5966_v55  ;;  %v251_v47 = vadd.f32 %v250_v52, %v5870_v41 }
 0x106   :  { %v252_v57 = vpop.f32.mrf.mxu0 }
 0x107   :  { %657 = vrot.lane.b32.xlu0 %v5970_v56, %s5710_s23  ;;  %5007 = vrot.lane.b32.xlu1 %v5906_v63, %s5711_s24  ;;  %v253_v61 = vadd.f32 %v252_v57, %v5868_v39 }
 0x108   :  { %v254_v0 = vpop.f32.mrf.mxu0 }
 0x109   :  { %v255_v1 = vadd.f32 %v254_v0, %v5870_v41  ;;  %v5980_v2 = vpack.i.bf16 %v253_v61, %v249_v59  ;;  %v5982_v54 = vpack.c.bf16 %v253_v61, %v249_v59 }
 0x10a   :  { %v258_v53 = vpop.f32.mrf.mxu0 }
 0x10b   :  { %4997 = vrot.lane.b32.xlu0 %v5898_v58, %s5711_s24  ;;  %v5986_v3 = vpack.i.bf16 %v255_v1, %v251_v47  ;;  %v5988_v6 = vpack.c.bf16 %v255_v1, %v251_v47  ;;  %v259_v8 = vadd.f32 %v258_v53, %v5868_v39 }
 0x10c   :  { %v260_v4 = vpop.f32.mrf.mxu0 }
 0x10d   :  { %8086 = vst [vmem:[#allocation5_spill] sm:$0xff] %v5988_v6  ;;  %v5994_v10 = vadd.f32 %v260_v4, %v5870_v41 }
 0x10e   :  { %v262_v9 = vpop.f32.mrf.mxu0 }
 0x10f   :  { %5002 = vrot.lane.b32.xlu0 %v5906_v63, %s5709_s22  ;;  %v263_v11 = vadd.f32 %v262_v9, %v5868_v39 }
 0x110   :  { %v264_v12 = vpop.f32.mrf.mxu0 }
 0x111   :  { %v5011_v13 = vpack.i.bf16 %v263_v11, %v259_v8  ;;  %v5998_v58 = vadd.f32 %v264_v12, %v5870_v41  ;;  %v6000_v14 = vpack.c.bf16 %v263_v11, %v259_v8 }
 0x113   :  { %5012 = vrot.lane.b32.xlu1 %v5011_v13, %s5708_s2  ;;  %v6005_v15 = vpack.c.bf16 %v5998_v58, %v5994_v10 }
 0x115   :  { %8087 = vst [vmem:[#allocation6_spill] sm:$0xff] %v6005_v15 }
 0x117   :  { %5017 = vrot.lane.b32.xlu1 %v5980_v2, %s5708_s2 }
 0x11b   :  { %5022 = vrot.lane.b32.xlu1 %v5957_v44, %s5708_s2 }
 0x11f   :  { %5027 = vrot.lane.b32.xlu1 %v5939_v30, %s5708_s2 }
 0x155   :  { %v4963_v39 = vpop.permute.xlu1 %4962 }
 0x156   :  { %v4965_v26 = vunpack.i.h.bf16 %v4963_v39  ;;  %v4964_v27 = vunpack.i.l.bf16 %v4963_v39 }
 0x158   :  { %v6024_v40 = vpack.c.bf16 %v4965_v26, %v4964_v27 }
 0x159   :  { %v4968_v41 = vpop.permute.xlu1 %4967 }
 0x15a   :  { %v4970_v37 = vunpack.i.h.bf16 %v4968_v41  ;;  %v4969_v38 = vunpack.i.l.bf16 %v4968_v41 }
 0x15c   :  { %v6028_v47 = vpack.c.bf16 %v4970_v37, %v4969_v38 }
 0x165   :  { %v4953_v63 = vpop.permute.xlu0 %4952  ;;  %v4973_v19 = vpop.permute.xlu1 %4972 }
 0x166   :  { %v4955_v16 = vunpack.i.h.bf16 %v4953_v63  ;;  %v4954_v17 = vunpack.i.l.bf16 %v4953_v63  ;;  %v4975_v57 = vunpack.i.h.bf16 %v4973_v19  ;;  %v4974_v59 = vunpack.i.l.bf16 %v4973_v19 }
 0x168   :  { %v6013_v21 = vpack.c.bf16 %v4955_v16, %v4954_v17  ;;  %v6037_v53 = vpack.c.bf16 %v4975_v57, %v4974_v59 }
 0x169   :  { %v4958_v23 = vpop.permute.xlu0 %4957  ;;  %v660_v31 = vpop.permute.xlu1 %659 }
 0x16a   :  { %v4960_v24 = vunpack.i.h.bf16 %v4958_v23  ;;  %v4959_v25 = vunpack.i.l.bf16 %v4958_v23  ;;  %763 = vrot.lane.b32.xlu0 %v6013_v21, %s5710_s23  ;;  %v683_v1 = vsel %vm663_vm1, %v660_v31, 0 }
 0x16c   :  { %v6017_v29 = vpack.c.bf16 %v4960_v24, %v4959_v25 }
 0x16d   :  { %v662_v34 = vpop.permute.xlu0 %661  ;;  %v4988_v52 = vpop.permute.xlu1 %4987 }
 0x16e   :  { %4911 = vmatprep.subr.msk.bf16.mxu1 %vm663_vm1, %v662_v34  ;;  %761 = vrot.lane.b32.xlu0 %v6017_v29, %s5710_s23  ;;  %v686_v36 = vsel %vm663_vm1, %v662_v34, 0  ;;  %v4990_v4 = vunpack.i.h.bf16 %v4988_v52  ;;  %v4989_v8 = vunpack.i.l.bf16 %v4988_v52 }
 0x16f   :  { %4560 = vmatpush3.bf16.xpose.msra.mxu1 %v686_v36 }
 0x170   :  { %4912 = vmatprep.subr.msk.bf16.mxu1 %vm663_vm1, %v660_v31  ;;  %v6043_v63 = vpack.c.bf16 %v4990_v4, %v4989_v8 }
 0x171   :  { %v4978_v42 = vpop.permute.xlu0 %4977  ;;  %v4993_v9 = vpop.permute.xlu1 %4992 }
 0x172   :  { %v4980_v43 = vunpack.i.h.bf16 %v4978_v42  ;;  %v4979_v45 = vunpack.i.l.bf16 %v4978_v42  ;;  %759 = vrot.lane.b32.xlu0 %v6024_v40, %s5710_s23  ;;  %v4994_v31 = vunpack.i.l.bf16 %v4993_v9 }
 0x174   :  { %v6030_v61 = vpack.c.bf16 %v4980_v43, %v4979_v45 }
 0x175   :  { %v4983_v0 = vpop.permute.xlu0 %4982  ;;  %v656_v17 = vpop.permute.xlu1 %655 }
 0x176   :  { %757 = vrot.lane.b32.xlu0 %v6028_v47, %s5710_s23  ;;  %965 = vrot.lane.b32.xlu1 %v6030_v61, %s5710_s23  ;;  %v4985_v12 = vunpack.i.h.bf16 %v4983_v0  ;;  %v4984_v39 = vunpack.i.l.bf16 %v4983_v0  ;;  %v677_v38 = vsel %vm663_vm1, %v656_v17, 0 }
 0x177   :  { %4562 = vmatpush3.bf16.xpose.msra.mxu1 %v683_v1 }
 0x178   :  { %v6050_v19 = vpack.c.bf16 %v4985_v12, %v4984_v39 }
 0x179   :  { %v658_v11 = vpop.permute.xlu0 %657  ;;  %v5008_v37 = vpop.permute.xlu1 %5007 }
 0x17a   :  { %4913 = vmatprep.subr.msk.bf16.mxu1 %vm663_vm1, %v658_v11  ;;  %864 = vrot.lane.b32.xlu0 %v6037_v53, %s5710_s23  ;;  %v680_v16 = vsel %vm663_vm1, %v658_v11, 0  ;;  %v5010_v43 = vunpack.i.h.bf16 %v5008_v37  ;;  %v5009_v45 = vunpack.i.l.bf16 %v5008_v37 }
 0x17b   :  { %5037 = vrot.lane.b32.xlu1 %v5011_v13, %s5711_s24 }
 0x17c   :  { %v6070_v57 = vpack.c.bf16 %v5010_v43, %v5009_v45 }
 0x17d   :  { %v4998_v41 = vpop.permute.xlu0 %4997 }
 0x17e   :  { %5032 = vrot.lane.b32.xlu0 %v5011_v13, %s5709_s22  ;;  %v5000_v23 = vunpack.i.h.bf16 %v4998_v41  ;;  %v4999_v24 = vunpack.i.l.bf16 %v4998_v41  ;;  %v4995_v13 = vunpack.i.h.bf16 %v4993_v9 }
 0x17f   :  { %963 = vrot.lane.b32.xlu1 %v6043_v63, %s5710_s23  ;;  %4564 = vmatpush3.bf16.xpose.msra.mxu1 %v680_v16 }
 0x180   :  { %4914 = vmatprep.subr.msk.bf16.mxu1 %vm663_vm1, %v656_v17  ;;  %v6056_v36 = vpack.c.bf16 %v5000_v23, %v4999_v24  ;;  %v6064_v42 = vpack.c.bf16 %v4995_v13, %v4994_v31 }
 0x181   :  { %v5003_v25 = vpop.permute.xlu0 %5002 }
 0x182   :  { %v5005_v26 = vunpack.i.h.bf16 %v5003_v25  ;;  %v5004_v27 = vunpack.i.l.bf16 %v5003_v25  ;;  %862 = vrot.lane.b32.xlu0 %v6050_v19, %s5710_s23 }
 0x183   :  { %5047 = vrot.lane.b32.xlu1 %v5980_v2, %s5711_s24 }
 0x184   :  { %v435_v34 = vpack.c.bf16 %v5005_v26, %v5004_v27 }
 0x185   :  { %v5013_v52 = vpop.permute.xlu1 %5012 }
 0x186   :  { %4599 = vmatprep.mubr.msk.bf16.mxu0 %vm663_vm1, %v435_v34  ;;  %5042 = vrot.lane.b32.xlu0 %v5980_v2, %s5709_s22  ;;  %v5015_v2 = vunpack.i.h.bf16 %v5013_v52  ;;  %v5014_v59 = vunpack.i.l.bf16 %v5013_v52 }
 0x187   :  { %961 = vrot.lane.b32.xlu1 %v6056_v36, %s5710_s23  ;;  %4566 = vmatpush3.bf16.xpose.msra.mxu1 %v677_v38 }
 0x188   :  { %v6083_v1 = vpack.c.bf16 %v5015_v2, %v5014_v59 }
 0x189   :  { %v5018_v0 = vpop.permute.xlu1 %5017 }
 0x18a   :  { %860 = vrot.lane.b32.xlu0 %v6064_v42, %s5710_s23  ;;  %v5019_v4 = vunpack.i.l.bf16 %v5018_v0 }
 0x18b   :  { %5057 = vrot.lane.b32.xlu1 %v5957_v44, %s5711_s24 }
 0x18d   :  { %v5023_v8 = vpop.permute.xlu1 %5022 }
 0x18e   :  { %5052 = vrot.lane.b32.xlu0 %v5957_v44, %s5709_s22  ;;  %4568 = vmatmul.mubr.msk.bf16.vlgmr.msra.gmra.mxu1 %vm663_vm1, %v5970_v56  ;;  %v5020_v44 = vunpack.i.h.bf16 %v5018_v0  ;;  %v5025_v56 = vunpack.i.h.bf16 %v5023_v8  ;;  %v5024_v9 = vunpack.i.l.bf16 %v5023_v8 }
 0x18f   :  { %959 = vrot.lane.b32.xlu1 %v6070_v57, %s5710_s23  ;;  %4571 = vmatprep.mubr.msk.bf16.mxu1 %vm663_vm1, %v5928_v22 }
 0x190   :  { %v6093_v22 = vpack.c.bf16 %v5020_v44, %v5019_v4 }
 0x191   :  { %v5028_v11 = vpop.permute.xlu1 %5027 }
 0x192   :  { %858 = vrot.lane.b32.xlu0 %v435_v34, %s5710_s23  ;;  %v5029_v12 = vunpack.i.l.bf16 %v5028_v11 }
 0x193   :  { %5067 = vrot.lane.b32.xlu1 %v5939_v30, %s5711_s24 }
 0x196   :  { %5062 = vrot.lane.b32.xlu0 %v5939_v30, %s5709_s22  ;;  %4572 = vmatmul.mubr.msk.bf16.gmra.mxu1 %vm663_vm1, %v5936_v28  ;;  %v6099_v30 = vpack.c.bf16 %v5025_v56, %v5024_v9  ;;  %v5030_v28 = vunpack.i.h.bf16 %v5028_v11 }
 0x197   :  { %4583 = vmatprep.mubr.msk.bf16.mxu1 %vm663_vm1, %v6028_v47  ;;  %1167 = vrot.lane.b32.xlu1 %v6083_v1, %s5710_s23 }
 0x198   :  { %v6105_v47 = vpack.c.bf16 %v5030_v28, %v5029_v12 }
 0x19a   :  { %1066 = vrot.lane.b32.xlu0 %v6000_v14, %s5710_s23 }
 0x19b   :  { %1165 = vrot.lane.b32.xlu1 %v6093_v22, %s5710_s23 }
 0x19e   :  { %1064 = vrot.lane.b32.xlu0 %v5982_v54, %s5710_s23 }
 0x19f   :  { %1163 = vrot.lane.b32.xlu1 %v6099_v30, %s5710_s23 }
 0x1a2   :  { %1062 = vrot.lane.b32.xlu0 %v5959_v49, %s5710_s23 }
 0x1a3   :  { %1161 = vrot.lane.b32.xlu1 %v6105_v47, %s5710_s23 }
 0x1a6   :  { %1060 = vrot.lane.b32.xlu0 %v5941_v32, %s5710_s23 }
 0x1dc   :  { %v764_v39 = vpop.permute.xlu0 %763 }
 0x1dd   :  { %4915 = vmatprep.subr.msk.bf16.mxu1 %vm663_vm1, %v764_v39  ;;  %v787_v41 = vsel %vm663_vm1, %v764_v39, 0 }
 0x1de   :  { %4576 = vmatpush3.bf16.xpose.msra.mxu1 %v787_v41 }
 0x1e0   :  { %v762_v16 = vpop.permute.xlu0 %761 }
 0x1e1   :  { %4916 = vmatprep.subr.msk.bf16.mxu1 %vm663_vm1, %v762_v16  ;;  %v784_v23 = vsel %vm663_vm1, %v762_v16, 0 }
 0x1e4   :  { %v760_v17 = vpop.permute.xlu0 %759 }
 0x1e5   :  { %v781_v13 = vsel %vm663_vm1, %v760_v17, 0 }
 0x1e6   :  { %4578 = vmatpush3.bf16.xpose.msra.mxu1 %v784_v23 }
 0x1e7   :  { %4917 = vmatprep.subr.msk.bf16.mxu1 %vm663_vm1, %v760_v17 }
 0x1e8   :  { %v758_v24 = vpop.permute.xlu0 %757  ;;  %v966_v25 = vpop.permute.xlu1 %965 }
 0x1e9   :  { %v778_v4 = vsel %vm663_vm1, %v758_v24, 0 }
 0x1ec   :  { %v865_v26 = vpop.permute.xlu0 %864 }
 0x1ed   :  { %v5038_v27 = vpop.permute.xlu1 %5037  ;;  %4919 = vmatprep.subr.msk.bf16.mxu0 %vm663_vm1, %v865_v26  ;;  %v888_v31 = vsel %vm663_vm1, %v865_v26, 0 }
 0x1ee   :  { %v5040_v34 = vunpack.i.h.bf16 %v5038_v27  ;;  %v5039_v37 = vunpack.i.l.bf16 %v5038_v27  ;;  %4580 = vmatpush3.bf16.xpose.msra.mxu1 %v781_v13  ;;  %4592 = vmatpush3.bf16.xpose.msra.mxu0 %v888_v31  ;;  %v989_v13 = vsel %vm663_vm1, %v966_v25, 0 }
 0x1ef   :  { %4918 = vmatprep.subr.msk.bf16.mxu1 %vm663_vm1, %v758_v24 }
 0x1f0   :  { %v5033_v38 = vpop.permute.xlu0 %5032  ;;  %v6122_v43 = vpack.c.bf16 %v5040_v34, %v5039_v37 }
 0x1f1   :  { %v5035_v45 = vunpack.i.h.bf16 %v5033_v38  ;;  %v5034_v52 = vunpack.i.l.bf16 %v5033_v38  ;;  %v964_v2 = vpop.permute.xlu1 %963 }
 0x1f2   :  { %1369 = vrot.lane.b32.xlu1 %v6122_v43, %s5710_s23 }
 0x1f3   :  { %v6126_v59 = vpack.c.bf16 %v5035_v45, %v5034_v52 }
 0x1f4   :  { %v863_v0 = vpop.permute.xlu0 %862 }
 0x1f5   :  { %v5048_v44 = vpop.permute.xlu1 %5047  ;;  %4920 = vmatprep.subr.msk.bf16.mxu0 %vm663_vm1, %v863_v0  ;;  %1268 = vrot.lane.b32.xlu0 %v6126_v59, %s5710_s23  ;;  %v885_v8 = vsel %vm663_vm1, %v863_v0, 0 }
 0x1f6   :  { %v5050_v56 = vunpack.i.h.bf16 %v5048_v44  ;;  %v5049_v9 = vunpack.i.l.bf16 %v5048_v44  ;;  %4582 = vmatpush3.bf16.xpose.msra.mxu1 %v778_v4  ;;  %4594 = vmatpush3.bf16.xpose.msra.mxu0 %v885_v8  ;;  %v986_v4 = vsel %vm663_vm1, %v964_v2, 0 }
 0x1f7   :  { %4923 = vmatprep.subr.msk.bf16.mxu1 %vm663_vm1, %v966_v25 }
 0x1f8   :  { %v5043_v11 = vpop.permute.xlu0 %5042  ;;  %v6134_v28 = vpack.c.bf16 %v5050_v56, %v5049_v9 }
 0x1f9   :  { %v5045_v12 = vunpack.i.h.bf16 %v5043_v11  ;;  %v5044_v39 = vunpack.i.l.bf16 %v5043_v11  ;;  %v962_v41 = vpop.permute.xlu1 %961 }
 0x1fa   :  { %1367 = vrot.lane.b32.xlu1 %v6134_v28, %s5710_s23 }
 0x1fb   :  { %v6138_v16 = vpack.c.bf16 %v5045_v12, %v5044_v39  ;;  %v5086_v39 = vpack.i.bf16 %v5875_v46, %v5880_v48 }
 0x1fc   :  { %v861_v17 = vpop.permute.xlu0 %860 }
 0x1fd   :  { %v5058_v23 = vpop.permute.xlu1 %5057  ;;  %4921 = vmatprep.subr.msk.bf16.mxu0 %vm663_vm1, %v861_v17  ;;  %1266 = vrot.lane.b32.xlu0 %v6138_v16, %s5710_s23  ;;  %v882_v24 = vsel %vm663_vm1, %v861_v17, 0 }
 0x1fe   :  { %v5060_v26 = vunpack.i.h.bf16 %v5058_v23  ;;  %v5059_v27 = vunpack.i.l.bf16 %v5058_v23  ;;  %4584 = vmatmul.mubr.msk.bf16.vlgmr.msra.gmra.mxu1 %vm663_vm1, %v6024_v40  ;;  %4596 = vmatpush3.bf16.xpose.msra.mxu0 %v882_v24 }
 0x1ff   :  { %4587 = vmatprep.mubr.msk.bf16.mxu1 %vm663_vm1, %v6017_v29  ;;  %4608 = vmatpush3.bf16.xpose.msra.mxu1 %v989_v13 }
 0x200   :  { %4924 = vmatprep.subr.msk.bf16.mxu1 %vm663_vm1, %v964_v2  ;;  %v5053_v31 = vpop.permute.xlu0 %5052  ;;  %v6150_v34 = vpack.c.bf16 %v5060_v26, %v5059_v27  ;;  %v983_v2 = vsel %vm663_vm1, %v962_v41, 0 }
 0x201   :  { %v5055_v37 = vunpack.i.h.bf16 %v5053_v31  ;;  %v5054_v38 = vunpack.i.l.bf16 %v5053_v31  ;;  %v960_v45 = vpop.permute.xlu1 %959 }
 0x202   :  { %1365 = vrot.lane.b32.xlu1 %v6150_v34, %s5710_s23 }
 0x203   :  { %v6154_v52 = vpack.c.bf16 %v5055_v37, %v5054_v38 }
 0x204   :  { %v859_v40 = vpop.permute.xlu0 %858 }
 0x205   :  { %v5068_v0 = vpop.permute.xlu1 %5067  ;;  %4922 = vmatprep.subr.msk.bf16.mxu0 %vm663_vm1, %v859_v40  ;;  %1264 = vrot.lane.b32.xlu0 %v6154_v52, %s5710_s23  ;;  %v879_v29 = vsel %vm663_vm1, %v859_v40, 0 }
 0x206   :  { %v5070_v25 = vunpack.i.h.bf16 %v5068_v0  ;;  %v5069_v44 = vunpack.i.l.bf16 %v5068_v0  ;;  %4588 = vmatmul.mubr.msk.bf16.gmra.mxu1 %vm663_vm1, %v6013_v21  ;;  %4598 = vmatpush3.bf16.xpose.msra.mxu0 %v879_v29 }
 0x207   :  { %4610 = vmatpush3.bf16.xpose.msra.mxu1 %v986_v4  ;;  %4615 = vmatprep.mubr.msk.bf16.mxu1 %vm663_vm1, %v6070_v57 }
 0x208   :  { %4925 = vmatprep.subr.msk.bf16.mxu1 %vm663_vm1, %v962_v41  ;;  %v5063_v8 = vpop.permute.xlu0 %5062  ;;  %v6166_v56 = vpack.c.bf16 %v5070_v25, %v5069_v44  ;;  %v980_v41 = vsel %vm663_vm1, %v960_v45, 0 }
 0x209   :  { %v5065_v9 = vunpack.i.h.bf16 %v5063_v8  ;;  %v5064_v11 = vunpack.i.l.bf16 %v5063_v8 }
 0x20a   :  { %1363 = vrot.lane.b32.xlu1 %v6166_v56, %s5710_s23 }
 0x20b   :  { %v6170_v12 = vpack.c.bf16 %v5065_v9, %v5064_v11 }
 0x20c   :  { %v1067_v21 = vpop.permute.xlu0 %1066 }
 0x20d   :  { %4600 = vmatmul.mubr.msk.bf16.vlgmr.msra.gmra.mxu0 %vm663_vm1, %v6064_v42  ;;  %4927 = vmatprep.subr.msk.bf16.mxu0 %vm663_vm1, %v1067_v21  ;;  %v1090_v57 = vsel %vm663_vm1, %v1067_v21, 0 }
 0x20e   :  { %1262 = vrot.lane.b32.xlu0 %v6170_v12, %s5710_s23  ;;  %5072 = vrot.lane.b32.xlu1 %v5924_v18, %s5708_s2 }
 0x20f   :  { %4603 = vmatprep.mubr.msk.bf16.mxu0 %vm663_vm1, %v6050_v19  ;;  %4612 = vmatpush3.bf16.xpose.msra.mxu1 %v983_v2  ;;  %v1168_v19 = vpop.permute.xlu1 %1167 }
 0x210   :  { %4624 = vmatpush3.bf16.xpose.msra.mxu0 %v1090_v57  ;;  %4926 = vmatprep.subr.msk.bf16.mxu1 %vm663_vm1, %v960_v45  ;;  %v1065_v42 = vpop.permute.xlu0 %1064  ;;  %v1191_v46 = vsel %vm663_vm1, %v1168_v19, 0 }
 0x211   :  { %4928 = vmatprep.subr.msk.bf16.mxu0 %vm663_vm1, %v1065_v42  ;;  %v1087_v17 = vsel %vm663_vm1, %v1065_v42, 0 }
 0x212   :  { %5077 = vrot.lane.b32.xlu0 %v5912_v5, %s5708_s2  ;;  %5082 = vrot.lane.b32.xlu1 %v5902_v60, %s5708_s2 }
 0x214   :  { %v1063_v23 = vpop.permute.xlu0 %1062 }
 0x215   :  { %4604 = vmatmul.mubr.msk.bf16.gmra.mxu0 %vm663_vm1, %v6037_v53  ;;  %v1084_v48 = vsel %vm663_vm1, %v1063_v23, 0 }
 0x216   :  { %5087 = vrot.lane.b32.xlu0 %v5086_v39, %s5708_s2  ;;  %5097 = vrot.lane.b32.xlu1 %v5924_v18, %s5711_s24 }
 0x217   :  { %4614 = vmatpush3.bf16.xpose.msra.mxu1 %v980_v41  ;;  %4631 = vmatprep.mubr.msk.bf16.mxu0 %vm663_vm1, %v5941_v32 }
 0x218   :  { %4626 = vmatpush3.bf16.xpose.msra.mxu0 %v1087_v17  ;;  %4931 = vmatprep.subr.msk.bf16.mxu1 %vm663_vm1, %v1168_v19  ;;  %v1061_v32 = vpop.permute.xlu0 %1060 }
 0x219   :  { %4929 = vmatprep.subr.msk.bf16.mxu0 %vm663_vm1, %v1063_v23 }
 0x21a   :  { %5092 = vrot.lane.b32.xlu0 %v5924_v18, %s5709_s22  ;;  %5107 = vrot.lane.b32.xlu1 %v5912_v5, %s5711_s24  ;;  %v1166_v18 = vpop.permute.xlu1 %1165 }
 0x21b   :  { %v1188_v53 = vsel %vm663_vm1, %v1166_v18, 0 }
 0x21e   :  { %5102 = vrot.lane.b32.xlu0 %v5912_v5, %s5709_s22  ;;  %5122 = vrot.lane.b32.xlu1 %v5086_v39, %s5709_s22  ;;  %v5151_v5 = vpack.i.bf16 %v5998_v58, %v5994_v10 }
 0x21f   :  { %4616 = vmatmul.mubr.msk.bf16.vlgmr.msra.gmra.mxu1 %vm663_vm1, %v6056_v36  ;;  %v1164_v36 = vpop.permute.xlu1 %1163 }
 0x220   :  { %4619 = vmatprep.mubr.msk.bf16.mxu1 %vm663_vm1, %v6043_v63  ;;  %4628 = vmatpush3.bf16.xpose.msra.mxu0 %v1084_v48  ;;  %v1081_v63 = vsel %vm663_vm1, %v1061_v32, 0 }
 0x221   :  { %4640 = vmatpush3.bf16.xpose.msra.mxu1 %v1191_v46  ;;  %4930 = vmatprep.subr.msk.bf16.mxu0 %vm663_vm1, %v1061_v32 }
 0x222   :  { %5112 = vrot.lane.b32.xlu0 %v5902_v60, %s5709_s22  ;;  %5137 = vrot.lane.b32.xlu1 %v5986_v3, %s5708_s2 }
 0x223   :  { %4932 = vmatprep.subr.msk.bf16.mxu1 %vm663_vm1, %v1166_v18  ;;  %v1162_v10 = vpop.permute.xlu1 %1161 }
 0x224   :  { %v1182_v58 = vsel %vm663_vm1, %v1162_v10, 0 }
 0x226   :  { %5117 = vrot.lane.b32.xlu0 %v5902_v60, %s5711_s24  ;;  %5152 = vrot.lane.b32.xlu1 %v5151_v5, %s5709_s22  ;;  %v1185_v60 = vsel %vm663_vm1, %v1164_v36, 0 }
 0x227   :  { %4620 = vmatmul.mubr.msk.bf16.gmra.mxu1 %vm663_vm1, %v6030_v61 }
 0x228   :  { %4630 = vmatpush3.bf16.xpose.msra.mxu0 %v1081_v63  ;;  %4647 = vmatprep.mubr.msk.bf16.mxu1 %vm663_vm1, %v6105_v47 }
 0x229   :  { %4642 = vmatpush3.bf16.xpose.msra.mxu1 %v1188_v53 }
 0x22a   :  { %5127 = vrot.lane.b32.xlu0 %v5086_v39, %s5711_s24  ;;  %5167 = vrot.lane.b32.xlu1 %v5986_v3, %s5711_s24 }
 0x22b   :  { %4933 = vmatprep.subr.msk.bf16.mxu1 %vm663_vm1, %v1164_v36 }
 0x22e   :  { %5132 = vrot.lane.b32.xlu0 %v5151_v5, %s5708_s2  ;;  %5177 = vrot.lane.b32.xlu1 %v5964_v50, %s5711_s24 }
 0x22f   :  { %4632 = vmatmul.mubr.msk.bf16.vlgmr.msra.gmra.mxu0 %vm663_vm1, %v5959_v49 }
 0x230   :  { %4635 = vmatprep.mubr.msk.bf16.mxu0 %vm663_vm1, %v5982_v54 }
 0x231   :  { %4644 = vmatpush3.bf16.xpose.msra.mxu1 %v1185_v60 }
 0x232   :  { %5142 = vrot.lane.b32.xlu0 %v5964_v50, %s5708_s2  ;;  %4934 = vmatprep.subr.msk.bf16.mxu1 %vm663_vm1, %v1162_v10 }
 0x236   :  { %5147 = vrot.lane.b32.xlu0 %v5946_v33, %s5708_s2 }
 0x237   :  { %4636 = vmatmul.mubr.msk.bf16.gmra.mxu0 %vm663_vm1, %v6000_v14 }
 0x238   :  { %4663 = vmatprep.mubr.msk.bf16.mxu0 %vm663_vm1, %v6170_v12 }
 0x239   :  { %4646 = vmatpush3.bf16.xpose.msra.mxu1 %v1182_v58 }
 0x23a   :  { %5157 = vrot.lane.b32.xlu0 %v5151_v5, %s5711_s24 }
 0x23e   :  { %5162 = vrot.lane.b32.xlu0 %v5986_v3, %s5709_s22 }
 0x240   :  { %4648 = vmatmul.mubr.msk.bf16.vlgmr.msra.gmra.mxu1 %vm663_vm1, %v6099_v30 }
 0x241   :  { %4651 = vmatprep.mubr.msk.bf16.mxu1 %vm663_vm1, %v6093_v22 }
 0x242   :  { %5172 = vrot.lane.b32.xlu0 %v5964_v50, %s5709_s22 }
 0x248   :  { %4652 = vmatmul.mubr.msk.bf16.gmra.mxu1 %vm663_vm1, %v6083_v1 }
 0x249   :  { %4679 = vmatprep.mubr.msk.bf16.mxu1 %vm663_vm1, %v6166_v56 }
 0x24e   :  { %v4569_v49 = vpop.f32.mrf.mxu1 }
 0x24f   :  { %v6277_v26 = vmul.f32 0.25, %v4569_v49 }
 0x250   :  { %v722_v54 = vpop.f32.mrf.mxu1 }
 0x251   :  { %v6281_v13 = vmul.f32 0.25, %v722_v54  ;;  %v1530_v31 = vsel %vm129_vm0, %v6277_v26, -inf }
 0x252   :  { %v4570_v14 = vpop.f32.mrf.mxu1 }
 0x253   :  { %v6285_v37 = vmul.f32 0.25, %v4570_v14  ;;  %v1524_v45 = vsel %vm129_vm0, %v6281_v13, -inf }
 0x254   :  { %v725_v61 = vpop.f32.mrf.mxu1 }
 0x255   :  { %v6267_v3 = vmul.f32 0.25, %v725_v61  ;;  %v1533_v44 = vsel %vm129_vm0, %v6285_v37, -inf }
 0x256   :  { %v4573_v47 = vpop.f32.mrf.mxu1 }
 0x257   :  { %v6269_v30 = vmul.f32 0.25, %v4573_v47  ;;  %v1527_v22 = vsel %vm129_vm0, %v6267_v3, -inf }
 0x258   :  { %1528 = vmax.xlane.f32.xlu1 %v1527_v22  ;;  %v738_v50 = vpop.f32.mrf.mxu1 }
 0x259   :  { %v6273_v24 = vmul.f32 0.25, %v738_v50  ;;  %v1542_v1 = vsel %vm129_vm0, %v6269_v30, -inf }
 0x25a   :  { %v4574_v40 = vpop.f32.mrf.mxu1 }
 0x25b   :  { %v1536_v27 = vsel %vm129_vm0, %v6273_v24, -inf  ;;  %v6291_v25 = vmul.f32 0.25, %v4574_v40 }
 0x25c   :  { %1543 = vmax.xlane.f32.xlu1 %v1542_v1  ;;  %v741_v8 = vpop.f32.mrf.mxu1 }
 0x25d   :  { %v6297_v56 = vmul.f32 0.25, %v741_v8  ;;  %v1545_v11 = vsel %vm129_vm0, %v6291_v25, -inf }
 0x25f   :  { %v1539_v57 = vsel %vm129_vm0, %v6297_v56, -inf }
 0x260   :  { %1537 = vmax.xlane.f32.xlu1 %v1536_v27 }
 0x261   :  { %1531 = vmax.xlane.f32.xlu0 %v1530_v31 }
 0x264   :  { %v1370_v38 = vpop.permute.xlu1 %1369 }
 0x265   :  { %4939 = vmatprep.subr.msk.bf16.mxu1 %vm663_vm1, %v1370_v38  ;;  %1525 = vmax.xlane.f32.xlu0 %v1524_v45  ;;  %v1393_v0 = vsel %vm663_vm1, %v1370_v38, 0 }
 0x266   :  { %4672 = vmatpush3.bf16.xpose.msra.mxu1 %v1393_v0 }
 0x267   :  { %v1269_v29 = vpop.permute.xlu0 %1268 }
 0x268   :  { %4935 = vmatprep.subr.msk.bf16.mxu0 %vm663_vm1, %v1269_v29  ;;  %v1292_v4 = vsel %vm663_vm1, %v1269_v29, 0 }
 0x269   :  { %1534 = vmax.xlane.f32.xlu0 %v1533_v44  ;;  %4656 = vmatpush3.bf16.xpose.msra.mxu0 %v1292_v4 }
 0x26c   :  { %v1368_v9 = vpop.permute.xlu1 %1367 }
 0x26d   :  { %4940 = vmatprep.subr.msk.bf16.mxu1 %vm663_vm1, %v1368_v9  ;;  %1546 = vmax.xlane.f32.xlu0 %v1545_v11  ;;  %v1390_v12 = vsel %vm663_vm1, %v1368_v9, 0 }
 0x26e   :  { %4674 = vmatpush3.bf16.xpose.msra.mxu1 %v1390_v12 }
 0x26f   :  { %v1267_v21 = vpop.permute.xlu0 %1266 }
 0x270   :  { %4936 = vmatprep.subr.msk.bf16.mxu0 %vm663_vm1, %v1267_v21  ;;  %v1289_v2 = vsel %vm663_vm1, %v1267_v21, 0 }
 0x271   :  { %1540 = vmax.xlane.f32.xlu0 %v1539_v57  ;;  %4658 = vmatpush3.bf16.xpose.msra.mxu0 %v1289_v2 }
 0x274   :  { %v1366_v42 = vpop.permute.xlu1 %1365 }
 0x275   :  { %4941 = vmatprep.subr.msk.bf16.mxu1 %vm663_vm1, %v1366_v42  ;;  %v1387_v39 = vsel %vm663_vm1, %v1366_v42, 0 }
 0x276   :  { %4676 = vmatpush3.bf16.xpose.msra.mxu1 %v1387_v39 }
 0x277   :  { %v1265_v19 = vpop.permute.xlu0 %1264 }
 0x278   :  { %4937 = vmatprep.subr.msk.bf16.mxu0 %vm663_vm1, %v1265_v19  ;;  %v1286_v41 = vsel %vm663_vm1, %v1265_v19, 0 }
 0x279   :  { %4660 = vmatpush3.bf16.xpose.msra.mxu0 %v1286_v41 }
 0x27c   :  { %v1364_v17 = vpop.permute.xlu1 %1363 }
 0x27d   :  { %4942 = vmatprep.subr.msk.bf16.mxu1 %vm663_vm1, %v1364_v17  ;;  %v1384_v23 = vsel %vm663_vm1, %v1364_v17, 0 }
 0x27e   :  { %4678 = vmatpush3.bf16.xpose.msra.mxu1 %v1384_v23 }
 0x280   :  { %v1263_v46 = vpop.permute.xlu0 %1262  ;;  %v5073_v48 = vpop.permute.xlu1 %5072 }
 0x281   :  { %4938 = vmatprep.subr.msk.bf16.mxu0 %vm663_vm1, %v1263_v46  ;;  %v1283_v32 = vsel %vm663_vm1, %v1263_v46, 0  ;;  %v5074_v58 = vunpack.i.l.bf16 %v5073_v48 }
 0x282   :  { %4662 = vmatpush3.bf16.xpose.msra.mxu0 %v1283_v32 }
 0x283   :  { %4687 = vmatprep.subr.bf16.mxu0 %v5926_v20 }
 0x284   :  { %v6316_v18 = vpop.permute.xlu0 %5077  ;;  %v6318_v5 = vpop.permute.xlu1 %5082 }
 0x285   :  { %4680 = vmatmul.mubr.msk.bf16.vlgmr.msra.gmra.mxu1 %vm663_vm1, %v6150_v34 }
 0x286   :  { %4683 = vmatprep.mubr.msk.bf16.mxu1 %vm663_vm1, %v6134_v28 }
 0x288   :  { %v6324_v53 = vpop.permute.xlu0 %5087  ;;  %v6326_v63 = vpop.permute.xlu1 %5097 }
 0x289   :  { %8088 = vst [vmem:[#allocation7_spill] sm:$0xff] %v6324_v53  ;;  %8089 = vst [vmem:[#allocation8_spill] sm:$0xff] %v6326_v63  ;;  %4664 = vmatmul.mubr.msk.bf16.vlgmr.msra.gmra.mxu0 %vm663_vm1, %v6154_v52  ;;  %v5075_v52 = vunpack.i.h.bf16 %v5073_v48 }
 0x28a   :  { %4667 = vmatprep.mubr.msk.bf16.mxu0 %vm663_vm1, %v6138_v16  ;;  %4688 = vmatpush3.bf16.msra.mxu0 %v5926_v20 }
 0x28b   :  { %4689 = vmatprep.subr.bf16.mxu0 %v5914_v7  ;;  %v6344_v14 = vpack.c.bf16 %v5075_v52, %v5074_v58 }
 0x28c   :  { %v5093_v36 = vpop.permute.xlu0 %5092  ;;  %v6334_v60 = vpop.permute.xlu1 %5107 }
 0x28d   :  { %8090 = vst [vmem:[#allocation9_spill] sm:$0xff] %v6334_v60  ;;  %v5095_v34 = vunpack.i.h.bf16 %v5093_v36  ;;  %v5094_v10 = vunpack.i.l.bf16 %v5093_v36  ;;  %4684 = vmatmul.mubr.msk.bf16.gmra.mxu1 %vm663_vm1, %v6122_v43 }
 0x28e   :  { %4690 = vmatpush3.bf16.msra.mxu0 %v5914_v7 }
 0x28f   :  { %4691 = vmatprep.subr.bf16.mxu0 %v5904_v62  ;;  %v630_v28 = vpack.c.bf16 %v5095_v34, %v5094_v10 }
 0x290   :  { %v5103_v16 = vpop.permute.xlu0 %5102  ;;  %v5123_v54 = vpop.permute.xlu1 %5122 }
 0x291   :  { %v5105_v49 = vunpack.i.h.bf16 %v5103_v16  ;;  %v5104_v20 = vunpack.i.l.bf16 %v5103_v16  ;;  %4668 = vmatmul.mubr.msk.bf16.gmra.mxu0 %vm663_vm1, %v6126_v59  ;;  %4719 = vmatprep.subr.bf16.mxu1 %v630_v28  ;;  %v5125_v61 = vunpack.i.h.bf16 %v5123_v54  ;;  %v5124_v47 = vunpack.i.l.bf16 %v5123_v54 }
 0x292   :  { %4692 = vmatpush3.bf16.msra.mxu0 %v5904_v62  ;;  %4720 = vmatpush3.bf16.msra.mxu1 %v630_v28 }
 0x293   :  { %4693 = vmatprep.subr.bf16.mxu0 %v5886_v51  ;;  %v629_v43 = vpack.c.bf16 %v5105_v49, %v5104_v20  ;;  %v627_v62 = vpack.c.bf16 %v5125_v61, %v5124_v47 }
 0x294   :  { %v5113_v7 = vpop.permute.xlu0 %5112  ;;  %v6393_v20 = vpop.permute.xlu1 %5137 }
 0x295   :  { %v5115_v22 = vunpack.i.h.bf16 %v5113_v7  ;;  %v5114_v50 = vunpack.i.l.bf16 %v5113_v7  ;;  %4721 = vmatprep.subr.bf16.mxu1 %v629_v43  ;;  %8097 = vst [vmem:[#allocation16_spill] sm:$0xff] %v6393_v20 }
 0x296   :  { %4694 = vmatpush3.bf16.msra.mxu0 %v5886_v51  ;;  %4722 = vmatpush3.bf16.msra.mxu1 %v629_v43 }
 0x297   :  { %4703 = vmatprep.subr.bf16.mxu0 %v6344_v14  ;;  %v628_v59 = vpack.c.bf16 %v5115_v22, %v5114_v50 }
 0x298   :  { %v6349_v1 = vpop.permute.xlu0 %5117 }
 0x299   :  { %4723 = vmatprep.subr.bf16.mxu1 %v628_v59  ;;  %8091 = vst [vmem:[#allocation10_spill] sm:$0xff] %v6349_v1 }
 0x29a   :  { %4724 = vmatpush3.bf16.msra.mxu1 %v628_v59 }
 0x29b   :  { %4725 = vmatprep.subr.bf16.mxu1 %v627_v62 }
 0x29c   :  { %v6355_v45 = vpop.permute.xlu0 %5127 }
 0x29d   :  { %8092 = vst [vmem:[#allocation11_spill] sm:$0xff] %v6355_v45 }
 0x29e   :  { %4726 = vmatpush3.bf16.msra.mxu1 %v627_v62 }
 0x29f   :  { %4751 = vmatprep.subr.bf16.mxu1 %v6005_v15 }
 0x2a0   :  { %v6361_v44 = vpop.permute.xlu0 %5132 }
 0x2a1   :  { %8093 = vst [vmem:[#allocation12_spill] sm:$0xff] %v6361_v44 }
 0x2a4   :  { %v6363_v9 = vpop.permute.xlu0 %5142 }
 0x2a5   :  { %8094 = vst [vmem:[#allocation13_spill] sm:$0xff] %v6363_v9 }
 0x2a8   :  { %v6373_v41 = vpop.permute.xlu0 %5147 }
 0x2a9   :  { %8095 = vst [vmem:[#allocation14_spill] sm:$0xff] %v6373_v41 }
 0x2ac   :  { %v6391_v49 = vpop.permute.xlu0 %5157 }
 0x2ad   :  { %8096 = vst [vmem:[#allocation15_spill] sm:$0xff] %v6391_v49 }
 0x2be   :  { %v4585_v27 = vpop.f32.mrf.mxu1 }
 0x2bf   :  { %v6351_v31 = vmul.f32 0.25, %v4585_v27 }
 0x2c0   :  { %v823_v38 = vpop.f32.mrf.mxu1 }
 0x2c1   :  { %v1554_v51 = vsel %vm129_vm0, %v6351_v31, -inf  ;;  %v6367_v21 = vmul.f32 0.25, %v823_v38  ;;  %v6411_v38 = vpop.permute.xlu0 %5162 }
 0x2c2   :  { %1555 = vmax.xlane.f32.xlu1 %v1554_v51  ;;  %v4586_v40 = vpop.f32.mrf.mxu1  ;;  %8098 = vst [vmem:[#allocation17_spill] sm:$0xff] %v6411_v38 }
 0x2c3   :  { %v6357_v0 = vmul.f32 0.25, %v4586_v40  ;;  %v1548_v46 = vsel %vm129_vm0, %v6367_v21, -inf  ;;  %v6413_v40 = vpop.permute.xlu1 %5152 }
 0x2c4   :  { %v826_v4 = vpop.f32.mrf.mxu1  ;;  %8099 = vst [vmem:[#allocation18_spill] sm:$0xff] %v6413_v40 }
 0x2c5   :  { %v1557_v29 = vsel %vm129_vm0, %v6357_v0, -inf  ;;  %v6375_v17 = vmul.f32 0.25, %v826_v4 }
 0x2c6   :  { %1558 = vmax.xlane.f32.xlu0 %v1557_v29  ;;  %v4589_v2 = vpop.f32.mrf.mxu1 }
 0x2c7   :  { %v6383_v34 = vmul.f32 0.25, %v4589_v2  ;;  %v1551_v52 = vsel %vm129_vm0, %v6375_v17, -inf }
 0x2c8   :  { %v839_v32 = vpop.f32.mrf.mxu1 }
 0x2c9   :  { %v1566_v61 = vsel %vm129_vm0, %v6383_v34, -inf  ;;  %v6403_v50 = vmul.f32 0.25, %v839_v32 }
 0x2ca   :  { %v4590_v58 = vpop.f32.mrf.mxu1 }
 0x2cb   :  { %v6395_v54 = vmul.f32 0.25, %v4590_v58 }
 0x2cc   :  { %v842_v22 = vpop.f32.mrf.mxu1 }
 0x2cd   :  { %v4601_v8 = vpop.f32.mrf.mxu0  ;;  %v1569_v27 = vsel %vm129_vm0, %v6395_v54, -inf  ;;  %v6415_v29 = vmul.f32 0.25, %v842_v22 }
 0x2ce   :  { %v6365_v11 = vmul.f32 0.25, %v4601_v8  ;;  %v1560_v8 = vsel %vm129_vm0, %v6403_v50, -inf }
 0x2cf   :  { %v924_v12 = vpop.f32.mrf.mxu0 }
 0x2d0   :  { %v1578_v57 = vsel %vm129_vm0, %v6365_v11, -inf  ;;  %v6377_v23 = vmul.f32 0.25, %v924_v12 }
 0x2d1   :  { %v4602_v42 = vpop.f32.mrf.mxu0  ;;  %1579 = vmax.xlane.f32.xlu1 %v1578_v57 }
 0x2d2   :  { %v6371_v39 = vmul.f32 0.25, %v4602_v42  ;;  %v1572_v28 = vsel %vm129_vm0, %v6377_v23, -inf  ;;  %v6423_v42 = vpop.permute.xlu0 %5172 }
 0x2d3   :  { %v927_v19 = vpop.f32.mrf.mxu0  ;;  %8100 = vst [vmem:[#allocation19_spill] sm:$0xff] %v6423_v42 }
 0x2d4   :  { %v1581_v48 = vsel %vm129_vm0, %v6371_v39, -inf  ;;  %v6385_v10 = vmul.f32 0.25, %v927_v19  ;;  %v6425_v19 = vpop.permute.xlu1 %5167 }
 0x2d5   :  { %v4605_v36 = vpop.f32.mrf.mxu0  ;;  %1549 = vmax.xlane.f32.xlu1 %v1548_v46  ;;  %1582 = vmax.xlane.f32.xlu0 %v1581_v48  ;;  %8101 = vst [vmem:[#allocation20_spill] sm:$0xff] %v6425_v19 }
 0x2d6   :  { %v6397_v43 = vmul.f32 0.25, %v4605_v36  ;;  %v1575_v7 = vsel %vm129_vm0, %v6385_v10, -inf  ;;  %v1563_v36 = vsel %vm129_vm0, %v6415_v29, -inf }
 0x2d7   :  { %v940_v16 = vpop.f32.mrf.mxu0 }
 0x2d8   :  { %v1590_v62 = vsel %vm129_vm0, %v6397_v43, -inf  ;;  %v6417_v4 = vmul.f32 0.25, %v940_v16 }
 0x2d9   :  { %1573 = vmax.xlane.f32.xlu1 %v1572_v28  ;;  %1552 = vmax.xlane.f32.xlu0 %v1551_v52  ;;  %v4606_v47 = vpop.f32.mrf.mxu0 }
 0x2da   :  { %v6405_v59 = vmul.f32 0.25, %v4606_v47  ;;  %v1584_v32 = vsel %vm129_vm0, %v6417_v4, -inf }
 0x2db   :  { %v943_v57 = vpop.f32.mrf.mxu0 }
 0x2dc   :  { %v1593_v12 = vsel %vm129_vm0, %v6405_v59, -inf  ;;  %v6427_v46 = vmul.f32 0.25, %v943_v57 }
 0x2dd   :  { %1576 = vmax.xlane.f32.xlu0 %v1575_v7  ;;  %1567 = vmax.xlane.f32.xlu1 %v1566_v61  ;;  %v6441_v61 = vpop.permute.xlu1 %5177 }
 0x2de   :  { %v1587_v16 = vsel %vm129_vm0, %v6427_v46, -inf  ;;  %8102 = vst [vmem:[#allocation21_spill] sm:$0xff] %v6441_v61 }
 0x2df   :  { %v4617_v51 = vpop.f32.mrf.mxu1 }
 0x2e0   :  { %v6429_v48 = vmul.f32 0.25, %v4617_v51 }
 0x2e1   :  { %1591 = vmax.xlane.f32.xlu1 %v1590_v62  ;;  %1570 = vmax.xlane.f32.xlu0 %v1569_v27  ;;  %v1025_v2 = vpop.f32.mrf.mxu1  ;;  %v1529_v57 = vpop.xlane.xlu1 %1528 }
 0x2e2   :  { %v1602_v7 = vsel %vm129_vm0, %v6429_v48, -inf }
 0x2e3   :  { %v4618_v28 = vpop.f32.mrf.mxu1 }
 0x2e4   :  { %v6435_v58 = vmul.f32 0.25, %v4618_v28 }
 0x2e5   :  { %1561 = vmax.xlane.f32.xlu1 %v1560_v8  ;;  %1594 = vmax.xlane.f32.xlu0 %v1593_v12  ;;  %v1028_v47 = vpop.f32.mrf.mxu1  ;;  %v6447_v12 = vmul.f32 0.25, %v1025_v2 }
 0x2e6   :  { %v1605_v27 = vsel %vm129_vm0, %v6435_v58, -inf }
 0x2e7   :  { %v1596_v2 = vsel %vm129_vm0, %v6447_v12, -inf }
 0x2e9   :  { %1585 = vmax.xlane.f32.xlu1 %v1584_v32  ;;  %1564 = vmax.xlane.f32.xlu0 %v1563_v36  ;;  %v4621_v32 = vpop.f32.mrf.mxu1 }
 0x2ea   :  { %v1532_v52 = vpop.xlane.xlu0 %1531 }
 0x2eb   :  { %v1041_v61 = vpop.f32.mrf.mxu1  ;;  %v1718_v19 = vsub.f32 %v6277_v26, %v1532_v52 }
 0x2ed   :  { %1588 = vmax.xlane.f32.xlu0 %v1587_v16  ;;  %1603 = vmax.xlane.f32.xlu1 %v1602_v7  ;;  %v6453_v7 = vmul.f32 0.25, %v1028_v47  ;;  %v1784_v52 = vmul.f32 1.442695, %v1718_v19 }
 0x2ee   :  { %v1526_v51 = vpop.xlane.xlu0 %1525 }
 0x2ef   :  { %v4633_v22 = vpop.f32.mrf.mxu0  ;;  %v1716_v47 = vsub.f32 %v6281_v13, %v1526_v51  ;;  %v1599_v26 = vsel %vm129_vm0, %v6453_v7, -inf  ;;  %5339 = vpow2.f32 %v1784_v52 }
 0x2f0   :  { %v6443_v62 = vmul.f32 0.25, %v4633_v22 }
 0x2f1   :  { %v1126_v8 = vpop.f32.mrf.mxu0  ;;  %1606 = vmax.xlane.f32.xlu0 %v1605_v27  ;;  %v1780_v51 = vmul.f32 1.442695, %v1716_v47 }
 0x2f2   :  { %v1626_v36 = vsel %vm129_vm0, %v6443_v62, -inf  ;;  %v6456_v49 = vmul.f32 0.25, %v1126_v8  ;;  %v1535_v41 = vpop.xlane.xlu0 %1534  ;;  %v4622_v8 = vpop.f32.mrf.mxu1 }
 0x2f3   :  { %v4634_v28 = vpop.f32.mrf.mxu0  ;;  %1627 = vmax.xlane.f32.xlu1 %v1626_v36  ;;  %v1544_v36 = vpop.xlane.xlu1 %1543  ;;  %v1719_v20 = vsub.f32 %v6285_v37, %v1535_v41  ;;  %v6474_v13 = vmul.f32 0.25, %v4622_v8  ;;  %5341 = vpow2.f32 %v1780_v51 }
 0x2f4   :  { %v6451_v16 = vmul.f32 0.25, %v4634_v28  ;;  %v6462_v28 = vmul.f32 0.25, %v4621_v32  ;;  %v1620_v38 = vsel %vm129_vm0, %v6456_v49, -inf  ;;  %v1717_v32 = vsub.f32 %v6267_v3, %v1529_v57  ;;  %v1044_v52 = vpop.f32.mrf.mxu1 }
 0x2f5   :  { %v1129_v22 = vpop.f32.mrf.mxu0  ;;  %v1786_v41 = vmul.f32 1.442695, %v1719_v20  ;;  %v6482_v57 = vmul.f32 0.25, %v1041_v61  ;;  %v1617_v47 = vsel %vm129_vm0, %v6474_v13, -inf }
 0x2f6   :  { %v1629_v27 = vsel %vm129_vm0, %v6451_v16, -inf  ;;  %v6468_v42 = vmul.f32 0.25, %v1129_v22  ;;  %v1614_v19 = vsel %vm129_vm0, %v6462_v28, -inf  ;;  %v1782_v3 = vmul.f32 1.442695, %v1717_v32 }
 0x2f7   :  { %v4637_v9 = vpop.f32.mrf.mxu0  ;;  %1597 = vmax.xlane.f32.xlu1 %v1596_v2  ;;  %1630 = vmax.xlane.f32.xlu0 %v1629_v27  ;;  %v1722_v2 = vsub.f32 %v6269_v30, %v1544_v36  ;;  %v1547_v27 = vpop.xlane.xlu0 %1546  ;;  %5343 = vpow2.f32 %v1786_v41  ;;  %v1608_v32 = vsel %vm129_vm0, %v6482_v57, -inf }
 0x2f8   :  { %v1538_v37 = vpop.xlane.xlu1 %1537  ;;  %v6478_v22 = vmul.f32 0.25, %v4637_v9  ;;  %v1723_v9 = vsub.f32 %v6291_v25, %v1547_v27  ;;  %5345 = vpow2.f32 %v1782_v3 }
 0x2f9   :  { %v1142_v35 = vpop.f32.mrf.mxu0  ;;  %v1792_v30 = vmul.f32 1.442695, %v1722_v2  ;;  %v1720_v36 = vsub.f32 %v6273_v24, %v1538_v37  ;;  %v6492_v24 = vmul.f32 0.25, %v1044_v52 }
 0x2fa   :  { %v1638_v8 = vsel %vm129_vm0, %v6478_v22, -inf  ;;  %v1794_v2 = vmul.f32 1.442695, %v1723_v9  ;;  %v6496_v51 = vmul.f32 0.25, %v1142_v35 }
 0x2fb   :  { %1621 = vmax.xlane.f32.xlu1 %v1620_v38  ;;  %1600 = vmax.xlane.f32.xlu0 %v1599_v26  ;;  %v1623_v38 = vsel %vm129_vm0, %v6468_v42, -inf  ;;  %v4638_v26 = vpop.f32.mrf.mxu0  ;;  %5347 = vpow2.f32 %v1792_v30  ;;  %v1788_v61 = vmul.f32 1.442695, %v1720_v36  ;;  %v1611_v41 = vsel %vm129_vm0, %v6492_v24, -inf }
 0x2fc   :  { %v6488_v20 = vmul.f32 0.25, %v4638_v26  ;;  %v1632_v35 = vsel %vm129_vm0, %v6496_v51, -inf  ;;  %v6507_v3 = vpop.eup %5339 }
 0x2fd   :  { %v1145_v37 = vpop.f32.mrf.mxu0  ;;  %5349 = vpow2.f32 %v1788_v61  ;;  %v1914_v30 = vsel %vm129_vm0, %v6507_v3, 0.0 }
 0x2fe   :  { %v1641_v27 = vsel %vm129_vm0, %v6488_v20, -inf  ;;  %5351 = vpow2.f32 %v1794_v2  ;;  %v6503_v26 = vmul.f32 0.25, %v1145_v37 }
 0x2ff   :  { %1624 = vmax.xlane.f32.xlu0 %v1623_v38  ;;  %1615 = vmax.xlane.f32.xlu1 %v1614_v19  ;;  %v1541_v19 = vpop.xlane.xlu0 %1540 }
 0x300   :  { %v1721_v25 = vsub.f32 %v6297_v56, %v1541_v19  ;;  %v6509_v56 = vpop.eup %5341  ;;  %v1635_v36 = vsel %vm129_vm0, %v6503_v26, -inf  ;;  %v4649_v61 = vpop.f32.mrf.mxu1 }
 0x302   :  { %v1790_v38 = vmul.f32 1.442695, %v1721_v25  ;;  %v1227_v37 = vpop.f32.mrf.mxu1 }
 0x303   :  { %1639 = vmax.xlane.f32.xlu1 %v1638_v8  ;;  %1618 = vmax.xlane.f32.xlu0 %v1617_v47  ;;  %v1908_v8 = vsel %vm129_vm0, %v6509_v56, 0.0 }
 0x304   :  { %5353 = vpow2.f32 %v1790_v38  ;;  %v6515_v47 = vpop.eup %5343 }
 0x305   :  { %v6517_v52 = vpop.eup %5345  ;;  %v1917_v19 = vsel %vm129_vm0, %v6515_v47, 0.0 }
 0x306   :  { %v1911_v25 = vsel %vm129_vm0, %v6517_v52, 0.0 }
 0x307   :  { %1609 = vmax.xlane.f32.xlu1 %v1608_v32  ;;  %1642 = vmax.xlane.f32.xlu0 %v1641_v27 }
 0x308   :  { %v6519_v9 = vpop.eup %5347 }
 0x309   :  { %8103 = vst [vmem:[#allocation22_spill] sm:$0xff] %v6519_v9  ;;  %v1926_v2 = vsel %vm129_vm0, %v6519_v9, 0.0 }
 0x30a   :  { %v6525_v32 = vpop.eup %5349 }
 0x30b   :  { %1633 = vmax.xlane.f32.xlu1 %v1632_v35  ;;  %1612 = vmax.xlane.f32.xlu0 %v1611_v41  ;;  %8104 = vst [vmem:[#allocation23_spill] sm:$0xff] %v6525_v32  ;;  %v6531_v27 = vpop.eup %5351  ;;  %v6533_v41 = vmul.f32 0.25, %v4649_v61  ;;  %v1920_v38 = vsel %vm129_vm0, %v6525_v32, 0.0 }
 0x30c   :  { %8105 = vst [vmem:[#allocation24_spill] sm:$0xff] %v6531_v27  ;;  %v1929_v35 = vsel %vm129_vm0, %v6531_v27, 0.0 }
 0x30d   :  { %v1650_v61 = vsel %vm129_vm0, %v6533_v41, -inf }
 0x30f   :  { %1915 = vadd.xlane.f32.xlu1 %v1914_v30  ;;  %1636 = vmax.xlane.f32.xlu0 %v1635_v36  ;;  %v4650_v36 = vpop.f32.mrf.mxu1 }
 0x311   :  { %v6539_v30 = vpop.eup %5353 }
 0x312   :  { %8106 = vst [vmem:[#allocation25_spill] sm:$0xff] %v6539_v30 }
 0x313   :  { %1909 = vadd.xlane.f32.xlu1 %v1908_v8  ;;  %1918 = vadd.xlane.f32.xlu0 %v1917_v19  ;;  %v6541_v8 = vmul.f32 0.25, %v4650_v36  ;;  %v1923_v19 = vsel %vm129_vm0, %v6539_v30, 0.0  ;;  %v6551_v36 = vmul.f32 0.25, %v1227_v37 }
 0x315   :  { %8108 = vst [vmem:[#allocation27_spill] sm:$0xff] %v6551_v36 }
 0x317   :  { %1927 = vadd.xlane.f32.xlu1 %v1926_v2  ;;  %1912 = vadd.xlane.f32.xlu0 %v1911_v25  ;;  %v1653_v2 = vsel %vm129_vm0, %v6541_v8, -inf  ;;  %v1230_v25 = vpop.f32.mrf.mxu1 }
 0x318   :  { %v6557_v1 = vmul.f32 0.25, %v1230_v25 }
 0x319   :  { %v4653_v40 = vpop.f32.mrf.mxu1 }
 0x31a   :  { %8110 = vst [vmem:[#allocation29_spill] sm:$0xff] %v6557_v1  ;;  %v1647_v25 = vsel %vm129_vm0, %v6557_v1, -inf }
 0x31b   :  { %1921 = vadd.xlane.f32.xlu1 %v1920_v38  ;;  %1930 = vadd.xlane.f32.xlu0 %v1929_v35  ;;  %v1243_v38 = vpop.f32.mrf.mxu1 }
 0x31f   :  { %1924 = vadd.xlane.f32.xlu0 %v1923_v19  ;;  %1651 = vmax.xlane.f32.xlu1 %v1650_v61  ;;  %v4654_v61 = vpop.f32.mrf.mxu1 }
 0x321   :  { %v1246_v33 = vpop.f32.mrf.mxu1 }
 0x323   :  { %1654 = vmax.xlane.f32.xlu0 %v1653_v2 }
 0x349   :  { %v4665_v55 = vpop.f32.mrf.mxu0 }
 0x34a   :  { %v6549_v44 = vmul.f32 0.25, %v4665_v55  ;;  %v1644_v55 = vsel %vm129_vm0, %v6551_v36, -inf }
 0x34b   :  { %v1328_v35 = vpop.f32.mrf.mxu0  ;;  %v1556_v36 = vpop.xlane.xlu1 %1555 }
 0x34c   :  { %8107 = vst [vmem:[#allocation26_spill] sm:$0xff] %v6549_v44  ;;  %v1674_v6 = vsel %vm129_vm0, %v6549_v44, -inf  ;;  %v6559_v2 = vmul.f32 0.25, %v1328_v35  ;;  %v6565_v44 = vmul.f32 0.25, %v4653_v40  ;;  %v4681_v35 = vpop.f32.mrf.mxu1 }
 0x34d   :  { %v4666_v15 = vpop.f32.mrf.mxu0  ;;  %1675 = vmax.xlane.f32.xlu1 %v1674_v6  ;;  %v6604_v30 = vmul.f32 0.25, %v4681_v35 }
 0x34e   :  { %v6555_v19 = vmul.f32 0.25, %v4666_v15  ;;  %8111 = vst [vmem:[#allocation30_spill] sm:$0xff] %v6559_v2  ;;  %8112 = vst [vmem:[#allocation31_spill] sm:$0xff] %v6565_v44  ;;  %v1668_v15 = vsel %vm129_vm0, %v6559_v2, -inf }
 0x34f   :  { %v1331_v45 = vpop.f32.mrf.mxu0  ;;  %v6581_v1 = vpop.xlane.xlu0 %1558 }
 0x350   :  { %8109 = vst [vmem:[#allocation28_spill] sm:$0xff] %v6555_v19  ;;  %v1677_v37 = vsel %vm129_vm0, %v6555_v19, -inf  ;;  %v6567_v6 = vmul.f32 0.25, %v1331_v45  ;;  %v6573_v19 = vmul.f32 0.25, %v4654_v61  ;;  %v1662_v45 = vsel %vm129_vm0, %v6565_v44, -inf }
 0x351   :  { %v4669_v60 = vpop.f32.mrf.mxu0  ;;  %1645 = vmax.xlane.f32.xlu1 %v1644_v55  ;;  %1678 = vmax.xlane.f32.xlu0 %v1677_v37  ;;  %v1429_v37 = vpop.f32.mrf.mxu1 }
 0x352   :  { %8113 = vst [vmem:[#allocation32_spill] sm:$0xff] %v6567_v6  ;;  %8114 = vst [vmem:[#allocation33_spill] sm:$0xff] %v6573_v19  ;;  %v6575_v55 = vmul.f32 0.25, %v4669_v60  ;;  %v1671_v40 = vsel %vm129_vm0, %v6567_v6, -inf  ;;  %v1665_v61 = vsel %vm129_vm0, %v6573_v19, -inf }
 0x353   :  { %v1344_v63 = vpop.f32.mrf.mxu0  ;;  %v4682_v6 = vpop.f32.mrf.mxu1 }
 0x354   :  { %8115 = vst [vmem:[#allocation34_spill] sm:$0xff] %v6575_v55  ;;  %v1686_v60 = vsel %vm129_vm0, %v6575_v55, -inf }
 0x355   :  { %1669 = vmax.xlane.f32.xlu1 %v1668_v15  ;;  %1648 = vmax.xlane.f32.xlu0 %v1647_v25  ;;  %v4670_v2 = vpop.f32.mrf.mxu0  ;;  %v6583_v15 = vmul.f32 0.25, %v1243_v38  ;;  %v6596_v38 = vmul.f32 0.25, %v1344_v63  ;;  %v1432_v27 = vpop.f32.mrf.mxu1 }
 0x356   :  { %v6585_v25 = vmul.f32 0.25, %v4670_v2 }
 0x357   :  { %8116 = vst [vmem:[#allocation35_spill] sm:$0xff] %v6583_v15  ;;  %v1656_v2 = vsel %vm129_vm0, %v6583_v15, -inf  ;;  %v1347_v19 = vpop.f32.mrf.mxu0 }
 0x358   :  { %8117 = vst [vmem:[#allocation36_spill] sm:$0xff] %v6585_v25  ;;  %v1689_v55 = vsel %vm129_vm0, %v6585_v25, -inf  ;;  %v1680_v25 = vsel %vm129_vm0, %v6596_v38, -inf }
 0x359   :  { %1672 = vmax.xlane.f32.xlu0 %v1671_v40  ;;  %1663 = vmax.xlane.f32.xlu1 %v1662_v45  ;;  %v6593_v40 = vmul.f32 0.25, %v1246_v33  ;;  %v1726_v45 = vsub.f32 %v6351_v31, %v1556_v36  ;;  %v6609_v36 = vmul.f32 0.25, %v1347_v19  ;;  %v1698_v19 = vsel %vm129_vm0, %v6604_v30, -inf }
 0x35a   :  { %v1580_v9 = vpop.xlane.xlu1 %1579 }
 0x35b   :  { %v1734_v33 = vsub.f32 %v6365_v11, %v1580_v9  ;;  %v1659_v63 = vsel %vm129_vm0, %v6593_v40, -inf  ;;  %v1800_v31 = vmul.f32 1.442695, %v1726_v45  ;;  %v6618_v11 = vmul.f32 0.25, %v4682_v6 }
 0x35d   :  { %1687 = vmax.xlane.f32.xlu1 %v1686_v60  ;;  %1666 = vmax.xlane.f32.xlu0 %v1665_v61  ;;  %v1816_v9 = vmul.f32 1.442695, %v1734_v33  ;;  %5355 = vpow2.f32 %v1800_v31 }
 0x35e   :  { %v1550_v44 = vpop.xlane.xlu1 %1549  ;;  %v6591_v53 = vpop.xlane.xlu0 %1582 }
 0x35f   :  { %v1724_v15 = vsub.f32 %v6367_v21, %v1550_v44  ;;  %5357 = vpow2.f32 %v1816_v9  ;;  %v1735_v9 = vsub.f32 %v6371_v39, %v6591_v53 }
 0x361   :  { %1657 = vmax.xlane.f32.xlu1 %v1656_v2  ;;  %1690 = vmax.xlane.f32.xlu0 %v1689_v55  ;;  %v4685_v2 = vpop.f32.mrf.mxu1  ;;  %v6614_v55 = vmul.f32 0.25, %v1429_v37  ;;  %v1796_v44 = vmul.f32 1.442695, %v1724_v15  ;;  %v1818_v53 = vmul.f32 1.442695, %v1735_v9 }
 0x362   :  { %v1574_v60 = vpop.xlane.xlu1 %1573  ;;  %v6602_v61 = vpop.xlane.xlu0 %1552 }
 0x363   :  { %v1732_v45 = vsub.f32 %v6377_v23, %v1574_v60  ;;  %v1445_v37 = vpop.f32.mrf.mxu1  ;;  %v1727_v23 = vsub.f32 %v6357_v0, %v6581_v1  ;;  %5359 = vpow2.f32 %v1796_v44  ;;  %v1725_v39 = vsub.f32 %v6375_v17, %v6602_v61 }
 0x365   :  { %1681 = vmax.xlane.f32.xlu1 %v1680_v25  ;;  %1660 = vmax.xlane.f32.xlu0 %v1659_v63  ;;  %v1683_v25 = vsel %vm129_vm0, %v6609_v36, -inf  ;;  %v6626_v63 = vmul.f32 0.25, %v1432_v27  ;;  %v1812_v60 = vmul.f32 1.442695, %v1732_v45  ;;  %v1701_v27 = vsel %vm129_vm0, %v6618_v11, -inf  ;;  %v4686_v31 = vpop.f32.mrf.mxu1 }
 0x366   :  { %v6616_v35 = vpop.xlane.xlu0 %1576  ;;  %v1568_v32 = vpop.xlane.xlu1 %1567  ;;  %v1802_v0 = vmul.f32 1.442695, %v1727_v23  ;;  %v6647_v45 = vmul.f32 0.25, %v1445_v37  ;;  %v6649_v44 = vmul.f32 0.25, %v4686_v31  ;;  %v1798_v17 = vmul.f32 1.442695, %v1725_v39 }
 0x367   :  { %v1730_v21 = vsub.f32 %v6383_v34, %v1568_v32  ;;  %8118 = vst [vmem:[#allocation37_spill] sm:$0xff] %v6626_v63  ;;  %v1692_v34 = vsel %vm129_vm0, %v6614_v55, -inf  ;;  %v6636_v32 = vmul.f32 0.25, %v4685_v2  ;;  %v1695_v1 = vsel %vm129_vm0, %v6626_v63, -inf }
 0x368   :  { %5361 = vpow2.f32 %v1812_v60  ;;  %v1704_v60 = vsel %vm129_vm0, %v6647_v45, -inf  ;;  %v1733_v61 = vsub.f32 %v6385_v10, %v6616_v35 }
 0x369   :  { %1684 = vmax.xlane.f32.xlu0 %v1683_v25  ;;  %1699 = vmax.xlane.f32.xlu1 %v1698_v19  ;;  %v1808_v15 = vmul.f32 1.442695, %v1730_v21  ;;  %v1710_v21 = vsel %vm129_vm0, %v6636_v32, -inf }
 0x36a   :  { %v6628_v6 = vpop.xlane.xlu1 %1591  ;;  %v6630_v33 = vpop.xlane.xlu0 %1570 }
 0x36b   :  { %5363 = vpow2.f32 %v1808_v15  ;;  %v1713_v15 = vsel %vm129_vm0, %v6649_v44, -inf  ;;  %v6664_v31 = vpop.eup %5355 }
 0x36c   :  { %5365 = vpow2.f32 %v1802_v0 }
 0x36d   :  { %1693 = vmax.xlane.f32.xlu1 %v1692_v34  ;;  %1702 = vmax.xlane.f32.xlu0 %v1701_v27  ;;  %v1448_v34 = vpop.f32.mrf.mxu1 }
 0x36e   :  { %v1562_v19 = vpop.xlane.xlu1 %1561  ;;  %v6640_v25 = vpop.xlane.xlu0 %1594  ;;  %v6658_v37 = vmul.f32 0.25, %v1448_v34 }
 0x36f   :  { %v1728_v2 = vsub.f32 %v6403_v50, %v1562_v19 }
 0x370   :  { %v1707_v9 = vsel %vm129_vm0, %v6658_v37, -inf }
 0x371   :  { %v1804_v27 = vmul.f32 1.442695, %v1728_v2  ;;  %1696 = vmax.xlane.f32.xlu0 %v1695_v1  ;;  %1711 = vmax.xlane.f32.xlu1 %v1710_v21 }
 0x372   :  { %v1586_v63 = vpop.xlane.xlu1 %1585  ;;  %v6653_v23 = vpop.xlane.xlu0 %1564 }
 0x373   :  { %v1736_v50 = vsub.f32 %v6417_v4, %v1586_v63  ;;  %5367 = vpow2.f32 %v1804_v27  ;;  %v6670_v4 = vpop.eup %5357  ;;  %v1938_v63 = vsel %vm129_vm0, %v6664_v31, 0.0  ;;  %v1814_v27 = vmul.f32 1.442695, %v1733_v61 }
 0x374   :  { %5369 = vpow2.f32 %v1818_v53  ;;  %v6678_v2 = vpop.eup %5359  ;;  %v1738_v53 = vsub.f32 %v6397_v43, %v6628_v6  ;;  %v1962_v39 = vsel %vm129_vm0, %v6670_v4, 0.0 }
 0x375   :  { %v1820_v19 = vmul.f32 1.442695, %v1736_v50  ;;  %1705 = vmax.xlane.f32.xlu1 %v1704_v60  ;;  %1714 = vmax.xlane.f32.xlu0 %v1713_v15  ;;  %v6680_v34 = vpop.eup %5361  ;;  %v1932_v35 = vsel %vm129_vm0, %v6678_v2, 0.0  ;;  %v1731_v15 = vsub.f32 %v6395_v54, %v6630_v33 }
 0x376   :  { %v6666_v1 = vpop.xlane.xlu0 %1588  ;;  %v6668_v0 = vpop.xlane.xlu1 %1603  ;;  %v1824_v6 = vmul.f32 1.442695, %v1738_v53  ;;  %v1739_v53 = vsub.f32 %v6405_v59, %v6640_v25  ;;  %v1729_v25 = vsub.f32 %v6415_v29, %v6653_v23 }
 0x377   :  { %5371 = vpow2.f32 %v1820_v19  ;;  %v1737_v29 = vsub.f32 %v6427_v46, %v6666_v1 }
 0x378   :  { %5373 = vpow2.f32 %v1798_v17  ;;  %v6688_v50 = vpop.eup %5363  ;;  %v1826_v59 = vmul.f32 1.442695, %v1739_v53 }
 0x379   :  { %1939 = vadd.xlane.f32.xlu1 %v1938_v63  ;;  %1708 = vmax.xlane.f32.xlu0 %v1707_v9  ;;  %v6694_v43 = vpop.eup %5365  ;;  %5375 = vpow2.f32 %v1814_v27  ;;  %v1950_v9 = vsel %vm129_vm0, %v6688_v50, 0.0  ;;  %v1822_v1 = vmul.f32 1.442695, %v1737_v29 }
 0x37a   :  { %v1607_v21 = vpop.xlane.xlu0 %1606 }
 0x37b   :  { %v1743_v17 = vsub.f32 %v6435_v58, %v1607_v21  ;;  %v1810_v58 = vmul.f32 1.442695, %v1731_v15 }
 0x37c   :  { %v1628_v10 = vpop.xlane.xlu1 %1627 }
 0x37d   :  { %v1750_v60 = vsub.f32 %v6443_v62, %v1628_v10  ;;  %1933 = vadd.xlane.f32.xlu1 %v1932_v35  ;;  %1963 = vadd.xlane.f32.xlu0 %v1962_v39  ;;  %v1956_v62 = vsel %vm129_vm0, %v6680_v34, 0.0  ;;  %v1834_v33 = vmul.f32 1.442695, %v1743_v17 }
 0x37f   :  { %v1848_v19 = vmul.f32 1.442695, %v1750_v60 }
 0x380   :  { %v1598_v61 = vpop.xlane.xlu1 %1597  ;;  %v6696_v63 = vpop.xlane.xlu0 %1630 }
 0x381   :  { %v6702_v10 = vpop.eup %5367  ;;  %5377 = vpow2.f32 %v1848_v19  ;;  %v1740_v54 = vsub.f32 %v6447_v12, %v1598_v61  ;;  %1951 = vadd.xlane.f32.xlu1 %v1950_v9  ;;  %1957 = vadd.xlane.f32.xlu0 %v1956_v62  ;;  %v1941_v12 = vsel %vm129_vm0, %v6694_v43, 0.0 }
 0x382   :  { %v6705_v27 = vpop.eup %5369  ;;  %5379 = vpow2.f32 %v1824_v6  ;;  %v1944_v60 = vsel %vm129_vm0, %v6702_v10, 0.0 }
 0x383   :  { %v1828_v21 = vmul.f32 1.442695, %v1740_v54  ;;  %v1965_v9 = vsel %vm129_vm0, %v6705_v27, 0.0 }
 0x384   :  { %v6709_v35 = vpop.xlane.xlu1 %1621  ;;  %v6711_v39 = vpop.xlane.xlu0 %1600 }
 0x385   :  { %v6717_v19 = vpop.eup %5371  ;;  %5381 = vpow2.f32 %v1828_v21  ;;  %1945 = vadd.xlane.f32.xlu1 %v1944_v60  ;;  %1942 = vadd.xlane.f32.xlu0 %v1941_v12  ;;  %v1806_v21 = vmul.f32 1.442695, %v1729_v25  ;;  %v1742_v25 = vsub.f32 %v6429_v48, %v6668_v0 }
 0x386   :  { %5383 = vpow2.f32 %v1810_v58  ;;  %v6719_v15 = vpop.eup %5373  ;;  %v1968_v61 = vsel %vm129_vm0, %v6717_v19, 0.0 }
 0x387   :  { %5385 = vpow2.f32 %v1834_v33  ;;  %v1935_v60 = vsel %vm129_vm0, %v6719_v15, 0.0  ;;  %v6733_v12 = vpop.eup %5375  ;;  %v1832_v0 = vmul.f32 1.442695, %v1742_v25 }
 0x388   :  { %v1625_v17 = vpop.xlane.xlu0 %1624  ;;  %v1616_v6 = vpop.xlane.xlu1 %1615  ;;  %5387 = vpow2.f32 %v1826_v59 }
 0x389   :  { %v1749_v62 = vsub.f32 %v6468_v42, %v1625_v17  ;;  %v1746_v54 = vsub.f32 %v6462_v28, %v1616_v6  ;;  %1969 = vadd.xlane.f32.xlu1 %v1968_v61  ;;  %1966 = vadd.xlane.f32.xlu0 %v1965_v9 }
 0x38b   :  { %v1846_v58 = vmul.f32 1.442695, %v1749_v62  ;;  %v1840_v33 = vmul.f32 1.442695, %v1746_v54 }
 0x38c   :  { %v1640_v23 = vpop.xlane.xlu1 %1639  ;;  %v1619_v53 = vpop.xlane.xlu0 %1618 }
 0x38d   :  { %5389 = vpow2.f32 %v1846_v58  ;;  %v1754_v42 = vsub.f32 %v6478_v22, %v1640_v23  ;;  %1936 = vadd.xlane.f32.xlu0 %v1935_v60  ;;  %v1747_v59 = vsub.f32 %v6474_v13, %v1619_v53  ;;  %v1959_v22 = vsel %vm129_vm0, %v6733_v12, 0.0 }
 0x38e   :  { %v6736_v28 = vpop.eup %5377  ;;  %5391 = vpow2.f32 %v1840_v33  ;;  %v1748_v33 = vsub.f32 %v6456_v49, %v6709_v35  ;;  %v1751_v53 = vsub.f32 %v6451_v16, %v6696_v63 }
 0x38f   :  { %v1856_v17 = vmul.f32 1.442695, %v1754_v42  ;;  %v2010_v46 = vsel %vm129_vm0, %v6736_v28, 0.0  ;;  %5393 = vpow2.f32 %v1806_v21  ;;  %v6747_v9 = vpop.eup %5379  ;;  %v1842_v54 = vmul.f32 1.442695, %v1747_v59 }
 0x390   :  { %v1610_v6 = vpop.xlane.xlu1 %1609  ;;  %v6743_v61 = vpop.xlane.xlu0 %1642  ;;  %2011 = vadd.xlane.f32.xlu1 %v2010_v46  ;;  %v1974_v23 = vsel %vm129_vm0, %v6747_v9, 0.0  ;;  %v1844_v42 = vmul.f32 1.442695, %v1748_v33  ;;  %v1850_v16 = vmul.f32 1.442695, %v1751_v53 }
 0x391   :  { %1960 = vadd.xlane.f32.xlu0 %v1959_v22  ;;  %5395 = vpow2.f32 %v1856_v17 }
 0x392   :  { %v6749_v62 = vpop.eup %5381  ;;  %5397 = vpow2.f32 %v1822_v1 }
 0x393   :  { %v6751_v13 = vpop.eup %5383  ;;  %v1980_v58 = vsel %vm129_vm0, %v6749_v62, 0.0  ;;  %5399 = vpow2.f32 %v1842_v54  ;;  %v1741_v54 = vsub.f32 %v6453_v7, %v6711_v39 }
 0x394   :  { %v6755_v48 = vpop.eup %5385  ;;  %v1634_v21 = vpop.xlane.xlu1 %1633  ;;  %1981 = vadd.xlane.f32.xlu1 %v1980_v58  ;;  %5401 = vpow2.f32 %v1832_v0  ;;  %v1953_v49 = vsel %vm129_vm0, %v6751_v13, 0.0 }
 0x395   :  { %v6759_v29 = vpop.xlane.xlu0 %1612  ;;  %1975 = vadd.xlane.f32.xlu0 %v1974_v23  ;;  %v1989_v60 = vsel %vm129_vm0, %v6755_v48, 0.0  ;;  %v6769_v35 = vpop.eup %5387  ;;  %5403 = vpow2.f32 %v1844_v42  ;;  %v1744_v23 = vsub.f32 %v6482_v57, %v1610_v6  ;;  %v1830_v7 = vmul.f32 1.442695, %v1741_v54 }
 0x397   :  { %v1836_v57 = vmul.f32 1.442695, %v1744_v23 }
 0x398   :  { %v1916_v17 = vpop.xlane.xlu1 %1915  ;;  %1990 = vadd.xlane.f32.xlu1 %v1989_v60 }
 0x399   :  { %v1637_v59 = vpop.xlane.xlu0 %1636  ;;  %1954 = vadd.xlane.f32.xlu0 %v1953_v49 }
 0x39a   :  { %v1753_v46 = vsub.f32 %v6503_v26, %v1637_v59  ;;  %v6772_v1 = vpop.eup %5389  ;;  %v1977_v26 = vsel %vm129_vm0, %v6769_v35, 0.0 }
 0x39b   :  { %v2007_v25 = vsel %vm129_vm0, %v6772_v1, 0.0  ;;  %v6776_v22 = vpop.eup %5391 }
 0x39c   :  { %v1854_v63 = vmul.f32 1.442695, %v1753_v46  ;;  %v1910_v58 = vpop.xlane.xlu1 %1909  ;;  %2008 = vadd.xlane.f32.xlu1 %v2007_v25  ;;  %v6782_v33 = vpop.eup %5393  ;;  %v1998_v53 = vsel %vm129_vm0, %v6776_v22, 0.0 }
 0x39d   :  { %v1919_v0 = vpop.xlane.xlu0 %1918  ;;  %1978 = vadd.xlane.f32.xlu0 %v1977_v26  ;;  %v1947_v59 = vsel %vm129_vm0, %v6782_v33, 0.0 }
 0x39e   :  { %5405 = vpow2.f32 %v1854_v63  ;;  %v6787_v60 = vpop.eup %5395 }
 0x39f   :  { %5407 = vpow2.f32 %v1850_v16  ;;  %v6791_v49 = vpop.eup %5397  ;;  %v2022_v6 = vsel %vm129_vm0, %v6787_v60, 0.0  ;;  %v1752_v16 = vsub.f32 %v6496_v51, %v1634_v21 }
 0x3a0   :  { %5409 = vrcp.f32 %v1919_v0  ;;  %v1928_v39 = vpop.xlane.xlu1 %1927  ;;  %1999 = vadd.xlane.f32.xlu1 %v1998_v53  ;;  %v6795_v46 = vpop.eup %5399  ;;  %v1971_v54 = vsel %vm129_vm0, %v6791_v49, 0.0 }
 0x3a1   :  { %5411 = vrcp.f32 %v1910_v58  ;;  %v1913_v42 = vpop.xlane.xlu0 %1912  ;;  %1948 = vadd.xlane.f32.xlu0 %v1947_v59  ;;  %v6800_v58 = vpop.eup %5401  ;;  %v2001_v0 = vsel %vm129_vm0, %v6795_v46, 0.0  ;;  %v1852_v26 = vmul.f32 1.442695, %v1752_v16 }
 0x3a2   :  { %5413 = vrcp.f32 %v1916_v17  ;;  %v1755_v17 = vsub.f32 %v6488_v20, %v6743_v61  ;;  %v1986_v23 = vsel %vm129_vm0, %v6800_v58, 0.0  ;;  %v6808_v53 = vpop.eup %5403 }
 0x3a3   :  { %5415 = vrcp.f32 %v1913_v42  ;;  %v2004_v16 = vsel %vm129_vm0, %v6808_v53, 0.0 }
 0x3a4   :  { %5417 = vpow2.f32 %v1830_v7  ;;  %v1922_v63 = vpop.xlane.xlu1 %1921  ;;  %2023 = vadd.xlane.f32.xlu1 %v2022_v6  ;;  %v1858_v61 = vmul.f32 1.442695, %v1755_v17  ;;  %v1745_v6 = vsub.f32 %v6492_v24, %v6759_v29 }
 0x3a5   :  { %v1931_v25 = vpop.xlane.xlu0 %1930  ;;  %5419 = vpow2.f32 %v1836_v57  ;;  %1972 = vadd.xlane.f32.xlu0 %v1971_v54 }
 0x3a6   :  { %5421 = vrcp.f32 %v1922_v63 }
 0x3a7   :  { %5423 = vrcp.f32 %v1931_v25 }
 0x3a8   :  { %5425 = vrcp.f32 %v1928_v39  ;;  %v1652_v21 = vpop.xlane.xlu1 %1651  ;;  %2002 = vadd.xlane.f32.xlu1 %v2001_v0 }
 0x3a9   :  { %v1925_v51 = vpop.xlane.xlu0 %1924  ;;  %v1758_v7 = vsub.f32 %v6533_v41, %v1652_v21  ;;  %1987 = vadd.xlane.f32.xlu0 %v1986_v23  ;;  %v5080_v23 = vunpack.i.h.bf16 %v6316_v18 }
 0x3aa   :  { %5427 = vrcp.f32 %v1925_v51 }
 0x3ab   :  { %v6811_v42 = vpop.eup %5405  ;;  %v1864_v59 = vmul.f32 1.442695, %v1758_v7  ;;  %5429 = vpow2.f32 %v1852_v26  ;;  %v1838_v26 = vmul.f32 1.442695, %v1745_v6  ;;  %v5079_v7 = vunpack.i.l.bf16 %v6316_v18 }
 0x3ac   :  { %v6813_v20 = vpop.eup %5407  ;;  %v2019_v39 = vsel %vm129_vm0, %v6811_v42, 0.0 }
 0x3ad   :  { %v5410_v57 = vpop.eup %5409  ;;  %2020 = vadd.xlane.f32.xlu1 %v2019_v39  ;;  %5431 = vpow2.f32 %v1864_v59  ;;  %v1655_v63 = vpop.xlane.xlu0 %1654  ;;  %2005 = vadd.xlane.f32.xlu0 %v2004_v16  ;;  %v2013_v0 = vsel %vm129_vm0, %v6813_v20, 0.0 }
 0x3ae   :  { %v5412_v41 = vpop.eup %5411  ;;  %5433 = vpow2.f32 %v1858_v61  ;;  %v2167_v17 = vmul.f32 %v5410_v57, %v6515_v47  ;;  %v1759_v51 = vsub.f32 %v6541_v8, %v1655_v63  ;;  %v5085_v57 = vunpack.i.h.bf16 %v6318_v5  ;;  %v8119_v63 = vld [vmem:[#allocation23_spill] sm:$0xff] }
 0x3af   :  { %v5414_v25 = vpop.eup %5413  ;;  %v2164_v24 = vmul.f32 %v5412_v41, %v6509_v56  ;;  %v5084_v56 = vunpack.i.l.bf16 %v6318_v5  ;;  %5435 = vpow2.f32 %v1838_v26 }
 0x3b0   :  { %v5416_v54 = vpop.eup %5415  ;;  %v2166_v61 = vmul.f32 %v5414_v25, %v6507_v3  ;;  %v625_v3 = vpack.c.bf16 %v5080_v23, %v5079_v7 }
 0x3b1   :  { %v2165_v29 = vmul.f32 %v5416_v54, %v6517_v52  ;;  %v6827_v21 = vpop.eup %5417  ;;  %2014 = vadd.xlane.f32.xlu0 %v2013_v0  ;;  %v1866_v52 = vmul.f32 1.442695, %v1759_v51  ;;  %v8120_v54 = vld [vmem:[#allocation25_spill] sm:$0xff]  ;;  %v624_v26 = vpack.c.bf16 %v5085_v57, %v5084_v56 }
 0x3b2   :  { %v6832_v47 = vpop.eup %5419  ;;  %v2229_v8 = vpack.c.bf16 %v2167_v17, %v2166_v61  ;;  %v1983_v18 = vsel %vm129_vm0, %v6827_v21, 0.0  ;;  %v8121_v17 = vld [vmem:[#allocation24_spill] sm:$0xff]  ;;  %v8123_v61 = vld [vmem:[#allocation22_spill] sm:$0xff] }
 0x3b3   :  { %v2228_v59 = vpack.c.bf16 %v2165_v29, %v2164_v24  ;;  %v5422_v39 = vpop.eup %5421  ;;  %5437 = vpow2.f32 %v1866_v52  ;;  %v1992_v51 = vsel %vm129_vm0, %v6832_v47, 0.0  ;;  %v8122_v29 = vld [vmem:[#allocation7_spill] sm:$0xff]  ;;  %v8125_v52 = vld [vmem:[#allocation8_spill] sm:$0xff] }
 0x3b4   :  { %v5424_v6 = vpop.eup %5423  ;;  %v2168_v25 = vmul.f32 %v5422_v39, %v8119_v63  ;;  %v5090_v23 = vunpack.i.h.bf16 %v8122_v29  ;;  %v5089_v7 = vunpack.i.l.bf16 %v8122_v29 }
 0x3b5   :  { %4695 = vmatprep.mubr.msk.bf16.mxu0 %vm129_vm0, %v2228_v59  ;;  %v5426_v16 = vpop.eup %5425  ;;  %1984 = vadd.xlane.f32.xlu0 %v1983_v18  ;;  %v2171_v0 = vmul.f32 %v5424_v6, %v8121_v17  ;;  %v5100_v18 = vunpack.i.h.bf16 %v8125_v52 }
 0x3b6   :  { %4696 = vmatmul.mubr.msk.bf16.vlgmr.msra.gmra.mxu0 %vm129_vm0, %v2229_v8  ;;  %v2170_v59 = vmul.f32 %v5426_v16, %v8123_v61  ;;  %v5099_v16 = vunpack.i.l.bf16 %v8125_v52 }
 0x3b7   :  { %v5428_v41 = vpop.eup %5427  ;;  %4704 = vmatpush3.bf16.msra.mxu0 %v6344_v14 }
 0x3b8   :  { %4705 = vmatprep.subr.bf16.mxu0 %v625_v3  ;;  %v2169_v5 = vmul.f32 %v5428_v41, %v8120_v54  ;;  %v6846_v24 = vpop.eup %5429  ;;  %v2231_v57 = vpack.c.bf16 %v2171_v0, %v2170_v59  ;;  %v8129_v59 = vld [vmem:[#allocation28_spill] sm:$0xff] }
 0x3b9   :  { %1993 = vadd.xlane.f32.xlu0 %v1992_v51  ;;  %v2016_v56 = vsel %vm129_vm0, %v6846_v24, 0.0 }
 0x3ba   :  { %v2230_v14 = vpack.c.bf16 %v2169_v5, %v2168_v25  ;;  %v6851_v39 = vpop.eup %5431  ;;  %v6867_v25 = vpack.c.bf16 %v5100_v18, %v5099_v16  ;;  %v8130_v18 = vld [vmem:[#allocation30_spill] sm:$0xff] }
 0x3bb   :  { %8124 = vst [vmem:[#allocation23_spill] sm:$0xff] %v6851_v39  ;;  %4706 = vmatpush3.bf16.msra.mxu0 %v625_v3  ;;  %v2034_v8 = vsel %vm129_vm0, %v6851_v39, 0.0  ;;  %v6856_v6 = vpop.eup %5433  ;;  %v623_v3 = vpack.c.bf16 %v5090_v23, %v5089_v7 }
 0x3bc   :  { %4707 = vmatprep.subr.bf16.mxu0 %v624_v26  ;;  %4699 = vmatprep.mubr.msk.bf16.mxu0 %vm129_vm0, %v2230_v14  ;;  %v2025_v41 = vsel %vm129_vm0, %v6856_v6, 0.0  ;;  %v6865_v63 = vpop.eup %5435  ;;  %v8128_v14 = vld [vmem:[#allocation27_spill] sm:$0xff] }
 0x3bd   :  { %2035 = vadd.xlane.f32.xlu1 %v2034_v8  ;;  %2017 = vadd.xlane.f32.xlu0 %v2016_v56  ;;  %v1995_v54 = vsel %vm129_vm0, %v6865_v63, 0.0 }
 0x3be   :  { %4700 = vmatmul.mubr.msk.bf16.gmra.mxu0 %vm129_vm0, %v2231_v57 }
 0x3bf   :  { %4708 = vmatpush3.bf16.msra.mxu0 %v624_v26  ;;  %v8127_v26 = vld [vmem:[#allocation26_spill] sm:$0xff] }
 0x3c0   :  { %4709 = vmatprep.subr.bf16.mxu0 %v623_v3  ;;  %v6872_v5 = vpop.eup %5437 }
 0x3c1   :  { %2026 = vadd.xlane.f32.xlu0 %v2025_v41  ;;  %8126 = vst [vmem:[#allocation25_spill] sm:$0xff] %v6872_v5  ;;  %v2037_v17 = vsel %vm129_vm0, %v6872_v5, 0.0 }
 0x3c3   :  { %4710 = vmatpush3.bf16.msra.mxu0 %v623_v3 }
 0x3c4   :  { %4735 = vmatprep.subr.bf16.mxu0 %v6867_v25 }
 0x3c5   :  { %1996 = vadd.xlane.f32.xlu0 %v1995_v54  ;;  %v8131_v54 = vld [vmem:[#allocation29_spill] sm:$0xff] }
 0x3c9   :  { %2038 = vadd.xlane.f32.xlu0 %v2037_v17 }
 0x3d6   :  { %v1676_v0 = vpop.xlane.xlu1 %1675 }
 0x3d7   :  { %v1766_v51 = vsub.f32 %v8127_v26, %v1676_v0  ;;  %v8132_v26 = vld [vmem:[#allocation32_spill] sm:$0xff] }
 0x3d9   :  { %v1880_v29 = vmul.f32 1.442695, %v1766_v51 }
 0x3da   :  { %v1646_v23 = vpop.xlane.xlu1 %1645  ;;  %v1679_v7 = vpop.xlane.xlu0 %1678 }
 0x3db   :  { %5439 = vpow2.f32 %v1880_v29  ;;  %v1756_v61 = vsub.f32 %v8128_v14, %v1646_v23  ;;  %v1767_v57 = vsub.f32 %v8129_v59, %v1679_v7  ;;  %v8133_v14 = vld [vmem:[#allocation31_spill] sm:$0xff] }
 0x3dd   :  { %v1860_v8 = vmul.f32 1.442695, %v1756_v61  ;;  %v1882_v3 = vmul.f32 1.442695, %v1767_v57 }
 0x3de   :  { %v1670_v56 = vpop.xlane.xlu1 %1669  ;;  %v1649_v52 = vpop.xlane.xlu0 %1648 }
 0x3df   :  { %5441 = vpow2.f32 %v1860_v8  ;;  %v1764_v16 = vsub.f32 %v8130_v18, %v1670_v56  ;;  %v1757_v17 = vsub.f32 %v8131_v54, %v1649_v52  ;;  %v8135_v56 = vld [vmem:[#allocation34_spill] sm:$0xff] }
 0x3e1   :  { %v1876_v41 = vmul.f32 1.442695, %v1764_v16  ;;  %v1862_v29 = vmul.f32 1.442695, %v1757_v17  ;;  %v8138_v17 = vld [vmem:[#allocation33_spill] sm:$0xff] }
 0x3e2   :  { %v1673_v39 = vpop.xlane.xlu0 %1672  ;;  %v1664_v0 = vpop.xlane.xlu1 %1663 }
 0x3e3   :  { %5443 = vpow2.f32 %v1876_v41  ;;  %v1765_v51 = vsub.f32 %v8132_v26, %v1673_v39  ;;  %v1762_v7 = vsub.f32 %v8133_v14, %v1664_v0  ;;  %v8136_v39 = vld [vmem:[#allocation35_spill] sm:$0xff] }
 0x3e4   :  { %5445 = vpow2.f32 %v1882_v3 }
 0x3e5   :  { %v1878_v23 = vmul.f32 1.442695, %v1765_v51  ;;  %v1872_v57 = vmul.f32 1.442695, %v1762_v7 }
 0x3e6   :  { %v1688_v61 = vpop.xlane.xlu1 %1687  ;;  %v1667_v59 = vpop.xlane.xlu0 %1666 }
 0x3e7   :  { %5447 = vpow2.f32 %v1878_v23  ;;  %v1770_v18 = vsub.f32 %v8135_v56, %v1688_v61  ;;  %v1763_v0 = vsub.f32 %v8138_v17, %v1667_v59 }
 0x3e8   :  { %v6883_v8 = vpop.eup %5439  ;;  %5449 = vpow2.f32 %v1862_v29 }
 0x3e9   :  { %8134 = vst [vmem:[#allocation24_spill] sm:$0xff] %v6883_v8  ;;  %v2058_v52 = vsel %vm129_vm0, %v6883_v8, 0.0  ;;  %5451 = vpow2.f32 %v1872_v57  ;;  %v1888_v26 = vmul.f32 1.442695, %v1770_v18 }
 0x3ea   :  { %v1658_v16 = vpop.xlane.xlu1 %1657  ;;  %v1691_v41 = vpop.xlane.xlu0 %1690  ;;  %2059 = vadd.xlane.f32.xlu1 %v2058_v52  ;;  %v1874_v52 = vmul.f32 1.442695, %v1763_v0 }
 0x3eb   :  { %v1760_v3 = vsub.f32 %v8136_v39, %v1658_v16  ;;  %v8139_v16 = vld [vmem:[#allocation36_spill] sm:$0xff] }
 0x3ec   :  { %v6889_v54 = vpop.eup %5441  ;;  %v1771_v39 = vsub.f32 %v8139_v16, %v1691_v41 }
 0x3ed   :  { %8137 = vst [vmem:[#allocation7_spill] sm:$0xff] %v6889_v54  ;;  %v1868_v51 = vmul.f32 1.442695, %v1760_v3  ;;  %v2028_v29 = vsel %vm129_vm0, %v6889_v54, 0.0 }
 0x3ee   :  { %v1682_v23 = vpop.xlane.xlu1 %1681  ;;  %v1661_v14 = vpop.xlane.xlu0 %1660  ;;  %2029 = vadd.xlane.f32.xlu1 %v2028_v29  ;;  %v1890_v0 = vmul.f32 1.442695, %v1771_v39 }
 0x3ef   :  { %5453 = vpow2.f32 %v1868_v51  ;;  %v1768_v7 = vsub.f32 %v6596_v38, %v1682_v23  ;;  %v1761_v61 = vsub.f32 %v6593_v40, %v1661_v14 }
 0x3f0   :  { %v6896_v56 = vpop.eup %5443  ;;  %5455 = vpow2.f32 %v1888_v26 }
 0x3f1   :  { %v6899_v59 = vpop.eup %5445  ;;  %v1884_v57 = vmul.f32 1.442695, %v1768_v7  ;;  %v1870_v18 = vmul.f32 1.442695, %v1761_v61  ;;  %v2052_v3 = vsel %vm129_vm0, %v6896_v56, 0.0 }
 0x3f2   :  { %8140 = vst [vmem:[#allocation22_spill] sm:$0xff] %v6899_v59  ;;  %v1685_v17 = vpop.xlane.xlu0 %1684  ;;  %v1700_v29 = vpop.xlane.xlu1 %1699  ;;  %2053 = vadd.xlane.f32.xlu1 %v2052_v3  ;;  %v2061_v41 = vsel %vm129_vm0, %v6899_v59, 0.0 }
 0x3f3   :  { %5457 = vpow2.f32 %v1884_v57  ;;  %v1774_v38 = vsub.f32 %v6604_v30, %v1700_v29  ;;  %v1769_v26 = vsub.f32 %v6609_v36, %v1685_v17 }
 0x3f4   :  { %v6904_v40 = vpop.eup %5447  ;;  %5459 = vpow2.f32 %v1874_v52 }
 0x3f5   :  { %5461 = vpow2.f32 %v1870_v18  ;;  %v1896_v51 = vmul.f32 1.442695, %v1774_v38  ;;  %v2055_v23 = vsel %vm129_vm0, %v6904_v40, 0.0  ;;  %v6911_v14 = vpop.eup %5449  ;;  %v1886_v30 = vmul.f32 1.442695, %v1769_v26 }
 0x3f6   :  { %8141 = vst [vmem:[#allocation8_spill] sm:$0xff] %v6911_v14  ;;  %v1694_v7 = vpop.xlane.xlu1 %1693  ;;  %v1703_v61 = vpop.xlane.xlu0 %1702  ;;  %2062 = vadd.xlane.f32.xlu1 %v2061_v41  ;;  %2056 = vadd.xlane.f32.xlu0 %v2055_v23  ;;  %5463 = vpow2.f32 %v1890_v0  ;;  %v2031_v16 = vsel %vm129_vm0, %v6911_v14, 0.0 }
 0x3f7   :  { %5465 = vpow2.f32 %v1896_v51  ;;  %v1772_v52 = vsub.f32 %v6614_v55, %v1694_v7  ;;  %v6916_v39 = vpop.eup %5451  ;;  %v1775_v3 = vsub.f32 %v6618_v11, %v1703_v61  ;;  %v8147_v11 = vld [vmem:[#allocation37_spill] sm:$0xff] }
 0x3f8   :  { %8142 = vst [vmem:[#allocation26_spill] sm:$0xff] %v6916_v39  ;;  %5467 = vpow2.f32 %v1886_v30  ;;  %v2046_v29 = vsel %vm129_vm0, %v6916_v39, 0.0 }
 0x3f9   :  { %v1892_v17 = vmul.f32 1.442695, %v1772_v52  ;;  %v1898_v51 = vmul.f32 1.442695, %v1775_v3 }
 0x3fa   :  { %v1697_v36 = vpop.xlane.xlu0 %1696  ;;  %v1712_v57 = vpop.xlane.xlu1 %1711  ;;  %2032 = vadd.xlane.f32.xlu1 %v2031_v16 }
 0x3fb   :  { %5469 = vpow2.f32 %v1892_v17  ;;  %v1773_v7 = vsub.f32 %v8147_v11, %v1697_v36 }
 0x3fc   :  { %v6918_v18 = vpop.eup %5453  ;;  %5471 = vpow2.f32 %v1898_v51 }
 0x3fd   :  { %8143 = vst [vmem:[#allocation27_spill] sm:$0xff] %v6918_v18  ;;  %v2040_v55 = vsel %vm129_vm0, %v6918_v18, 0.0  ;;  %v6925_v38 = vpop.eup %5455  ;;  %v1894_v17 = vmul.f32 1.442695, %v1773_v7 }
 0x3fe   :  { %8144 = vst [vmem:[#allocation28_spill] sm:$0xff] %v6925_v38  ;;  %2047 = vadd.xlane.f32.xlu1 %v2046_v29  ;;  %v1706_v0 = vpop.xlane.xlu1 %1705  ;;  %v1715_v41 = vpop.xlane.xlu0 %1714  ;;  %2041 = vadd.xlane.f32.xlu0 %v2040_v55  ;;  %v2070_v61 = vsel %vm129_vm0, %v6925_v38, 0.0  ;;  %v1778_v55 = vsub.f32 %v6636_v32, %v1712_v57 }
 0x3ff   :  { %5473 = vpow2.f32 %v1894_v17  ;;  %v1776_v32 = vsub.f32 %v6647_v45, %v1706_v0 }
 0x400   :  { %v6927_v26 = vpop.eup %5457 }
 0x401   :  { %8145 = vst [vmem:[#allocation30_spill] sm:$0xff] %v6927_v26  ;;  %v6929_v23 = vpop.eup %5459  ;;  %v2064_v30 = vsel %vm129_vm0, %v6927_v26, 0.0 }
 0x402   :  { %8146 = vst [vmem:[#allocation29_spill] sm:$0xff] %v6929_v23  ;;  %v6936_v52 = vpop.eup %5461  ;;  %2071 = vadd.xlane.f32.xlu1 %v2070_v61  ;;  %v1940_v16 = vpop.xlane.xlu1 %1939  ;;  %2065 = vadd.xlane.f32.xlu0 %v2064_v30  ;;  %v2049_v36 = vsel %vm129_vm0, %v6929_v23, 0.0  ;;  %v1904_v30 = vmul.f32 1.442695, %v1778_v55  ;;  %v1900_v55 = vmul.f32 1.442695, %v1776_v32 }
 0x403   :  { %8148 = vst [vmem:[#allocation32_spill] sm:$0xff] %v6936_v52  ;;  %v1709_v29 = vpop.xlane.xlu0 %1708  ;;  %v6939_v3 = vpop.eup %5463  ;;  %v2043_v11 = vsel %vm129_vm0, %v6936_v52, 0.0  ;;  %v1779_v52 = vsub.f32 %v6649_v44, %v1715_v41 }
 0x404   :  { %8149 = vst [vmem:[#allocation31_spill] sm:$0xff] %v6939_v3  ;;  %v6945_v38 = vpop.eup %5465  ;;  %v2073_v57 = vsel %vm129_vm0, %v6939_v3, 0.0  ;;  %5475 = vpow2.f32 %v1904_v30 }
 0x405   :  { %8150 = vst [vmem:[#allocation34_spill] sm:$0xff] %v6945_v38  ;;  %v2082_v51 = vsel %vm129_vm0, %v6945_v38, 0.0  ;;  %v6952_v7 = vpop.eup %5467  ;;  %v1906_v17 = vmul.f32 1.442695, %v1779_v52  ;;  %5477 = vpow2.f32 %v1900_v55 }
 0x406   :  { %2050 = vadd.xlane.f32.xlu1 %v2049_v36  ;;  %v1934_v26 = vpop.xlane.xlu1 %1933  ;;  %2044 = vadd.xlane.f32.xlu0 %v2043_v11  ;;  %8151 = vst [vmem:[#allocation35_spill] sm:$0xff] %v6952_v7  ;;  %v2067_v45 = vsel %vm129_vm0, %v6952_v7, 0.0  ;;  %v1777_v11 = vsub.f32 %v6658_v37, %v1709_v29 }
 0x407   :  { %v1964_v61 = vpop.xlane.xlu0 %1963  ;;  %5479 = vpow2.f32 %v1906_v17 }
 0x408   :  { %v6959_v0 = vpop.eup %5469  ;;  %v1902_v30 = vmul.f32 1.442695, %v1777_v11  ;;  %5481 = vrcp.f32 %v1940_v16 }
 0x409   :  { %8152 = vst [vmem:[#allocation33_spill] sm:$0xff] %v6959_v0  ;;  %v2076_v44 = vsel %vm129_vm0, %v6959_v0, 0.0  ;;  %v6964_v41 = vpop.eup %5471 }
 0x40a   :  { %2074 = vadd.xlane.f32.xlu1 %v2073_v57  ;;  %v6955_v18 = vpop.xlane.xlu1 %1951  ;;  %2083 = vadd.xlane.f32.xlu0 %v2082_v51  ;;  %8153 = vst [vmem:[#allocation36_spill] sm:$0xff] %v6964_v41  ;;  %v2085_v37 = vsel %vm129_vm0, %v6964_v41, 0.0 }
 0x40b   :  { %v1958_v36 = vpop.xlane.xlu0 %1957 }
 0x40c   :  { %v6970_v52 = vpop.eup %5473 }
 0x40d   :  { %8154 = vst [vmem:[#allocation37_spill] sm:$0xff] %v6970_v52  ;;  %v2079_v16 = vsel %vm129_vm0, %v6970_v52, 0.0 }
 0x40e   :  { %2068 = vadd.xlane.f32.xlu1 %v2067_v45  ;;  %v1946_v3 = vpop.xlane.xlu1 %1945 }
 0x40f   :  { %v1943_v38 = vpop.xlane.xlu0 %1942 }
 0x410   :  { %5483 = vrcp.f32 %v1943_v38 }
 0x411   :  { %5485 = vrcp.f32 %v1934_v26  ;;  %v6976_v38 = vpop.eup %5475 }
 0x412   :  { %2077 = vadd.xlane.f32.xlu1 %v2076_v44  ;;  %v6966_v57 = vpop.xlane.xlu1 %1969  ;;  %5487 = vpow2.f32 %v1902_v30  ;;  %8155 = vst [vmem:[#allocation38_spill] sm:$0xff] %v6976_v38  ;;  %v2094_v55 = vsel %vm129_vm0, %v6976_v38, 0.0  ;;  %v6980_v45 = vpop.eup %5477  ;;  %v8157_v30 = vld [vmem:[#allocation2_spill] sm:$0xff]  ;;  %v8158_v38 = vld [vmem:[#allocation9_spill] sm:$0xff] }
 0x413   :  { %v1967_v32 = vpop.xlane.xlu0 %1966  ;;  %8156 = vst [vmem:[#allocation39_spill] sm:$0xff] %v6980_v45  ;;  %v5110_v41 = vunpack.i.h.bf16 %v8158_v38 }
 0x414   :  { %v6984_v11 = vpop.eup %5479 }
 0x415   :  { %v5482_v44 = vpop.eup %5481  ;;  %v2097_v23 = vsel %vm129_vm0, %v6984_v11, 0.0 }
 0x416   :  { %2086 = vadd.xlane.f32.xlu1 %v2085_v37  ;;  %v2174_v8 = vmul.f32 %v5482_v44, %v6664_v31 }
 0x417   :  { %v1937_v29 = vpop.xlane.xlu0 %1936 }
 0x418   :  { %5489 = vrcp.f32 %v1937_v29 }
 0x419   :  { %5491 = vrcp.f32 %v1967_v32  ;;  %v6972_v51 = vpop.xlane.xlu1 %2011 }
 0x41a   :  { %5493 = vrcp.f32 %v1958_v36  ;;  %2080 = vadd.xlane.f32.xlu1 %v2079_v16 }
 0x41b   :  { %5495 = vrcp.f32 %v1964_v61  ;;  %v1961_v26 = vpop.xlane.xlu0 %1960  ;;  %v2088_v61 = vsel %vm129_vm0, %v6980_v45, 0.0 }
 0x41c   :  { %5497 = vrcp.f32 %v1961_v26 }
 0x41d   :  { %v6982_v17 = vpop.xlane.xlu1 %1981  ;;  %v5484_v32 = vpop.eup %5483 }
 0x41e   :  { %2095 = vadd.xlane.f32.xlu1 %v2094_v55  ;;  %v5486_v37 = vpop.eup %5485  ;;  %v5109_v55 = vunpack.i.l.bf16 %v8158_v38  ;;  %v2175_v52 = vmul.f32 %v5484_v32, %v6694_v43 }
 0x41f   :  { %v1976_v36 = vpop.xlane.xlu0 %1975  ;;  %v6990_v16 = vpop.eup %5487  ;;  %v2172_v45 = vmul.f32 %v5486_v37, %v6678_v2 }
 0x420   :  { %5182 = vrot.lane.b32.xlu0 %v8157_v30, %s5709_s22  ;;  %v2233_v32 = vpack.c.bf16 %v2175_v52, %v2174_v8  ;;  %v633_v5 = vpack.c.bf16 %v5110_v41, %v5109_v55  ;;  %v2091_v2 = vsel %vm129_vm0, %v6990_v16, 0.0  ;;  %v8165_v55 = vld [vmem:[#allocation18_spill] sm:$0xff] }
 0x421   :  { %v6995_v0 = vpop.xlane.xlu1 %1990 }
 0x422   :  { %2089 = vadd.xlane.f32.xlu1 %v2088_v61 }
 0x423   :  { %v1955_v29 = vpop.xlane.xlu0 %1954 }
 0x424   :  { %5499 = vrcp.f32 %v1955_v29 }
 0x425   :  { %v5490_v26 = vpop.eup %5489  ;;  %5501 = vrcp.f32 %v1946_v3  ;;  %v8162_v3 = vld [vmem:[#allocation5_spill] sm:$0xff] }
 0x426   :  { %v5492_v7 = vpop.eup %5491  ;;  %v2173_v61 = vmul.f32 %v5490_v26, %v6719_v15  ;;  %2098 = vadd.xlane.f32.xlu1 %v2097_v23  ;;  %v8159_v23 = vld [vmem:[#allocation10_spill] sm:$0xff]  ;;  %5503 = vrcp.f32 %v6955_v18 }
 0x427   :  { %v5494_v39 = vpop.eup %5493  ;;  %v1979_v59 = vpop.xlane.xlu0 %1978  ;;  %v2183_v43 = vmul.f32 %v5492_v7, %v6705_v27  ;;  %v5120_v44 = vunpack.i.h.bf16 %v8159_v23  ;;  %v8163_v7 = vld [vmem:[#allocation12_spill] sm:$0xff] }
 0x428   :  { %v5496_v14 = vpop.eup %5495  ;;  %v2232_v54 = vpack.c.bf16 %v2173_v61, %v2172_v45  ;;  %v2180_v15 = vmul.f32 %v5494_v39, %v6680_v34  ;;  %v5119_v45 = vunpack.i.l.bf16 %v8159_v23  ;;  %v2009_v27 = vpop.xlane.xlu1 %2008  ;;  %v5135_v41 = vunpack.i.h.bf16 %v8163_v7  ;;  %v8166_v23 = vld [vmem:[#allocation3_spill] sm:$0xff] }
 0x429   :  { %v5498_v38 = vpop.eup %5497  ;;  %v2182_v37 = vmul.f32 %v5496_v14, %v6670_v4  ;;  %v5155_v61 = vunpack.i.h.bf16 %v8165_v55 }
 0x42a   :  { %4711 = vmatprep.mubr.msk.bf16.mxu0 %vm129_vm0, %v2232_v54  ;;  %v2181_v31 = vmul.f32 %v5498_v38, %v6733_v12  ;;  %2092 = vadd.xlane.f32.xlu1 %v2091_v2  ;;  %v8160_v12 = vld [vmem:[#allocation11_spill] sm:$0xff]  ;;  %v632_v18 = vpack.c.bf16 %v5120_v44, %v5119_v45  ;;  %v5154_v38 = vunpack.i.l.bf16 %v8165_v55 }
 0x42b   :  { %4712 = vmatmul.mubr.msk.bf16.vlgmr.msra.gmra.mxu0 %vm129_vm0, %v2233_v32  ;;  %v1949_v8 = vpop.xlane.xlu0 %1948  ;;  %v2237_v34 = vpack.c.bf16 %v2183_v43, %v2182_v37  ;;  %v5130_v4 = vunpack.i.h.bf16 %v8160_v12  ;;  %v5129_v14 = vunpack.i.l.bf16 %v8160_v12 }
 0x42c   :  { %4736 = vmatpush3.bf16.msra.mxu0 %v6867_v25  ;;  %5505 = vrcp.f32 %v1949_v8  ;;  %v2236_v54 = vpack.c.bf16 %v2181_v31, %v2180_v15  ;;  %v8161_v25 = vld [vmem:[#allocation6_spill] sm:$0xff] }
 0x42d   :  { %5507 = vrcp.f32 %v1979_v59  ;;  %4737 = vmatprep.subr.bf16.mxu0 %v633_v5  ;;  %v7020_v59 = vpop.xlane.xlu1 %1999  ;;  %v631_v29 = vpack.c.bf16 %v5130_v4, %v5129_v14 }
 0x42e   :  { %5509 = vrcp.f32 %v6966_v57  ;;  %4727 = vmatprep.mubr.msk.bf16.mxu1 %vm129_vm0, %v2236_v54  ;;  %v5134_v57 = vunpack.i.l.bf16 %v8163_v7 }
 0x42f   :  { %5511 = vrcp.f32 %v1976_v36  ;;  %4728 = vmatmul.mubr.msk.bf16.vlgmr.msra.gmra.mxu1 %vm129_vm0, %v2237_v34  ;;  %v1973_v39 = vpop.xlane.xlu0 %1972  ;;  %v8164_v36 = vld [vmem:[#allocation4_spill] sm:$0xff]  ;;  %v7038_v34 = vpack.c.bf16 %v5155_v61, %v5154_v38 }
 0x430   :  { %4738 = vmatpush3.bf16.msra.mxu0 %v633_v5  ;;  %4752 = vmatpush3.bf16.msra.mxu1 %v8161_v25  ;;  %5513 = vrcp.f32 %v1973_v39  ;;  %v7029_v2 = vpack.c.bf16 %v5135_v41, %v5134_v57 }
 0x431   :  { %4739 = vmatprep.subr.bf16.mxu0 %v632_v18  ;;  %4753 = vmatprep.subr.bf16.mxu1 %v8162_v3  ;;  %v5500_v5 = vpop.eup %5499  ;;  %5515 = vrcp.f32 %v2009_v27  ;;  %v2024_v43 = vpop.xlane.xlu1 %2023 }
 0x432   :  { %v5502_v26 = vpop.eup %5501  ;;  %v2179_v44 = vmul.f32 %v5500_v5, %v6751_v13 }
 0x433   :  { %v1988_v52 = vpop.xlane.xlu0 %1987  ;;  %v5504_v15 = vpop.eup %5503  ;;  %v2176_v37 = vmul.f32 %v5502_v26, %v6702_v10 }
 0x434   :  { %4740 = vmatpush3.bf16.msra.mxu0 %v632_v18  ;;  %4754 = vmatpush3.bf16.msra.mxu1 %v8162_v3  ;;  %v2178_v12 = vmul.f32 %v5504_v15, %v6688_v50 }
 0x435   :  { %4741 = vmatprep.subr.bf16.mxu0 %v631_v29  ;;  %4755 = vmatprep.subr.bf16.mxu1 %v8164_v36 }
 0x436   :  { %v2235_v10 = vpack.c.bf16 %v2179_v44, %v2178_v12 }
 0x437   :  { %v2006_v32 = vpop.xlane.xlu0 %2005 }
 0x438   :  { %4742 = vmatpush3.bf16.msra.mxu0 %v631_v29  ;;  %4756 = vmatpush3.bf16.msra.mxu1 %v8164_v36  ;;  %5517 = vrcp.f32 %v2006_v32  ;;  %v8167_v29 = vld [vmem:[#allocation17_spill] sm:$0xff] }
 0x439   :  { %v5506_v31 = vpop.eup %5505  ;;  %4757 = vmatprep.subr.bf16.mxu1 %v8166_v23  ;;  %4767 = vmatprep.subr.bf16.mxu0 %v7029_v2  ;;  %5519 = vrcp.f32 %v6972_v51  ;;  %v2003_v51 = vpop.xlane.xlu1 %2002  ;;  %v5165_v36 = vunpack.i.h.bf16 %v8167_v29  ;;  %v5164_v5 = vunpack.i.l.bf16 %v8167_v29 }
 0x43a   :  { %v5508_v45 = vpop.eup %5507  ;;  %v2177_v27 = vmul.f32 %v5506_v31, %v6782_v33  ;;  %v8168_v31 = vld [vmem:[#allocation19_spill] sm:$0xff] }
 0x43b   :  { %v5510_v8 = vpop.eup %5509  ;;  %v2015_v54 = vpop.xlane.xlu0 %2014  ;;  %5187 = vrot.lane.b32.xlu1 %v8157_v30, %s5711_s24  ;;  %v2187_v33 = vmul.f32 %v5508_v45, %v6769_v35  ;;  %v645_v45 = vpack.c.bf16 %v5165_v36, %v5164_v5 }
 0x43c   :  { %v5512_v4 = vpop.eup %5511  ;;  %4758 = vmatpush3.bf16.msra.mxu1 %v8166_v23  ;;  %5521 = vrcp.f32 %v2015_v54  ;;  %v2234_v13 = vpack.c.bf16 %v2177_v27, %v2176_v37  ;;  %v2184_v50 = vmul.f32 %v5510_v8, %v6717_v19  ;;  %v5175_v23 = vunpack.i.h.bf16 %v8168_v31 }
 0x43d   :  { %v5514_v14 = vpop.eup %5513  ;;  %5523 = vrcp.f32 %v1988_v52  ;;  %4783 = vmatprep.subr.bf16.mxu1 %v7038_v34  ;;  %v2186_v18 = vmul.f32 %v5512_v4, %v6747_v9  ;;  %v5174_v37 = vunpack.i.l.bf16 %v8168_v31 }
 0x43e   :  { %5525 = vrcp.f32 %v6982_v17  ;;  %4715 = vmatprep.mubr.msk.bf16.mxu0 %vm129_vm0, %v2234_v13  ;;  %v2185_v39 = vmul.f32 %v5514_v14, %v6791_v49  ;;  %v5516_v35 = vpop.eup %5515  ;;  %v2021_v17 = vpop.xlane.xlu1 %2020 }
 0x43f   :  { %5527 = vrcp.f32 %v6995_v0  ;;  %4716 = vmatmul.mubr.msk.bf16.gmra.mxu0 %vm129_vm0, %v2235_v10  ;;  %v1985_v30 = vpop.xlane.xlu0 %1984  ;;  %v2239_v3 = vpack.c.bf16 %v2187_v33, %v2186_v18  ;;  %v2197_v0 = vmul.f32 %v5516_v35, %v6772_v1 }
 0x440   :  { %5529 = vrcp.f32 %v1985_v30  ;;  %v2238_v25 = vpack.c.bf16 %v2185_v39, %v2184_v50  ;;  %v8171_v50 = vld [vmem:[#allocation14_spill] sm:$0xff] }
 0x441   :  { %5531 = vrcp.f32 %v2021_v17  ;;  %v5150_v39 = vunpack.i.h.bf16 %v8171_v50  ;;  %v5149_v30 = vunpack.i.l.bf16 %v8171_v50 }
 0x442   :  { %4731 = vmatprep.mubr.msk.bf16.mxu1 %vm129_vm0, %v2238_v25 }
 0x443   :  { %4732 = vmatmul.mubr.msk.bf16.gmra.mxu1 %vm129_vm0, %v2239_v3  ;;  %v1994_v7 = vpop.xlane.xlu0 %1993 }
 0x445   :  { %v5518_v19 = vpop.eup %5517 }
 0x446   :  { %v2196_v49 = vmul.f32 %v5518_v19, %v6808_v53  ;;  %v5520_v41 = vpop.eup %5519 }
 0x447   :  { %v2018_v57 = vpop.xlane.xlu0 %2017  ;;  %v2198_v55 = vmul.f32 %v5520_v41, %v6736_v28 }
 0x448   :  { %5533 = vrcp.f32 %v2018_v57  ;;  %v2244_v9 = vpack.c.bf16 %v2197_v0, %v2196_v49  ;;  %v639_v49 = vpack.c.bf16 %v5150_v39, %v5149_v30  ;;  %v8178_v39 = vld [vmem:[#allocation21_spill] sm:$0xff] }
 0x449   :  { %v5522_v52 = vpop.eup %5521  ;;  %5535 = vrcp.f32 %v2024_v43  ;;  %v8169_v43 = vld [vmem:[#allocation16_spill] sm:$0xff]  ;;  %v5180_v30 = vunpack.i.h.bf16 %v8178_v39 }
 0x44a   :  { %v5524_v26 = vpop.eup %5523  ;;  %v2199_v61 = vmul.f32 %v5522_v52, %v6813_v20  ;;  %4759 = vmatprep.mubr.msk.bf16.mxu1 %vm129_vm0, %v2244_v9  ;;  %v5140_v27 = vunpack.i.h.bf16 %v8169_v43  ;;  %v5139_v8 = vunpack.i.l.bf16 %v8169_v43 }
 0x44b   :  { %v5526_v53 = vpop.eup %5525  ;;  %v2027_v38 = vpop.xlane.xlu0 %2026  ;;  %v2190_v44 = vmul.f32 %v5524_v26, %v6800_v58 }
 0x44c   :  { %v5528_v1 = vpop.eup %5527  ;;  %5537 = vrcp.f32 %v2027_v38  ;;  %v2245_v32 = vpack.c.bf16 %v2199_v61, %v2198_v55  ;;  %v2188_v28 = vmul.f32 %v5526_v53, %v6749_v62  ;;  %v644_v62 = vpack.c.bf16 %v5175_v23, %v5174_v37 }
 0x44d   :  { %v5530_v15 = vpop.eup %5529  ;;  %5539 = vrcp.f32 %v2003_v51  ;;  %v2191_v54 = vmul.f32 %v5528_v1, %v6755_v48  ;;  %v641_v48 = vpack.c.bf16 %v5140_v27, %v5139_v8 }
 0x44e   :  { %5541 = vrcp.f32 %v1994_v7  ;;  %4760 = vmatmul.mubr.msk.bf16.vlgmr.msra.gmra.mxu1 %vm129_vm0, %v2245_v32  ;;  %v2189_v20 = vmul.f32 %v5530_v15, %v6827_v21  ;;  %v5532_v13 = vpop.eup %5531  ;;  %v8170_v21 = vld [vmem:[#allocation13_spill] sm:$0xff] }
 0x44f   :  { %5543 = vrcp.f32 %v7020_v59  ;;  %4784 = vmatpush3.bf16.msra.mxu1 %v7038_v34  ;;  %v1997_v58 = vpop.xlane.xlu0 %1996  ;;  %v2241_v4 = vpack.c.bf16 %v2191_v54, %v2190_v44  ;;  %v5145_v14 = vunpack.i.h.bf16 %v8170_v21  ;;  %v5144_v51 = vunpack.i.l.bf16 %v8170_v21  ;;  %v8173_v54 = vld [vmem:[#allocation25_spill] sm:$0xff] }
 0x450   :  { %4785 = vmatprep.subr.bf16.mxu1 %v645_v45  ;;  %5545 = vrcp.f32 %v1997_v58  ;;  %v2240_v12 = vpack.c.bf16 %v2189_v20, %v2188_v28  ;;  %v2201_v10 = vmul.f32 %v5532_v13, %v6811_v42  ;;  %v8172_v42 = vld [vmem:[#allocation15_spill] sm:$0xff]  ;;  %v8175_v13 = vld [vmem:[#allocation8_spill] sm:$0xff] }
 0x451   :  { %v640_v18 = vpack.c.bf16 %v5145_v14, %v5144_v51  ;;  %v5160_v7 = vunpack.i.h.bf16 %v8172_v42  ;;  %v5159_v19 = vunpack.i.l.bf16 %v8172_v42  ;;  %v8176_v14 = vld [vmem:[#allocation20_spill] sm:$0xff]  ;;  %v8179_v42 = vld [vmem:[#allocation22_spill] sm:$0xff] }
 0x452   :  { %4743 = vmatprep.mubr.msk.bf16.mxu0 %vm129_vm0, %v2240_v12  ;;  %v5170_v51 = vunpack.i.h.bf16 %v8176_v14 }
 0x453   :  { %4786 = vmatpush3.bf16.msra.mxu1 %v645_v45  ;;  %4744 = vmatmul.mubr.msk.bf16.vlgmr.msra.gmra.mxu0 %vm129_vm0, %v2241_v4  ;;  %v8174_v4 = vld [vmem:[#allocation7_spill] sm:$0xff] }
 0x454   :  { %4768 = vmatpush3.bf16.msra.mxu0 %v7029_v2  ;;  %4787 = vmatprep.subr.bf16.mxu1 %v644_v62 }
 0x455   :  { %v5534_v59 = vpop.eup %5533  ;;  %4769 = vmatprep.subr.bf16.mxu0 %v641_v48 }
 0x456   :  { %v2200_v34 = vmul.f32 %v5534_v59, %v6846_v24  ;;  %v5536_v33 = vpop.eup %5535  ;;  %v8177_v59 = vld [vmem:[#allocation23_spill] sm:$0xff] }
 0x457   :  { %4788 = vmatpush3.bf16.msra.mxu1 %v644_v62  ;;  %v2202_v2 = vmul.f32 %v5536_v33, %v6787_v60 }
 0x458   :  { %4770 = vmatpush3.bf16.msra.mxu0 %v641_v48  ;;  %v2246_v25 = vpack.c.bf16 %v2201_v10, %v2200_v34  ;;  %v5169_v48 = vunpack.i.l.bf16 %v8176_v14  ;;  %v8189_v14 = vld [vmem:[#allocation33_spill] sm:$0xff] }
 0x459   :  { %v5538_v3 = vpop.eup %5537  ;;  %4771 = vmatprep.subr.bf16.mxu0 %v640_v18 }
 0x45a   :  { %v5540_v35 = vpop.eup %5539  ;;  %4763 = vmatprep.mubr.msk.bf16.mxu1 %vm129_vm0, %v2246_v25  ;;  %v2203_v24 = vmul.f32 %v5538_v3, %v6856_v6  ;;  %v7091_v6 = vpack.c.bf16 %v5160_v7, %v5159_v19 }
 0x45b   :  { %v5542_v17 = vpop.eup %5541  ;;  %v2195_v9 = vmul.f32 %v5540_v35, %v6795_v46  ;;  %v2036_v46 = vpop.xlane.xlu1 %2035  ;;  %v649_v35 = vpack.c.bf16 %v5170_v51, %v5169_v48  ;;  %v8190_v48 = vld [vmem:[#allocation37_spill] sm:$0xff] }
 0x45c   :  { %v5544_v0 = vpop.eup %5543  ;;  %4772 = vmatpush3.bf16.msra.mxu0 %v640_v18  ;;  %v2247_v41 = vpack.c.bf16 %v2203_v24, %v2202_v2  ;;  %v2192_v52 = vmul.f32 %v5542_v17, %v6832_v47  ;;  %v2039_v47 = vpop.xlane.xlu0 %2038  ;;  %v5179_v18 = vunpack.i.l.bf16 %v8178_v39 }
 0x45d   :  { %v5546_v57 = vpop.eup %5545  ;;  %4773 = vmatprep.subr.bf16.mxu0 %v639_v49  ;;  %v2194_v29 = vmul.f32 %v5544_v0, %v6776_v22 }
 0x45e   :  { %4764 = vmatmul.mubr.msk.bf16.gmra.mxu1 %vm129_vm0, %v2247_v41  ;;  %v2193_v60 = vmul.f32 %v5546_v57, %v6865_v63  ;;  %v648_v41 = vpack.c.bf16 %v5180_v30, %v5179_v18  ;;  %v8191_v30 = vld [vmem:[#allocation36_spill] sm:$0xff] }
 0x45f   :  { %v2243_v5 = vpack.c.bf16 %v2195_v9, %v2194_v29  ;;  %v8180_v9 = vld [vmem:[#allocation24_spill] sm:$0xff] }
 0x460   :  { %4774 = vmatpush3.bf16.msra.mxu0 %v639_v49  ;;  %v2242_v36 = vpack.c.bf16 %v2193_v60, %v2192_v52 }
 0x461   :  { %4799 = vmatprep.subr.bf16.mxu0 %v7091_v6 }
 0x462   :  { %4747 = vmatprep.mubr.msk.bf16.mxu0 %vm129_vm0, %v2242_v36  ;;  %v8181_v36 = vld [vmem:[#allocation26_spill] sm:$0xff] }
 0x463   :  { %4748 = vmatmul.mubr.msk.bf16.gmra.mxu0 %vm129_vm0, %v2243_v5 }
 0x473   :  { %v2060_v26 = vpop.xlane.xlu1 %2059 }
 0x477   :  { %v2030_v55 = vpop.xlane.xlu1 %2029 }
 0x47b   :  { %v2054_v61 = vpop.xlane.xlu1 %2053 }
 0x47c   :  { %5547 = vrcp.f32 %v2054_v61  ;;  %v8183_v61 = vld [vmem:[#allocation27_spill] sm:$0xff] }
 0x47d   :  { %5549 = vrcp.f32 %v2039_v47 }
 0x47f   :  { %v2063_v63 = vpop.xlane.xlu1 %2062  ;;  %v2057_v53 = vpop.xlane.xlu0 %2056 }
 0x480   :  { %5551 = vrcp.f32 %v2057_v53 }
 0x481   :  { %5553 = vrcp.f32 %v2030_v55 }
 0x482   :  { %5555 = vrcp.f32 %v2036_v46  ;;  %v8182_v46 = vld [vmem:[#allocation29_spill] sm:$0xff] }
 0x483   :  { %v2033_v22 = vpop.xlane.xlu1 %2032 }
 0x484   :  { %5557 = vrcp.f32 %v2033_v22 }
 0x485   :  { %5559 = vrcp.f32 %v2063_v63  ;;  %v8184_v63 = vld [vmem:[#allocation32_spill] sm:$0xff] }
 0x486   :  { %5561 = vrcp.f32 %v2060_v26 }
 0x487   :  { %v2048_v38 = vpop.xlane.xlu1 %2047  ;;  %v2042_v1 = vpop.xlane.xlu0 %2041 }
 0x488   :  { %5563 = vrcp.f32 %v2048_v38 }
 0x489   :  { %v5548_v31 = vpop.eup %5547  ;;  %5565 = vrcp.f32 %v2042_v1 }
 0x48a   :  { %v5550_v23 = vpop.eup %5549  ;;  %v2212_v20 = vmul.f32 %v5548_v31, %v6896_v56 }
 0x48b   :  { %v2072_v32 = vpop.xlane.xlu1 %2071  ;;  %v2066_v15 = vpop.xlane.xlu0 %2065  ;;  %v2207_v58 = vmul.f32 %v5550_v23, %v8173_v54 }
 0x48d   :  { %v5552_v44 = vpop.eup %5551 }
 0x48e   :  { %v5554_v45 = vpop.eup %5553  ;;  %v2213_v43 = vmul.f32 %v5552_v44, %v6904_v40  ;;  %v8185_v44 = vld [vmem:[#allocation31_spill] sm:$0xff] }
 0x48f   :  { %v2051_v37 = vpop.xlane.xlu1 %2050  ;;  %v2045_v28 = vpop.xlane.xlu0 %2044  ;;  %v2204_v62 = vmul.f32 %v5554_v45, %v8174_v4 }
 0x490   :  { %v5556_v27 = vpop.eup %5555  ;;  %5567 = vrcp.f32 %v2051_v37  ;;  %v2252_v12 = vpack.c.bf16 %v2213_v43, %v2212_v20  ;;  %v8186_v37 = vld [vmem:[#allocation30_spill] sm:$0xff]  ;;  %v8187_v20 = vld [vmem:[#allocation35_spill] sm:$0xff] }
 0x491   :  { %v5558_v8 = vpop.eup %5557  ;;  %5569 = vrcp.f32 %v2045_v28  ;;  %v2206_v34 = vmul.f32 %v5556_v27, %v8177_v59 }
 0x492   :  { %v2205_v21 = vmul.f32 %v5558_v8, %v8175_v13  ;;  %4791 = vmatprep.mubr.msk.bf16.mxu1 %vm129_vm0, %v2252_v12  ;;  %v5560_v50 = vpop.eup %5559  ;;  %v8188_v8 = vld [vmem:[#allocation28_spill] sm:$0xff] }
 0x493   :  { %v2075_v56 = vpop.xlane.xlu1 %2074  ;;  %v7106_v40 = vpop.xlane.xlu0 %2083  ;;  %v2249_v33 = vpack.c.bf16 %v2207_v58, %v2206_v34  ;;  %v2215_v7 = vmul.f32 %v5560_v50, %v8179_v42 }
 0x494   :  { %v2248_v10 = vpack.c.bf16 %v2205_v21, %v2204_v62  ;;  %5571 = vrcp.f32 %v2075_v56  ;;  %v5562_v17 = vpop.eup %5561 }
 0x495   :  { %5573 = vrcp.f32 %v2066_v15  ;;  %v5564_v49 = vpop.eup %5563  ;;  %v2214_v52 = vmul.f32 %v5562_v17, %v8180_v9  ;;  %v8194_v9 = vld [vmem:[#allocation38_spill] sm:$0xff] }
 0x496   :  { %4775 = vmatprep.mubr.msk.bf16.mxu0 %vm129_vm0, %v2248_v10  ;;  %5575 = vrcp.f32 %v2072_v32  ;;  %v5566_v57 = vpop.eup %5565  ;;  %v2210_v5 = vmul.f32 %v5564_v49, %v8181_v36 }
 0x497   :  { %v2069_v25 = vpop.xlane.xlu1 %2068  ;;  %4776 = vmatmul.mubr.msk.bf16.vlgmr.msra.gmra.mxu0 %vm129_vm0, %v2249_v33  ;;  %v5183_v3 = vpop.permute.xlu0 %5182  ;;  %v2208_v47 = vmul.f32 %v5566_v57, %v8183_v61 }
 0x498   :  { %5577 = vrcp.f32 %v2069_v25  ;;  %4800 = vmatpush3.bf16.msra.mxu0 %v7091_v6  ;;  %v5185_v2 = vunpack.i.h.bf16 %v5183_v3  ;;  %v5184_v24 = vunpack.i.l.bf16 %v5183_v3  ;;  %v2253_v6 = vpack.c.bf16 %v2215_v7, %v2214_v52  ;;  %v8192_v3 = vld [vmem:[#allocation34_spill] sm:$0xff] }
 0x499   :  { %4801 = vmatprep.subr.bf16.mxu0 %v649_v35 }
 0x49a   :  { %v643_v19 = vpack.c.bf16 %v5185_v2, %v5184_v24 }
 0x49b   :  { %v2078_v0 = vpop.xlane.xlu1 %2077 }
 0x49c   :  { %4802 = vmatpush3.bf16.msra.mxu0 %v649_v35  ;;  %4789 = vmatprep.subr.bf16.mxu1 %v643_v19  ;;  %5579 = vrcp.f32 %v2078_v0 }
 0x49d   :  { %v5568_v60 = vpop.eup %5567  ;;  %4803 = vmatprep.subr.bf16.mxu0 %v648_v41  ;;  %4790 = vmatpush3.bf16.msra.mxu1 %v643_v19  ;;  %v8193_v19 = vld [vmem:[#allocation39_spill] sm:$0xff] }
 0x49e   :  { %v5570_v29 = vpop.eup %5569  ;;  %v2211_v26 = vmul.f32 %v5568_v60, %v8182_v46 }
 0x49f   :  { %v2087_v55 = vpop.xlane.xlu1 %2086  ;;  %v2209_v53 = vmul.f32 %v5570_v29, %v8184_v63  ;;  %v7141_v29 = vpop.f32.mrf.mxu0 }
 0x4a0   :  { %4804 = vmatpush3.bf16.msra.mxu0 %v648_v41  ;;  %4792 = vmatmul.mubr.msk.bf16.vlgmr.msra.gmra.mxu1 %vm129_vm0, %v2253_v6  ;;  %v2251_v22 = vpack.c.bf16 %v2211_v26, %v2210_v5 }
 0x4a1   :  { %v2250_v38 = vpack.c.bf16 %v2209_v53, %v2208_v47  ;;  %v5572_v1 = vpop.eup %5571  ;;  %v7143_v6 = vpop.f32.mrf.mxu0 }
 0x4a2   :  { %v5574_v32 = vpop.eup %5573  ;;  %v2219_v45 = vmul.f32 %v5572_v1, %v8185_v44 }
 0x4a3   :  { %4779 = vmatprep.mubr.msk.bf16.mxu0 %vm129_vm0, %v2250_v38  ;;  %v2081_v15 = vpop.xlane.xlu1 %2080  ;;  %v5576_v31 = vpop.eup %5575  ;;  %v2216_v28 = vmul.f32 %v5574_v32, %v8186_v37 }
 0x4a4   :  { %5581 = vrcp.f32 %v2081_v15  ;;  %4780 = vmatmul.mubr.msk.bf16.gmra.mxu0 %vm129_vm0, %v2251_v22  ;;  %v2218_v54 = vmul.f32 %v5576_v31, %v8188_v8  ;;  %v7145_v36 = vpop.f32.mrf.mxu0 }
 0x4a5   :  { %v5578_v23 = vpop.eup %5577  ;;  %5583 = vrcp.f32 %v2087_v55 }
 0x4a6   :  { %v2217_v43 = vmul.f32 %v5578_v23, %v8187_v20  ;;  %v2255_v12 = vpack.c.bf16 %v2219_v45, %v2218_v54  ;;  %5585 = vrcp.f32 %v7106_v40  ;;  %v7147_v5 = vpop.f32.mrf.mxu0  ;;  %v5323_v54 = vld [vmem:[%s8015_s3 + $0x18] sm:$0xff]  }
 0x4a7   :  { %v2096_v27 = vpop.xlane.xlu1 %2095  ;;  %4815 = vmatprep.subr.bf16.mxu1 %v5323_v54 }
 0x4a8   :  { %v2254_v58 = vpack.c.bf16 %v2217_v43, %v2216_v28  ;;  %v7149_v46 = vpop.f32.mrf.mxu0  ;;  %4816 = vmatpush3.bf16.msra.mxu1 %v5323_v54 }
 0x4a9   :  { %v5580_v62 = vpop.eup %5579 }
 0x4aa   :  { %4795 = vmatprep.mubr.msk.bf16.mxu1 %vm129_vm0, %v2254_v58  ;;  %v2220_v51 = vmul.f32 %v5580_v62, %v8189_v14  ;;  %v5324_v62 = vld [vmem:[%s8015_s3 + $0x10] sm:$0xff]   ;;  %v5326_v14 = vld [vmem:[%s8015_s3] sm:$0xff]  }
 0x4ab   :  { %v2090_v4 = vpop.xlane.xlu1 %2089  ;;  %4796 = vmatmul.mubr.msk.bf16.gmra.mxu1 %vm129_vm0, %v2255_v12  ;;  %4817 = vmatprep.subr.bf16.mxu1 %v5324_v62 }
 0x4ac   :  { %5587 = vrcp.f32 %v2090_v4  ;;  %4818 = vmatpush3.bf16.msra.mxu1 %v5324_v62 }
 0x4af   :  { %v2099_v13 = vpop.xlane.xlu1 %2098 }
 0x4b0   :  { %5589 = vrcp.f32 %v2099_v13 }
 0x4b1   :  { %v5582_v21 = vpop.eup %5581  ;;  %5591 = vrcp.f32 %v2096_v27 }
 0x4b2   :  { %v2221_v59 = vmul.f32 %v5582_v21, %v8190_v48  ;;  %v5584_v10 = vpop.eup %5583  ;;  %v5325_v21 = vld [vmem:[%s8015_s3 + $0x8] sm:$0xff]  }
 0x4b3   :  { %v2093_v34 = vpop.xlane.xlu1 %2092  ;;  %v5586_v40 = vpop.eup %5585  ;;  %v2223_v18 = vmul.f32 %v5584_v10, %v8191_v30  ;;  %4819 = vmatprep.subr.bf16.mxu1 %v5325_v21 }
 0x4b4   :  { %5593 = vrcp.f32 %v2093_v34  ;;  %v2256_v56 = vpack.c.bf16 %v2221_v59, %v2220_v51  ;;  %v2222_v35 = vmul.f32 %v5586_v40, %v8192_v3  ;;  %4820 = vmatpush3.bf16.msra.mxu1 %v5325_v21 }
 0x4b5   :  { %4821 = vmatprep.subr.bf16.mxu1 %v5326_v14 }
 0x4b6   :  { %4807 = vmatprep.mubr.msk.bf16.mxu0 %vm129_vm0, %v2256_v56  ;;  %v2257_v24 = vpack.c.bf16 %v2223_v18, %v2222_v35 }
 0x4b7   :  { %v5188_v33 = vpop.permute.xlu1 %5187 }
 0x4b8   :  { %v5190_v50 = vunpack.i.h.bf16 %v5188_v33  ;;  %v5189_v39 = vunpack.i.l.bf16 %v5188_v33  ;;  %4822 = vmatpush3.bf16.msra.mxu1 %v5326_v14 }
 0x4b9   :  { %v5588_v2 = vpop.eup %5587 }
 0x4ba   :  { %v647_v25 = vpack.c.bf16 %v5190_v50, %v5189_v39  ;;  %v2224_v49 = vmul.f32 %v5588_v2, %v8193_v19 }
 0x4bc   :  { %4805 = vmatprep.subr.bf16.mxu0 %v647_v25 }
 0x4bd   :  { %4806 = vmatpush3.bf16.msra.mxu0 %v647_v25  ;;  %v5590_v17 = vpop.eup %5589 }
 0x4be   :  { %v5592_v42 = vpop.eup %5591  ;;  %v2227_v41 = vmul.f32 %v5590_v17, %v6984_v11 }
 0x4bf   :  { %v2226_v52 = vmul.f32 %v5592_v42, %v8194_v9 }
 0x4c0   :  { %4808 = vmatmul.mubr.msk.bf16.vlgmr.msra.gmra.mxu0 %vm129_vm0, %v2257_v24 }
 0x4c1   :  { %v5594_v7 = vpop.eup %5593  ;;  %v2259_v60 = vpack.c.bf16 %v2227_v41, %v2226_v52 }
 0x4c2   :  { %v2225_v0 = vmul.f32 %v5594_v7, %v6990_v16  ;;  %v7151_v16 = vpop.f32.mrf.mxu0 }
 0x4c4   :  { %v2258_v57 = vpack.c.bf16 %v2225_v0, %v2224_v49  ;;  %v7153_v11 = vpop.f32.mrf.mxu0 }
 0x4c6   :  { %4811 = vmatprep.mubr.msk.bf16.mxu0 %vm129_vm0, %v2258_v57  ;;  %v7155_v26 = vpop.f32.mrf.mxu0 }
 0x4c8   :  { %4812 = vmatmul.mubr.msk.bf16.gmra.mxu0 %vm129_vm0, %v2259_v60 }
 0x4eb   :  { %v4713_v55 = vpop.f32.mrf.mxu0 }
 0x4ed   :  { %v2383_v61 = vpop.f32.mrf.mxu0 }
 0x4ef   :  { %v4714_v47 = vpop.f32.mrf.mxu0  ;;  %v4729_v63 = vpop.f32.mrf.mxu1 }
 0x4f0   :  { %v5191_v53 = vpack.i.bf16 %v4714_v47, %v4713_v55 }
 0x4f1   :  { %v2386_v22 = vpop.f32.mrf.mxu0  ;;  %v2460_v38 = vpop.f32.mrf.mxu1 }
 0x4f2   :  { %v5201_v1 = vpack.i.bf16 %v2386_v22, %v2383_v61  ;;  %5192 = vrot.lane.b32.xlu1 %v5191_v53, %s5712_s25 }
 0x4f3   :  { %v4730_v32 = vpop.f32.mrf.mxu1 }
 0x4f4   :  { %v5196_v15 = vpack.i.bf16 %v4730_v32, %v4729_v63  ;;  %5202 = vrot.lane.b32.xlu0 %v5201_v1, %s5712_s25 }
 0x4f5   :  { %v2463_v31 = vpop.f32.mrf.mxu1 }
 0x4f6   :  { %v5206_v23 = vpack.i.bf16 %v2463_v31, %v2460_v38  ;;  %5197 = vrot.lane.b32.xlu1 %v5196_v15, %s5713_s26 }
 0x4f8   :  { %5207 = vrot.lane.b32.xlu0 %v5206_v23, %s5713_s26 }
 0x4ff   :  { %v4717_v44 = vpop.f32.mrf.mxu0 }
 0x501   :  { %v2399_v45 = vpop.f32.mrf.mxu0 }
 0x503   :  { %v4718_v37 = vpop.f32.mrf.mxu0  ;;  %v4733_v28 = vpop.f32.mrf.mxu1 }
 0x504   :  { %v5211_v20 = vpack.i.bf16 %v4718_v37, %v4717_v44 }
 0x505   :  { %v2402_v43 = vpop.f32.mrf.mxu0  ;;  %v2476_v27 = vpop.f32.mrf.mxu1 }
 0x506   :  { %v5221_v8 = vpack.i.bf16 %v2402_v43, %v2399_v45  ;;  %5212 = vrot.lane.b32.xlu1 %v5211_v20, %s5712_s25 }
 0x507   :  { %v4734_v58 = vpop.f32.mrf.mxu1 }
 0x508   :  { %v5216_v12 = vpack.i.bf16 %v4734_v58, %v4733_v28  ;;  %5222 = vrot.lane.b32.xlu0 %v5221_v8, %s5712_s25 }
 0x509   :  { %v2479_v4 = vpop.f32.mrf.mxu1 }
 0x50a   :  { %v5226_v13 = vpack.i.bf16 %v2479_v4, %v2476_v27  ;;  %5217 = vrot.lane.b32.xlu1 %v5216_v12, %s5713_s26 }
 0x50c   :  { %5227 = vrot.lane.b32.xlu0 %v5226_v13, %s5713_s26 }
 0x50e   :  { %v7181_v25 = vpop.f32.mrf.mxu1 }
 0x510   :  { %v7183_v3 = vpop.f32.mrf.mxu1 }
 0x512   :  { %v7185_v35 = vpop.f32.mrf.mxu1 }
 0x513   :  { %v4745_v51 = vpop.f32.mrf.mxu0 }
 0x514   :  { %v7187_v2 = vpop.f32.mrf.mxu1 }
 0x515   :  { %v2537_v48 = vpop.f32.mrf.mxu0 }
 0x517   :  { %v4746_v59 = vpop.f32.mrf.mxu0 }
 0x518   :  { %v5231_v34 = vpack.i.bf16 %v4746_v59, %v4745_v51 }
 0x519   :  { %v2540_v56 = vpop.f32.mrf.mxu0 }
 0x51a   :  { %v5236_v10 = vpack.i.bf16 %v2540_v56, %v2537_v48  ;;  %5232 = vrot.lane.b32.xlu1 %v5231_v34, %s5714_s17 }
 0x51c   :  { %5237 = vrot.lane.b32.xlu0 %v5236_v10, %s5714_s17 }
 0x51e   :  { %v7189_v24 = vpop.f32.mrf.mxu1 }
 0x520   :  { %v7191_v17 = vpop.f32.mrf.mxu1 }
 0x522   :  { %v7193_v19 = vpop.f32.mrf.mxu1 }
 0x523   :  { %v4749_v33 = vpop.f32.mrf.mxu0 }
 0x524   :  { %v7195_v57 = vpop.f32.mrf.mxu1 }
 0x525   :  { %v2553_v50 = vpop.f32.mrf.mxu0 }
 0x527   :  { %v4750_v39 = vpop.f32.mrf.mxu0 }
 0x528   :  { %v5241_v40 = vpack.i.bf16 %v4750_v39, %v4749_v33 }
 0x529   :  { %v2556_v30 = vpop.f32.mrf.mxu0 }
 0x52a   :  { %v5246_v18 = vpack.i.bf16 %v2556_v30, %v2553_v50  ;;  %5242 = vrot.lane.b32.xlu1 %v5241_v40, %s5714_s17 }
 0x52c   :  { %5247 = vrot.lane.b32.xlu0 %v5246_v18, %s5714_s17 }
 0x557   :  { %v4777_v42 = vpop.f32.mrf.mxu0 }
 0x559   :  { %v2691_v7 = vpop.f32.mrf.mxu0 }
 0x55b   :  { %v4778_v49 = vpop.f32.mrf.mxu0 }
 0x55c   :  { %v5251_v0 = vpack.i.bf16 %v4778_v49, %v4777_v42 }
 0x55d   :  { %v2694_v41 = vpop.f32.mrf.mxu0 }
 0x55e   :  { %v5261_v9 = vpack.i.bf16 %v2694_v41, %v2691_v7  ;;  %5252 = vrot.lane.b32.xlu1 %v5251_v0, %s5712_s25 }
 0x560   :  { %5262 = vrot.lane.b32.xlu0 %v5261_v9, %s5712_s25  ;;  %v4793_v52 = vpop.f32.mrf.mxu1 }
 0x562   :  { %v2768_v60 = vpop.f32.mrf.mxu1 }
 0x564   :  { %v4781_v55 = vpop.f32.mrf.mxu0  ;;  %v4794_v61 = vpop.f32.mrf.mxu1 }
 0x565   :  { %v5256_v47 = vpack.i.bf16 %v4794_v61, %v4793_v52  ;;  %v5193_v31 = vpop.permute.xlu1 %5192 }
 0x566   :  { %v2707_v63 = vpop.f32.mrf.mxu0  ;;  %v2771_v53 = vpop.f32.mrf.mxu1  ;;  %v5195_v21 = vunpack.i.h.bf16 %v5193_v31  ;;  %v5194_v14 = vunpack.i.l.bf16 %v5193_v31 }
 0x567   :  { %v5266_v22 = vpack.i.bf16 %v2771_v53, %v2768_v60  ;;  %5257 = vrot.lane.b32.xlu1 %v5256_v47, %s5713_s26  ;;  %v5203_v23 = vpop.permute.xlu0 %5202 }
 0x568   :  { %v4782_v38 = vpop.f32.mrf.mxu0  ;;  %v5205_v59 = vunpack.i.h.bf16 %v5203_v23  ;;  %v5204_v34 = vunpack.i.l.bf16 %v5203_v23  ;;  %v2975_v7 = vsel %vm663_vm1, %v7145_v36, %v5195_v21  ;;  %v2974_v49 = vsel %vm663_vm1, %v7141_v29, %v5194_v14 }
 0x569   :  { %v5271_v1 = vpack.i.bf16 %v4782_v38, %v4781_v55  ;;  %5267 = vrot.lane.b32.xlu0 %v5266_v22, %s5713_s26  ;;  %v5198_v45 = vpop.permute.xlu1 %5197 }
 0x56a   :  { %v2710_v32 = vpop.f32.mrf.mxu0  ;;  %v5200_v56 = vunpack.i.h.bf16 %v5198_v45  ;;  %v5199_v50 = vunpack.i.l.bf16 %v5198_v45  ;;  %v2973_v52 = vsel %vm663_vm1, %v7147_v5, %v5205_v59  ;;  %v2972_v60 = vsel %vm663_vm1, %v7143_v6, %v5204_v34 }
 0x56b   :  { %v5276_v15 = vpack.i.bf16 %v2710_v32, %v2707_v63  ;;  %5272 = vrot.lane.b32.xlu1 %v5271_v1, %s5712_s25  ;;  %v4797_v44 = vpop.f32.mrf.mxu1  ;;  %v5208_v37 = vpop.permute.xlu0 %5207 }
 0x56c   :  { %v5209_v39 = vunpack.i.l.bf16 %v5208_v37  ;;  %v5210_v30 = vunpack.i.h.bf16 %v5208_v37  ;;  %v2984_v55 = vsel %vm2980_vm2, %v2975_v7, %v5200_v56  ;;  %v2983_v36 = vsel %vm2980_vm2, %v2974_v49, %v5199_v50 }
 0x56d   :  { %5277 = vrot.lane.b32.xlu0 %v5276_v15, %s5712_s25  ;;  %v2784_v28 = vpop.f32.mrf.mxu1 }
 0x56e   :  { %v2981_v63 = vsel %vm2980_vm2, %v2972_v60, %v5209_v39  ;;  %v2982_v38 = vsel %vm2980_vm2, %v2973_v52, %v5210_v30 }
 0x56f   :  { %v4798_v54 = vpop.f32.mrf.mxu1 }
 0x570   :  { %v5296_v10 = vpack.i.bf16 %v4798_v54, %v4797_v44 }
 0x571   :  { %v2787_v51 = vpop.f32.mrf.mxu1 }
 0x572   :  { %v5291_v18 = vpack.i.bf16 %v2787_v51, %v2784_v28 }
 0x578   :  { %v7203_v43 = vpop.permute.xlu1 %5212 }
 0x579   :  { %v5215_v44 = vunpack.i.h.bf16 %v7203_v43  ;;  %v5214_v45 = vunpack.i.l.bf16 %v7203_v43 }
 0x57a   :  { %v7205_v8 = vpop.permute.xlu0 %5222 }
 0x57b   :  { %v5225_v37 = vunpack.i.h.bf16 %v7205_v8  ;;  %v5224_v28 = vunpack.i.l.bf16 %v7205_v8  ;;  %v2979_v21 = vsel %vm663_vm1, %v7153_v11, %v5215_v44  ;;  %v2978_v14 = vsel %vm663_vm1, %v7149_v46, %v5214_v45 }
 0x57c   :  { %v7207_v62 = vpop.permute.xlu1 %5217 }
 0x57d   :  { %v2977_v43 = vsel %vm663_vm1, %v7155_v26, %v5225_v37  ;;  %v2976_v8 = vsel %vm663_vm1, %v7151_v16, %v5224_v28 }
 0x57e   :  { %v5228_v33 = vpop.permute.xlu0 %5227 }
 0x57f   :  { %v5230_v54 = vunpack.i.h.bf16 %v5228_v33 }
 0x580   :  { %v4809_v20 = vpop.f32.mrf.mxu0 }
 0x581   :  { %v2986_v11 = vsel %vm2980_vm2, %v2977_v43, %v5230_v54 }
 0x582   :  { %v2845_v27 = vpop.f32.mrf.mxu0 }
 0x584   :  { %v4810_v58 = vpop.f32.mrf.mxu0 }
 0x585   :  { %v5281_v12 = vpack.i.bf16 %v4810_v58, %v4809_v20  ;;  %v5220_v20 = vunpack.i.h.bf16 %v7207_v62  ;;  %v5229_v58 = vunpack.i.l.bf16 %v5228_v33 }
 0x586   :  { %v2848_v4 = vpop.f32.mrf.mxu0 }
 0x587   :  { %v5286_v13 = vpack.i.bf16 %v2848_v4, %v2845_v27  ;;  %5282 = vrot.lane.b32.xlu1 %v5281_v12, %s5714_s17  ;;  %v5219_v27 = vunpack.i.l.bf16 %v7207_v62  ;;  %v2988_v62 = vsel %vm2980_vm2, %v2979_v21, %v5220_v20  ;;  %v2985_v56 = vsel %vm2980_vm2, %v2976_v8, %v5229_v58 }
 0x588   :  { %v4813_v48 = vpop.f32.mrf.mxu0 }
 0x589   :  { %5287 = vrot.lane.b32.xlu0 %v5286_v13, %s5714_s17 }
 0x58a   :  { %v2861_v40 = vpop.f32.mrf.mxu0 }
 0x58b   :  { %5297 = vrot.lane.b32.xlu1 %v5296_v10, %s5713_s26 }
 0x58c   :  { %v5233_v42 = vpop.permute.xlu1 %5232  ;;  %v4814_v9 = vpop.f32.mrf.mxu0 }
 0x58d   :  { %v5235_v0 = vunpack.i.h.bf16 %v5233_v42  ;;  %v5234_v41 = vunpack.i.l.bf16 %v5233_v42  ;;  %v5306_v61 = vpack.i.bf16 %v4814_v9, %v4813_v48  ;;  %5292 = vrot.lane.b32.xlu0 %v5291_v18, %s5713_s26  ;;  %v2987_v48 = vsel %vm2980_vm2, %v2978_v14, %v5219_v27 }
 0x58e   :  { %v5238_v47 = vpop.permute.xlu0 %5237  ;;  %v2864_v22 = vpop.f32.mrf.mxu0 }
 0x58f   :  { %v5240_v29 = vunpack.i.h.bf16 %v5238_v47  ;;  %v5239_v53 = vunpack.i.l.bf16 %v5238_v47  ;;  %v2993_v5 = vsel %vm2989_vm3, %v2984_v55, %v5235_v0  ;;  %v2992_v1 = vsel %vm2989_vm3, %v2983_v36, %v5234_v41  ;;  %5307 = vrot.lane.b32.xlu1 %v5306_v61, %s5714_s17 }
 0x590   :  { %v5301_v6 = vpack.i.bf16 %v2864_v22, %v2861_v40  ;;  %v3119_v23 = vpack.c.bf16 %v2993_v5, %v2992_v1 }
 0x591   :  { %v2990_v32 = vsel %vm2989_vm3, %v2981_v63, %v5239_v53  ;;  %v2991_v15 = vsel %vm2989_vm3, %v2982_v38, %v5240_v29 }
 0x592   :  { %v3118_v31 = vpack.c.bf16 %v2991_v15, %v2990_v32  ;;  %5302 = vrot.lane.b32.xlu0 %v5301_v6, %s5714_s17 }
 0x594   :  { %4823 = vmatprep.mubr.msk.bf16.mxu1 %vm129_vm0, %v3118_v31 }
 0x595   :  { %4824 = vmatmul.mubr.msk.bf16.vlgmr.msra.gmra.mxu1 %vm129_vm0, %v3119_v23 }
 0x59c   :  { %v5243_v12 = vpop.permute.xlu1 %5242 }
 0x59d   :  { %v5245_v4 = vunpack.i.h.bf16 %v5243_v12  ;;  %v5244_v13 = vunpack.i.l.bf16 %v5243_v12 }
 0x59e   :  { %v5248_v51 = vpop.permute.xlu0 %5247 }
 0x59f   :  { %v5250_v59 = vunpack.i.h.bf16 %v5248_v51  ;;  %v5249_v34 = vunpack.i.l.bf16 %v5248_v51  ;;  %v2997_v10 = vsel %vm2989_vm3, %v2988_v62, %v5245_v4  ;;  %v2996_v46 = vsel %vm2989_vm3, %v2987_v48, %v5244_v13 }
 0x5a0   :  { %v3121_v50 = vpack.c.bf16 %v2997_v10, %v2996_v46 }
 0x5a1   :  { %v2994_v26 = vsel %vm2989_vm3, %v2985_v56, %v5249_v34  ;;  %v2995_v33 = vsel %vm2989_vm3, %v2986_v11, %v5250_v59 }
 0x5a2   :  { %v3120_v16 = vpack.c.bf16 %v2995_v33, %v2994_v26 }
 0x5a4   :  { %4827 = vmatprep.mubr.msk.bf16.mxu1 %vm129_vm0, %v3120_v16 }
 0x5a5   :  { %4828 = vmatmul.mubr.msk.bf16.gmra.mxu1 %vm129_vm0, %v3121_v50 }
 0x5d0   :  { %v5253_v39 = vpop.permute.xlu1 %5252 }
 0x5d1   :  { %v5255_v7 = vunpack.i.h.bf16 %v5253_v39  ;;  %v5254_v49 = vunpack.i.l.bf16 %v5253_v39 }
 0x5d2   :  { %v5263_v40 = vpop.permute.xlu0 %5262 }
 0x5d3   :  { %v5265_v0 = vunpack.i.h.bf16 %v5263_v40  ;;  %v5264_v41 = vunpack.i.l.bf16 %v5263_v40  ;;  %v3097_v29 = vsel %vm663_vm1, %v7185_v35, %v5255_v7  ;;  %v3096_v53 = vsel %vm663_vm1, %v7181_v25, %v5254_v49  ;;  %v7296_v40 = vld [vmem:[%s8016_s4] ss:$0 sm:$0xff] }
 0x5d4   :  { %v5691_v49 = vld [vmem:[%s8013_s0] sm:$0xff] }
 0x5d5   :  { %v3095_v22 = vsel %vm663_vm1, %v7187_v2, %v5265_v0  ;;  %v3094_v38 = vsel %vm663_vm1, %v7183_v3, %v5264_v41 }
 0x5d9   :  { %v5258_v30 = vpop.permute.xlu1 %5257 }
 0x5da   :  { %v5260_v52 = vunpack.i.h.bf16 %v5258_v30  ;;  %v5259_v60 = vunpack.i.l.bf16 %v5258_v30 }
 0x5db   :  { %v5268_v18 = vpop.permute.xlu0 %5267 }
 0x5dc   :  { %v5270_v55 = vunpack.i.h.bf16 %v5268_v18  ;;  %v5269_v61 = vunpack.i.l.bf16 %v5268_v18  ;;  %v3105_v1 = vsel %vm2980_vm2, %v3097_v29, %v5260_v52  ;;  %v3104_v6 = vsel %vm2980_vm2, %v3096_v53, %v5259_v60 }
 0x5dd   :  { %v5273_v42 = vpop.permute.xlu1 %5272 }
 0x5de   :  { %v3103_v31 = vsel %vm2980_vm2, %v3095_v22, %v5270_v55  ;;  %v3102_v35 = vsel %vm2980_vm2, %v3094_v38, %v5269_v61  ;;  %v5275_v2 = vunpack.i.h.bf16 %v5273_v42  ;;  %v5274_v37 = vunpack.i.l.bf16 %v5273_v42 }
 0x5df   :  { %v5278_v9 = vpop.permute.xlu0 %5277 }
 0x5e0   :  { %v5280_v28 = vunpack.i.h.bf16 %v5278_v9  ;;  %v5279_v20 = vunpack.i.l.bf16 %v5278_v9  ;;  %v3101_v51 = vsel %vm663_vm1, %v7193_v19, %v5275_v2  ;;  %v3100_v62 = vsel %vm663_vm1, %v7189_v24, %v5274_v37  ;;  %v5692_v9 = vld [vmem:[%s8013_s0 + $0x10] sm:$0xff]  ;;  %v5697_v37 = vld [vmem:[%s8013_s0 + $0x28] sm:$0xff] }
 0x5e2   :  { %v3099_v48 = vsel %vm663_vm1, %v7195_v57, %v5280_v28  ;;  %v3098_v59 = vsel %vm663_vm1, %v7191_v17, %v5279_v20  ;;  %v5698_v20 = vld [vmem:[%s8013_s0 + $0x38] sm:$0xff] }
 0x5f9   :  { %v5283_v47 = vpop.permute.xlu1 %5282 }
 0x5fa   :  { %v5285_v36 = vunpack.i.h.bf16 %v5283_v47  ;;  %v5284_v63 = vunpack.i.l.bf16 %v5283_v47  ;;  %v5693_v47 = vld [vmem:[%s8013_s0 + $0x8] sm:$0xff] }
 0x5fb   :  { %v5288_v5 = vpop.permute.xlu0 %5287 }
 0x5fc   :  { %v5290_v32 = vunpack.i.h.bf16 %v5288_v5  ;;  %v5289_v15 = vunpack.i.l.bf16 %v5288_v5  ;;  %v3112_v23 = vsel %vm2989_vm3, %v3104_v6, %v5284_v63  ;;  %v3113_v25 = vsel %vm2989_vm3, %v3105_v1, %v5285_v36  ;;  %v5694_v63 = vld [vmem:[%s8013_s0 + $0x18] sm:$0xff] }
 0x5fd   :  { %v5298_v44 = vpop.permute.xlu1 %5297  ;;  %v3123_v58 = vpack.c.bf16 %v3113_v25, %v3112_v23  ;;  %v5696_v25 = vld [vmem:[%s8013_s0 + $0x30] sm:$0xff] }
 0x5fe   :  { %v3110_v45 = vsel %vm2989_vm3, %v3102_v35, %v5289_v15  ;;  %v3111_v3 = vsel %vm2989_vm3, %v3103_v31, %v5290_v32  ;;  %v5300_v12 = vunpack.i.h.bf16 %v5298_v44  ;;  %v5299_v4 = vunpack.i.l.bf16 %v5298_v44  ;;  %v5695_v31 = vld [vmem:[%s8013_s0 + $0x20] sm:$0xff] }
 0x5ff   :  { %v3122_v27 = vpack.c.bf16 %v3111_v3, %v3110_v45  ;;  %v5293_v54 = vpop.permute.xlu0 %5292 }
 0x600   :  { %v5295_v13 = vunpack.i.h.bf16 %v5293_v54  ;;  %v5294_v21 = vunpack.i.l.bf16 %v5293_v54  ;;  %v3109_v56 = vsel %vm2980_vm2, %v3101_v51, %v5300_v12  ;;  %v3108_v11 = vsel %vm2980_vm2, %v3100_v62, %v5299_v4 }
 0x601   :  { %4831 = vmatprep.mubr.msk.bf16.mxu1 %vm129_vm0, %v3122_v27  ;;  %v5308_v14 = vpop.permute.xlu1 %5307 }
 0x602   :  { %v5310_v43 = vunpack.i.h.bf16 %v5308_v14  ;;  %v5309_v8 = vunpack.i.l.bf16 %v5308_v14  ;;  %4832 = vmatmul.mubr.msk.bf16.gmra.mxu1 %vm129_vm0, %v3123_v58  ;;  %v3107_v26 = vsel %vm2980_vm2, %v3099_v48, %v5295_v13  ;;  %v3106_v19 = vsel %vm2980_vm2, %v3098_v59, %v5294_v21  ;;  %v5700_v59 = vld [vmem:[%s8013_s0 + $0x50] sm:$0xff] }
 0x604   :  { %v5303_v34 = vpop.permute.xlu0 %5302  ;;  %v3116_v33 = vsel %vm2989_vm3, %v3108_v11, %v5309_v8  ;;  %v3117_v24 = vsel %vm2989_vm3, %v3109_v56, %v5310_v43  ;;  %v5699_v8 = vld [vmem:[%s8013_s0 + $0x40] sm:$0xff] }
 0x605   :  { %v5305_v10 = vunpack.i.h.bf16 %v5303_v34  ;;  %v5304_v46 = vunpack.i.l.bf16 %v5303_v34  ;;  %v3125_v50 = vpack.c.bf16 %v3117_v24, %v3116_v33 }
 0x607   :  { %v3114_v57 = vsel %vm2989_vm3, %v3106_v19, %v5304_v46  ;;  %v3115_v16 = vsel %vm2989_vm3, %v3107_v26, %v5305_v10  ;;  %v5701_v46 = vld [vmem:[%s8013_s0 + $0x48] sm:$0xff]  ;;  %v5702_v19 = vld [vmem:[%s8013_s0 + $0x58] sm:$0xff] }
 0x608   :  { %v3124_v17 = vpack.c.bf16 %v3115_v16, %v3114_v57 }
 0x60a   :  { %4835 = vmatprep.mubr.msk.bf16.mxu1 %vm129_vm0, %v3124_v17 }
 0x60b   :  { %4836 = vmatmul.mubr.msk.bf16.gmra.mxu1 %vm129_vm0, %v3125_v50 }
 0x655   :  { %v4825_v39 = vpop.f32.mrf.mxu1 }
 0x656   :  { %v3232_v18 = vadd.f32 %v4825_v39, %v7296_v40 }
 0x657   :  { %v3223_v30 = vpop.f32.mrf.mxu1 }
 0x658   :  { %v3224_v42 = vadd.f32 %v7296_v40, %v3223_v30  ;;  %v7308_v52 = vadd.f32 %v5692_v9, %v3232_v18  ;;  %v5703_v30 = vld [vmem:[%s8013_s0 + $0x60] sm:$0xff] }
 0x659   :  { %v4826_v7 = vpop.f32.mrf.mxu1 }
 0x65a   :  { %v7303_v0 = vadd.f32 %v5691_v49, %v3224_v42  ;;  %v3235_v60 = vadd.f32 %v4826_v7, %v7296_v40  ;;  %v3310_v22 = vsel %vm129_vm0, %v7308_v52, 0.0  ;;  %v5704_v49 = vld [vmem:[%s8013_s0 + $0x70] sm:$0xff] }
 0x65b   :  { %v3226_v41 = vpop.f32.mrf.mxu1 }
 0x65c   :  { %v3227_v55 = vadd.f32 %v7296_v40, %v3226_v41  ;;  %v3304_v61 = vsel %vm129_vm0, %v7303_v0, 0.0  ;;  %v7322_v29 = vadd.f32 %v5694_v63, %v3235_v60  ;;  %v5706_v63 = vld [vmem:[%s8013_s0 + $0x78] sm:$0xff] }
 0x65d   :  { %3305 = vadd.xlane.f32.xlu0 %v3304_v61  ;;  %v5705_v61 = vld [vmem:[%s8013_s0 + $0x68] sm:$0xff] }
 0x65e   :  { %v7317_v36 = vadd.f32 %v5693_v47, %v3227_v55  ;;  %v3313_v38 = vsel %vm129_vm0, %v7322_v29, 0.0 }
 0x660   :  { %v3307_v53 = vsel %vm129_vm0, %v7317_v36, 0.0 }
 0x661   :  { %3308 = vadd.xlane.f32.xlu1 %v3307_v53  ;;  %3311 = vadd.xlane.f32.xlu0 %v3310_v22 }
 0x665   :  { %v4829_v5 = vpop.f32.mrf.mxu1  ;;  %3314 = vadd.xlane.f32.xlu0 %v3313_v38 }
 0x666   :  { %v3248_v6 = vadd.f32 %v4829_v5, %v7296_v40 }
 0x667   :  { %v3239_v1 = vpop.f32.mrf.mxu1 }
 0x668   :  { %v3240_v32 = vadd.f32 %v7296_v40, %v3239_v1  ;;  %v7340_v44 = vadd.f32 %v5696_v25, %v3248_v6 }
 0x669   :  { %v4830_v15 = vpop.f32.mrf.mxu1 }
 0x66a   :  { %v7335_v35 = vadd.f32 %v5695_v31, %v3240_v32  ;;  %v3251_v2 = vadd.f32 %v4830_v15, %v7296_v40  ;;  %v3322_v54 = vsel %vm129_vm0, %v7340_v44, 0.0 }
 0x66b   :  { %v3242_v23 = vpop.f32.mrf.mxu1 }
 0x66c   :  { %v3243_v45 = vadd.f32 %v7296_v40, %v3242_v23  ;;  %v3316_v3 = vsel %vm129_vm0, %v7335_v35, 0.0  ;;  %v7354_v27 = vadd.f32 %v5698_v20, %v3251_v2 }
 0x66d   :  { %3317 = vadd.xlane.f32.xlu1 %v3316_v3 }
 0x66e   :  { %v7349_v28 = vadd.f32 %v5697_v37, %v3243_v45  ;;  %v3325_v12 = vsel %vm129_vm0, %v7354_v27, 0.0 }
 0x670   :  { %v3319_v58 = vsel %vm129_vm0, %v7349_v28, 0.0 }
 0x671   :  { %3323 = vadd.xlane.f32.xlu1 %v3322_v54  ;;  %3320 = vadd.xlane.f32.xlu0 %v3319_v58 }
 0x675   :  { %3326 = vadd.xlane.f32.xlu0 %v3325_v12 }
 0x6c2   :  { %v4833_v4 = vpop.f32.mrf.mxu1 }
 0x6c3   :  { %v3264_v21 = vadd.f32 %v4833_v4, %v7296_v40 }
 0x6c4   :  { %v3255_v13 = vpop.f32.mrf.mxu1 }
 0x6c5   :  { %v3256_v14 = vadd.f32 %v7296_v40, %v3255_v13  ;;  %v7373_v34 = vadd.f32 %v5700_v59, %v3264_v21 }
 0x6c6   :  { %v4834_v43 = vpop.f32.mrf.mxu1 }
 0x6c7   :  { %v7367_v51 = vadd.f32 %v5699_v8, %v3256_v14  ;;  %v3267_v62 = vadd.f32 %v4834_v43, %v7296_v40  ;;  %v3334_v17 = vsel %vm129_vm0, %v7373_v34, 0.0 }
 0x6c8   :  { %v3258_v48 = vpop.f32.mrf.mxu1 }
 0x6c9   :  { %v3259_v56 = vadd.f32 %v7296_v40, %v3258_v48  ;;  %v3328_v11 = vsel %vm129_vm0, %v7367_v51, 0.0  ;;  %v7386_v33 = vadd.f32 %v5702_v19, %v3267_v62 }
 0x6ca   :  { %3329 = vadd.xlane.f32.xlu1 %v3328_v11 }
 0x6cb   :  { %v4837_v10 = vpop.f32.mrf.mxu1  ;;  %v7381_v26 = vadd.f32 %v5701_v46, %v3259_v56  ;;  %v3337_v7 = vsel %vm129_vm0, %v7386_v33, 0.0 }
 0x6cc   :  { %v3280_v57 = vadd.f32 %v4837_v10, %v7296_v40 }
 0x6cd   :  { %v3271_v24 = vpop.f32.mrf.mxu1  ;;  %v3331_v50 = vsel %vm129_vm0, %v7381_v26, 0.0 }
 0x6ce   :  { %v3272_v16 = vadd.f32 %v7296_v40, %v3271_v24  ;;  %3335 = vadd.xlane.f32.xlu1 %v3334_v17  ;;  %3332 = vadd.xlane.f32.xlu0 %v3331_v50  ;;  %v7404_v41 = vadd.f32 %v5704_v49, %v3280_v57  ;;  %v5327_v17 = vld [vmem:[%s8017_s7 + $0x18] sm:$0xff]   ;;  %v5329_v50 = vld [vmem:[%s8017_s7 + $0x8] sm:$0xff]  }
 0x6cf   :  { %v4838_v39 = vpop.f32.mrf.mxu1  ;;  %4839 = vmatprep.subr.bf16.mxu0 %v5327_v17 }
 0x6d0   :  { %v7397_v18 = vadd.f32 %v5703_v30, %v3272_v16  ;;  %v3283_v9 = vadd.f32 %v4838_v39, %v7296_v40  ;;  %4840 = vmatpush3.bf16.msra.mxu0 %v5327_v17  ;;  %v5330_v39 = vld [vmem:[%s8017_s7] sm:$0xff]  }
 0x6d1   :  { %v3274_v42 = vpop.f32.mrf.mxu1 }
 0x6d2   :  { %v3275_v60 = vadd.f32 %v7296_v40, %v3274_v42  ;;  %v3340_v55 = vsel %vm129_vm0, %v7397_v18, 0.0  ;;  %3338 = vadd.xlane.f32.xlu0 %v3337_v7  ;;  %v7418_v53 = vadd.f32 %v5706_v63, %v3283_v9  ;;  %v3346_v40 = vsel %vm129_vm0, %v7404_v41, 0.0 }
 0x6d3   :  { %3341 = vadd.xlane.f32.xlu1 %v3340_v55 }
 0x6d4   :  { %v7413_v47 = vadd.f32 %v5705_v61, %v3275_v60  ;;  %v3349_v38 = vsel %vm129_vm0, %v7418_v53, 0.0 }
 0x6d6   :  { %v3343_v22 = vsel %vm129_vm0, %v7413_v47, 0.0 }
 0x6d7   :  { %3347 = vadd.xlane.f32.xlu1 %v3346_v40  ;;  %3344 = vadd.xlane.f32.xlu0 %v3343_v22 }
 0x6db   :  { %3350 = vadd.xlane.f32.xlu0 %v3349_v38 }
 0x6e6   :  { %v3306_v5 = vpop.xlane.xlu0 %3305 }
 0x6e7   :  { %v3353_v1 = vmul.f32 0.015625, %v3306_v5 }
 0x6e9   :  { %v7427_v6 = vsub.f32 %v7303_v0, %v3353_v1 }
 0x6ea   :  { %v3309_v32 = vpop.xlane.xlu1 %3308  ;;  %v3312_v15 = vpop.xlane.xlu0 %3311 }
 0x6eb   :  { %v3354_v31 = vmul.f32 0.015625, %v3309_v32  ;;  %v3355_v23 = vmul.f32 0.015625, %v3312_v15  ;;  %v3385_v25 = vmul.f32 %v7427_v6, %v7427_v6 }
 0x6ed   :  { %v7432_v2 = vsub.f32 %v7317_v36, %v3354_v31  ;;  %v7435_v45 = vsub.f32 %v7308_v52, %v3355_v23  ;;  %v3401_v3 = vsel %vm129_vm0, %v3385_v25, 0.0 }
 0x6ee   :  { %3402 = vadd.xlane.f32.xlu1 %v3401_v3  ;;  %v3315_v37 = vpop.xlane.xlu0 %3314 }
 0x6ef   :  { %v3356_v20 = vmul.f32 0.015625, %v3315_v37  ;;  %v3386_v0 = vmul.f32 %v7432_v2, %v7432_v2  ;;  %v3387_v54 = vmul.f32 %v7435_v45, %v7435_v45 }
 0x6f1   :  { %v7443_v58 = vsub.f32 %v7322_v29, %v3356_v20  ;;  %v3404_v36 = vsel %vm129_vm0, %v3386_v0, 0.0  ;;  %v3407_v12 = vsel %vm129_vm0, %v3387_v54, 0.0 }
 0x6f2   :  { %3405 = vadd.xlane.f32.xlu0 %v3404_v36  ;;  %3408 = vadd.xlane.f32.xlu1 %v3407_v12 }
 0x6f3   :  { %v3388_v52 = vmul.f32 %v7443_v58, %v7443_v58 }
 0x6f5   :  { %v3410_v4 = vsel %vm129_vm0, %v3388_v52, 0.0 }
 0x6f6   :  { %v3318_v13 = vpop.xlane.xlu1 %3317  ;;  %3411 = vadd.xlane.f32.xlu0 %v3410_v4 }
 0x6f7   :  { %v3357_v21 = vmul.f32 0.015625, %v3318_v13 }
 0x6f9   :  { %v7451_v14 = vsub.f32 %v7335_v35, %v3357_v21 }
 0x6fa   :  { %v3324_v43 = vpop.xlane.xlu1 %3323  ;;  %v3321_v29 = vpop.xlane.xlu0 %3320 }
 0x6fb   :  { %v3359_v8 = vmul.f32 0.015625, %v3324_v43  ;;  %v3358_v62 = vmul.f32 0.015625, %v3321_v29  ;;  %v3389_v48 = vmul.f32 %v7451_v14, %v7451_v14 }
 0x6fd   :  { %v7456_v59 = vsub.f32 %v7340_v44, %v3359_v8  ;;  %v7459_v56 = vsub.f32 %v7349_v28, %v3358_v62  ;;  %v3413_v11 = vsel %vm129_vm0, %v3389_v48, 0.0 }
 0x6fe   :  { %3414 = vadd.xlane.f32.xlu1 %v3413_v11  ;;  %v3327_v10 = vpop.xlane.xlu0 %3326 }
 0x6ff   :  { %v3360_v46 = vmul.f32 0.015625, %v3327_v10  ;;  %v3391_v35 = vmul.f32 %v7456_v59, %v7456_v59  ;;  %v3390_v19 = vmul.f32 %v7459_v56, %v7459_v56 }
 0x701   :  { %v7467_v24 = vsub.f32 %v7354_v27, %v3360_v46  ;;  %v3419_v44 = vsel %vm129_vm0, %v3391_v35, 0.0  ;;  %v3416_v57 = vsel %vm129_vm0, %v3390_v19, 0.0  ;;  %v5328_v27 = vld [vmem:[%s8017_s7 + $0x10] sm:$0xff]  }
 0x702   :  { %3420 = vadd.xlane.f32.xlu1 %v3419_v44  ;;  %3417 = vadd.xlane.f32.xlu0 %v3416_v57 }
 0x703   :  { %v3392_v28 = vmul.f32 %v7467_v24, %v7467_v24  ;;  %4841 = vmatprep.subr.bf16.mxu0 %v5328_v27 }
 0x704   :  { %4842 = vmatpush3.bf16.msra.mxu0 %v5328_v27 }
 0x705   :  { %v3422_v16 = vsel %vm129_vm0, %v3392_v28, 0.0  ;;  %4843 = vmatprep.subr.bf16.mxu0 %v5329_v50 }
 0x706   :  { %3423 = vadd.xlane.f32.xlu0 %v3422_v16 }
 0x708   :  { %4844 = vmatpush3.bf16.msra.mxu0 %v5329_v50 }
 0x709   :  { %4845 = vmatprep.subr.bf16.mxu0 %v5330_v39 }
 0x70c   :  { %4846 = vmatpush3.bf16.msra.mxu0 %v5330_v39 }
 0x753   :  { %v3330_v30 = vpop.xlane.xlu1 %3329 }
 0x754   :  { %v3361_v42 = vmul.f32 0.015625, %v3330_v30 }
 0x756   :  { %v7487_v7 = vsub.f32 %v7367_v51, %v3361_v42 }
 0x757   :  { %v3336_v49 = vpop.xlane.xlu1 %3335  ;;  %v3333_v9 = vpop.xlane.xlu0 %3332 }
 0x758   :  { %v3363_v60 = vmul.f32 0.015625, %v3336_v49  ;;  %v3362_v55 = vmul.f32 0.015625, %v3333_v9  ;;  %v3393_v61 = vmul.f32 %v7487_v7, %v7487_v7  ;;  %v7538_v9 = vld [vmem:[%s8018_s5] ss:$0 sm:$0xff] }
 0x75a   :  { %v7492_v63 = vsub.f32 %v7373_v34, %v3363_v60  ;;  %v7495_v40 = vsub.f32 %v7381_v26, %v3362_v55  ;;  %v3425_v22 = vsel %vm129_vm0, %v3393_v61, 0.0 }
 0x75b   :  { %3426 = vadd.xlane.f32.xlu1 %v3425_v22  ;;  %v3339_v5 = vpop.xlane.xlu0 %3338 }
 0x75c   :  { %v3342_v38 = vpop.xlane.xlu1 %3341  ;;  %v3364_v1 = vmul.f32 0.015625, %v3339_v5  ;;  %v3395_v32 = vmul.f32 %v7492_v63, %v7492_v63  ;;  %v3394_v15 = vmul.f32 %v7495_v40, %v7495_v40 }
 0x75d   :  { %v3365_v51 = vmul.f32 0.015625, %v3342_v38 }
 0x75e   :  { %v7506_v34 = vsub.f32 %v7386_v33, %v3364_v1  ;;  %v3431_v26 = vsel %vm129_vm0, %v3395_v32, 0.0  ;;  %v3428_v23 = vsel %vm129_vm0, %v3394_v15, 0.0 }
 0x75f   :  { %v7503_v31 = vsub.f32 %v7397_v18, %v3365_v51  ;;  %3432 = vadd.xlane.f32.xlu1 %v3431_v26  ;;  %3429 = vadd.xlane.f32.xlu0 %v3428_v23  ;;  %v7546_v26 = vld [vmem:[%s8019_s6] ss:$0 sm:$0xff] }
 0x760   :  { %v3348_v25 = vpop.xlane.xlu1 %3347  ;;  %v3345_v3 = vpop.xlane.xlu0 %3344  ;;  %v3396_v18 = vmul.f32 %v7506_v34, %v7506_v34 }
 0x761   :  { %v3367_v37 = vmul.f32 0.015625, %v3348_v25  ;;  %v3366_v20 = vmul.f32 0.015625, %v3345_v3  ;;  %v3397_v0 = vmul.f32 %v7503_v31, %v7503_v31 }
 0x762   :  { %v3434_v12 = vsel %vm129_vm0, %v3396_v18, 0.0 }
 0x763   :  { %v7515_v54 = vsub.f32 %v7404_v41, %v3367_v37  ;;  %v7518_v33 = vsub.f32 %v7413_v47, %v3366_v20  ;;  %v3437_v36 = vsel %vm129_vm0, %v3397_v0, 0.0  ;;  %3435 = vadd.xlane.f32.xlu0 %v3434_v12 }
 0x764   :  { %3438 = vadd.xlane.f32.xlu1 %v3437_v36  ;;  %v3351_v52 = vpop.xlane.xlu0 %3350 }
 0x765   :  { %v3368_v4 = vmul.f32 0.015625, %v3351_v52  ;;  %v3399_v13 = vmul.f32 %v7515_v54, %v7515_v54  ;;  %v3398_v21 = vmul.f32 %v7518_v33, %v7518_v33 }
 0x767   :  { %v7527_v41 = vsub.f32 %v7418_v53, %v3368_v4  ;;  %v3443_v47 = vsel %vm129_vm0, %v3399_v13, 0.0  ;;  %v3440_v43 = vsel %vm129_vm0, %v3398_v21, 0.0 }
 0x768   :  { %3444 = vadd.xlane.f32.xlu1 %v3443_v47  ;;  %3441 = vadd.xlane.f32.xlu0 %v3440_v43 }
 0x769   :  { %v3400_v29 = vmul.f32 %v7527_v41, %v7527_v41 }
 0x76b   :  { %v3446_v8 = vsel %vm129_vm0, %v3400_v29, 0.0 }
 0x76c   :  { %3447 = vadd.xlane.f32.xlu0 %v3446_v8 }
 0x777   :  { %v3403_v62 = vpop.xlane.xlu1 %3402 }
 0x778   :  { %v3449_v48 = vmul.f32 0.015625, %v3403_v62 }
 0x77a   :  { %v3465_v11 = vadd.f32 1e-06, %v3449_v48 }
 0x77b   :  { %v3409_v10 = vpop.xlane.xlu1 %3408  ;;  %v3406_v46 = vpop.xlane.xlu0 %3405 }
 0x77c   :  { %5595 = vrsqrt.f32 %v3465_v11  ;;  %v3451_v53 = vmul.f32 0.015625, %v3409_v10  ;;  %v3450_v35 = vmul.f32 0.015625, %v3406_v46 }
 0x77e   :  { %v3467_v19 = vadd.f32 1e-06, %v3451_v53  ;;  %v3466_v44 = vadd.f32 1e-06, %v3450_v35  ;;  %v5331_v35 = vld [vmem:[%s8020_s9 + $0x38] sm:$0xff]  }
 0x77f   :  { %v3412_v57 = vpop.xlane.xlu0 %3411  ;;  %4863 = vmatprep.subr.bf16.mxu0 %v5331_v35  ;;  %4895 = vmatprep.subr.bf16.mxu1 %v5331_v35 }
 0x780   :  { %5597 = vrsqrt.f32 %v3467_v19  ;;  %v3452_v28 = vmul.f32 0.015625, %v3412_v57  ;;  %4903 = vmatpush3.bf16.msra.mxu1 %v5331_v35  ;;  %v5332_v19 = vld [vmem:[%s8020_s9 + $0x30] sm:$0xff]  }
 0x781   :  { %5599 = vrsqrt.f32 %v3466_v44  ;;  %4896 = vmatprep.subr.bf16.mxu1 %v5332_v19  ;;  %v5333_v44 = vld [vmem:[%s8020_s9 + $0x28] sm:$0xff]  }
 0x782   :  { %v3468_v16 = vadd.f32 1e-06, %v3452_v28 }
 0x784   :  { %5601 = vrsqrt.f32 %v3468_v16  ;;  %4904 = vmatpush3.bf16.msra.mxu1 %v5332_v19  ;;  %v5334_v16 = vld [vmem:[%s8020_s9 + $0x20] sm:$0xff]  }
 0x785   :  { %4897 = vmatprep.subr.bf16.mxu1 %v5333_v44 }
 0x787   :  { %v3415_v17 = vpop.xlane.xlu1 %3414 }
 0x788   :  { %v3453_v27 = vmul.f32 0.015625, %v3415_v17  ;;  %4905 = vmatpush3.bf16.msra.mxu1 %v5333_v44 }
 0x789   :  { %v5596_v50 = vpop.eup %5595  ;;  %4898 = vmatprep.subr.bf16.mxu1 %v5334_v16 }
 0x78a   :  { %v3469_v39 = vadd.f32 1e-06, %v3453_v27  ;;  %v3497_v49 = vmul.f32 %v5596_v50, %v7427_v6 }
 0x78b   :  { %v3421_v30 = vpop.xlane.xlu1 %3420  ;;  %v3418_v42 = vpop.xlane.xlu0 %3417 }
 0x78c   :  { %5603 = vrsqrt.f32 %v3469_v39  ;;  %v3455_v60 = vmul.f32 0.015625, %v3421_v30  ;;  %v3454_v55 = vmul.f32 0.015625, %v3418_v42  ;;  %v3519_v15 = vmul.f32 %v7538_v9, %v3497_v49  ;;  %4906 = vmatpush3.bf16.msra.mxu1 %v5334_v16  ;;  %v5335_v42 = vld [vmem:[%s8020_s9 + $0x18] sm:$0xff]  }
 0x78d   :  { %v5598_v61 = vpop.eup %5597  ;;  %4899 = vmatprep.subr.bf16.mxu1 %v5335_v42 }
 0x78e   :  { %v5600_v22 = vpop.eup %5599  ;;  %v3499_v38 = vmul.f32 %v5598_v61, %v7435_v45  ;;  %v3471_v5 = vadd.f32 1e-06, %v3455_v60  ;;  %v3470_v51 = vadd.f32 1e-06, %v3454_v55 }
 0x78f   :  { %v3424_v1 = vpop.xlane.xlu0 %3423  ;;  %v3498_v32 = vmul.f32 %v5600_v22, %v7432_v2  ;;  %v7552_v2 = vadd.f32 %v7546_v26, %v3519_v15 }
 0x790   :  { %5605 = vrsqrt.f32 %v3471_v5  ;;  %v3456_v6 = vmul.f32 0.015625, %v3424_v1  ;;  %v3521_v45 = vmul.f32 %v7538_v9, %v3499_v38  ;;  %4907 = vmatpush3.bf16.msra.mxu1 %v5335_v42  ;;  %v5336_v5 = vld [vmem:[%s8020_s9 + $0x10] sm:$0xff]  }
 0x791   :  { %v5602_v23 = vpop.eup %5601  ;;  %5607 = vrsqrt.f32 %v3470_v51  ;;  %v3520_v25 = vmul.f32 %v7538_v9, %v3498_v32  ;;  %4900 = vmatprep.subr.bf16.mxu1 %v5336_v5 }
 0x792   :  { %v3500_v3 = vmul.f32 %v5602_v23, %v7443_v58  ;;  %v3472_v37 = vadd.f32 1e-06, %v3456_v6  ;;  %v7561_v36 = vadd.f32 %v7546_v26, %v3521_v45 }
 0x793   :  { %v7555_v20 = vadd.f32 %v7546_v26, %v3520_v25  ;;  %v5337_v25 = vld [vmem:[%s8020_s9 + $0x8] sm:$0xff]  }
 0x794   :  { %v3522_v0 = vmul.f32 %v7538_v9, %v3500_v3  ;;  %5609 = vrsqrt.f32 %v3472_v37  ;;  %4908 = vmatpush3.bf16.msra.mxu1 %v5336_v5 }
 0x795   :  { %v3557_v18 = vpack.c.bf16 %v7555_v20, %v7552_v2  ;;  %4901 = vmatprep.subr.bf16.mxu1 %v5337_v25 }
 0x796   :  { %v7564_v12 = vadd.f32 %v7546_v26, %v3522_v0 }
 0x797   :  { %4847 = vmatprep.mubr.msk.bf16.mxu0 %vm129_vm0, %v3557_v18 }
 0x798   :  { %v3558_v58 = vpack.c.bf16 %v7564_v12, %v7561_v36  ;;  %4909 = vmatpush3.bf16.msra.mxu1 %v5337_v25 }
 0x799   :  { %v5604_v52 = vpop.eup %5603 }
 0x79a   :  { %4848 = vmatmul.mubr.msk.bf16.vlgmr.msra.gmra.mxu0 %vm129_vm0, %v3558_v58  ;;  %v3501_v4 = vmul.f32 %v5604_v52, %v7451_v14  ;;  %v5338_v58 = vld [vmem:[%s8020_s9] sm:$0xff]  }
 0x79b   :  { %4864 = vmatpush3.bf16.msra.mxu0 %v5331_v35  ;;  %4902 = vmatprep.subr.bf16.mxu1 %v5338_v58 }
 0x79c   :  { %v3523_v29 = vmul.f32 %v7538_v9, %v3501_v4  ;;  %4865 = vmatprep.subr.bf16.mxu0 %v5332_v19  ;;  %4910 = vmatpush3.bf16.msra.mxu1 %v5338_v58 }
 0x79d   :  { %v5606_v13 = vpop.eup %5605 }
 0x79e   :  { %v5608_v21 = vpop.eup %5607  ;;  %v3503_v47 = vmul.f32 %v5606_v13, %v7456_v59  ;;  %v7578_v10 = vadd.f32 %v7546_v26, %v3523_v29 }
 0x79f   :  { %v3502_v43 = vmul.f32 %v5608_v21, %v7459_v56  ;;  %4866 = vmatpush3.bf16.msra.mxu0 %v5332_v19 }
 0x7a0   :  { %v3525_v11 = vmul.f32 %v7538_v9, %v3503_v47  ;;  %4867 = vmatprep.subr.bf16.mxu0 %v5333_v44 }
 0x7a1   :  { %v5610_v8 = vpop.eup %5609  ;;  %v3524_v62 = vmul.f32 %v7538_v9, %v3502_v43 }
 0x7a2   :  { %v3504_v48 = vmul.f32 %v5610_v8, %v7467_v24  ;;  %v7587_v56 = vadd.f32 %v7546_v26, %v3525_v11 }
 0x7a3   :  { %v7581_v14 = vadd.f32 %v7546_v26, %v3524_v62  ;;  %4868 = vmatpush3.bf16.msra.mxu0 %v5333_v44 }
 0x7a4   :  { %v3526_v46 = vmul.f32 %v7538_v9, %v3504_v48  ;;  %4869 = vmatprep.subr.bf16.mxu0 %v5334_v16 }
 0x7a5   :  { %v3559_v59 = vpack.c.bf16 %v7581_v14, %v7578_v10 }
 0x7a6   :  { %v7590_v53 = vadd.f32 %v7546_v26, %v3526_v46 }
 0x7a7   :  { %4851 = vmatprep.mubr.msk.bf16.mxu0 %vm129_vm0, %v3559_v59  ;;  %4870 = vmatpush3.bf16.msra.mxu0 %v5334_v16 }
 0x7a8   :  { %v3560_v24 = vpack.c.bf16 %v7590_v53, %v7587_v56  ;;  %4871 = vmatprep.subr.bf16.mxu0 %v5335_v42 }
 0x7aa   :  { %4852 = vmatmul.mubr.msk.bf16.gmra.mxu0 %vm129_vm0, %v3560_v24 }
 0x7ab   :  { %4872 = vmatpush3.bf16.msra.mxu0 %v5335_v42 }
 0x7ac   :  { %4873 = vmatprep.subr.bf16.mxu0 %v5336_v5 }
 0x7af   :  { %4874 = vmatpush3.bf16.msra.mxu0 %v5336_v5 }
 0x7b0   :  { %4875 = vmatprep.subr.bf16.mxu0 %v5337_v25 }
 0x7b3   :  { %4876 = vmatpush3.bf16.msra.mxu0 %v5337_v25 }
 0x7b4   :  { %4877 = vmatprep.subr.bf16.mxu0 %v5338_v58 }
 0x7b7   :  { %4878 = vmatpush3.bf16.msra.mxu0 %v5338_v58 }
 0x7e4   :  { %v3427_v57 = vpop.xlane.xlu1 %3426 }
 0x7e5   :  { %v3457_v28 = vmul.f32 0.015625, %v3427_v57 }
 0x7e7   :  { %v3473_v17 = vadd.f32 1e-06, %v3457_v28 }
 0x7e8   :  { %v3433_v27 = vpop.xlane.xlu1 %3432  ;;  %v3430_v50 = vpop.xlane.xlu0 %3429 }
 0x7e9   :  { %5611 = vrsqrt.f32 %v3473_v17  ;;  %v3459_v39 = vmul.f32 0.015625, %v3433_v27  ;;  %v3458_v30 = vmul.f32 0.015625, %v3430_v50 }
 0x7eb   :  { %v3475_v49 = vadd.f32 1e-06, %v3459_v39  ;;  %v3474_v60 = vadd.f32 1e-06, %v3458_v30 }
 0x7ec   :  { %v3436_v61 = vpop.xlane.xlu0 %3435 }
 0x7ed   :  { %v3439_v55 = vpop.xlane.xlu1 %3438  ;;  %5613 = vrsqrt.f32 %v3475_v49  ;;  %v3460_v38 = vmul.f32 0.015625, %v3436_v61 }
 0x7ee   :  { %v3461_v22 = vmul.f32 0.015625, %v3439_v55  ;;  %5615 = vrsqrt.f32 %v3474_v60 }
 0x7ef   :  { %v3476_v1 = vadd.f32 1e-06, %v3460_v38 }
 0x7f0   :  { %v3477_v51 = vadd.f32 1e-06, %v3461_v22 }
 0x7f1   :  { %v3445_v32 = vpop.xlane.xlu1 %3444  ;;  %v3442_v15 = vpop.xlane.xlu0 %3441 }
 0x7f2   :  { %5617 = vrsqrt.f32 %v3477_v51  ;;  %v3463_v6 = vmul.f32 0.015625, %v3445_v32  ;;  %v3462_v23 = vmul.f32 0.015625, %v3442_v15 }
 0x7f3   :  { %5619 = vrsqrt.f32 %v3476_v1 }
 0x7f4   :  { %v3479_v45 = vadd.f32 1e-06, %v3463_v6  ;;  %v3478_v3 = vadd.f32 1e-06, %v3462_v23 }
 0x7f5   :  { %v3448_v37 = vpop.xlane.xlu0 %3447 }
 0x7f6   :  { %5621 = vrsqrt.f32 %v3479_v45  ;;  %v3464_v0 = vmul.f32 0.015625, %v3448_v37  ;;  %v5612_v18 = vpop.eup %5611 }
 0x7f7   :  { %5623 = vrsqrt.f32 %v3478_v3  ;;  %v3505_v4 = vmul.f32 %v5612_v18, %v7487_v7 }
 0x7f8   :  { %v3480_v52 = vadd.f32 1e-06, %v3464_v0 }
 0x7f9   :  { %v3527_v47 = vmul.f32 %v7538_v9, %v3505_v4 }
 0x7fa   :  { %5625 = vrsqrt.f32 %v3480_v52  ;;  %v5614_v13 = vpop.eup %5613 }
 0x7fb   :  { %v5616_v21 = vpop.eup %5615  ;;  %v3507_v29 = vmul.f32 %v5614_v13, %v7492_v63  ;;  %v7626_v11 = vadd.f32 %v7546_v26, %v3527_v47 }
 0x7fc   :  { %v3506_v43 = vmul.f32 %v5616_v21, %v7495_v40 }
 0x7fd   :  { %v3529_v59 = vmul.f32 %v7538_v9, %v3507_v29 }
 0x7fe   :  { %v3528_v62 = vmul.f32 %v7538_v9, %v3506_v43 }
 0x7ff   :  { %v5618_v8 = vpop.eup %5617  ;;  %v7640_v57 = vadd.f32 %v7546_v26, %v3529_v59 }
 0x800   :  { %v5620_v48 = vpop.eup %5619  ;;  %v7629_v7 = vadd.f32 %v7546_v26, %v3528_v62  ;;  %v3509_v24 = vmul.f32 %v5618_v8, %v7503_v31 }
 0x801   :  { %v3508_v46 = vmul.f32 %v5620_v48, %v7506_v34 }
 0x802   :  { %v3561_v63 = vpack.c.bf16 %v7629_v7, %v7626_v11  ;;  %v3531_v31 = vmul.f32 %v7538_v9, %v3509_v24 }
 0x803   :  { %v5622_v35 = vpop.eup %5621  ;;  %v3530_v40 = vmul.f32 %v7538_v9, %v3508_v46 }
 0x804   :  { %v5624_v19 = vpop.eup %5623  ;;  %v3511_v44 = vmul.f32 %v5622_v35, %v7515_v54  ;;  %4855 = vmatprep.mubr.msk.bf16.mxu0 %vm129_vm0, %v3561_v63  ;;  %v7654_v39 = vadd.f32 %v7546_v26, %v3531_v31 }
 0x805   :  { %v7643_v34 = vadd.f32 %v7546_v26, %v3530_v40  ;;  %v3510_v28 = vmul.f32 %v5624_v19, %v7518_v33 }
 0x806   :  { %v3533_v50 = vmul.f32 %v7538_v9, %v3511_v44 }
 0x807   :  { %v5626_v16 = vpop.eup %5625  ;;  %v3562_v17 = vpack.c.bf16 %v7643_v34, %v7640_v57  ;;  %v3532_v27 = vmul.f32 %v7538_v9, %v3510_v28 }
 0x808   :  { %v3512_v54 = vmul.f32 %v5626_v16, %v7527_v41  ;;  %v7663_v49 = vadd.f32 %v7546_v26, %v3533_v50 }
 0x809   :  { %4856 = vmatmul.mubr.msk.bf16.gmra.mxu0 %vm129_vm0, %v3562_v17  ;;  %v7657_v30 = vadd.f32 %v7546_v26, %v3532_v27 }
 0x80a   :  { %v3534_v33 = vmul.f32 %v7538_v9, %v3512_v54  ;;  %v7675_v9 = vld [vmem:[%s8021_s8] ss:$0 sm:$0xff] }
 0x80b   :  { %v3563_v42 = vpack.c.bf16 %v7657_v30, %v7654_v39 }
 0x80c   :  { %v7666_v41 = vadd.f32 %v7546_v26, %v3534_v33 }
 0x80d   :  { %4859 = vmatprep.mubr.msk.bf16.mxu0 %vm129_vm0, %v3563_v42 }
 0x80e   :  { %v3564_v60 = vpack.c.bf16 %v7666_v41, %v7663_v49 }
 0x811   :  { %4860 = vmatmul.mubr.msk.bf16.gmra.mxu0 %vm129_vm0, %v3564_v60 }
 0x85a   :  { %v4849_v55 = vpop.f32.mrf.mxu0 }
 0x85b   :  { %v3671_v61 = vadd.f32 %v4849_v55, %v7675_v9 }
 0x85c   :  { %v3662_v22 = vpop.f32.mrf.mxu0 }
 0x85d   :  { %v3663_v38 = vadd.f32 %v7675_v9, %v3662_v22  ;;  %v3744_v26 = vmul.f32 0.70710677, %v3671_v61  ;;  %v3727_v19 = vmul.f32 0.5, %v3671_v61 }
 0x85e   :  { %v4850_v5 = vpop.f32.mrf.mxu0 }
 0x85f   :  { %v3742_v51 = vmul.f32 0.70710677, %v3663_v38  ;;  %v3674_v1 = vadd.f32 %v4850_v5, %v7675_v9  ;;  %v3725_v24 = vmul.f32 0.5, %v3663_v38 }
 0x860   :  { %v3665_v32 = vpop.f32.mrf.mxu0 }
 0x861   :  { %5627 = verf.f32 %v3742_v51  ;;  %v3745_v15 = vmul.f32 0.70710677, %v3674_v1  ;;  %v3666_v6 = vadd.f32 %v7675_v9, %v3665_v32  ;;  %v3728_v46 = vmul.f32 0.5, %v3674_v1 }
 0x862   :  { %5629 = verf.f32 %v3744_v26 }
 0x863   :  { %5631 = verf.f32 %v3745_v15  ;;  %v3743_v23 = vmul.f32 0.70710677, %v3666_v6  ;;  %v3726_v35 = vmul.f32 0.5, %v3666_v6 }
 0x865   :  { %5633 = verf.f32 %v3743_v23 }
 0x86a   :  { %v4853_v25 = vpop.f32.mrf.mxu0 }
 0x86b   :  { %v3687_v45 = vadd.f32 %v4853_v25, %v7675_v9 }
 0x86c   :  { %v3678_v3 = vpop.f32.mrf.mxu0 }
 0x86d   :  { %v3748_v37 = vmul.f32 0.70710677, %v3687_v45  ;;  %v3679_v0 = vadd.f32 %v7675_v9, %v3678_v3  ;;  %v3731_v51 = vmul.f32 0.5, %v3687_v45 }
 0x86e   :  { %v5628_v18 = vpop.eup %5627  ;;  %v4854_v58 = vpop.f32.mrf.mxu0 }
 0x86f   :  { %v5630_v52 = vpop.eup %5629  ;;  %v3746_v13 = vmul.f32 0.70710677, %v3679_v0  ;;  %v3690_v21 = vadd.f32 %v4854_v58, %v7675_v9  ;;  %v3774_v43 = vadd.f32 1.0, %v5628_v18  ;;  %5635 = verf.f32 %v3748_v37 }
 0x870   :  { %v5632_v4 = vpop.eup %5631  ;;  %v3681_v47 = vpop.f32.mrf.mxu0  ;;  %v3776_v48 = vadd.f32 1.0, %v5630_v52  ;;  %v3729_v26 = vmul.f32 0.5, %v3679_v0 }
 0x871   :  { %v3777_v29 = vadd.f32 1.0, %v5632_v4  ;;  %v3682_v8 = vadd.f32 %v7675_v9, %v3681_v47  ;;  %5637 = verf.f32 %v3746_v13  ;;  %v3749_v59 = vmul.f32 0.70710677, %v3690_v21 }
 0x872   :  { %v5634_v62 = vpop.eup %5633  ;;  %v3790_v28 = vmul.f32 %v3774_v43, %v3725_v24  ;;  %v3792_v16 = vmul.f32 %v3776_v48, %v3727_v19  ;;  %v3732_v22 = vmul.f32 0.5, %v3690_v21 }
 0x873   :  { %v3775_v63 = vadd.f32 1.0, %v5634_v62  ;;  %v3747_v40 = vmul.f32 0.70710677, %v3682_v8  ;;  %v3793_v44 = vmul.f32 %v3777_v29, %v3728_v46  ;;  %5639 = verf.f32 %v3749_v59 }
 0x874   :  { %v3730_v61 = vmul.f32 0.5, %v3682_v8 }
 0x875   :  { %v3791_v31 = vmul.f32 %v3775_v63, %v3726_v35  ;;  %5641 = verf.f32 %v3747_v40  ;;  %v3807_v27 = vpack.c.bf16 %v3793_v44, %v3792_v16 }
 0x877   :  { %v3806_v17 = vpack.c.bf16 %v3791_v31, %v3790_v28 }
 0x879   :  { %4879 = vmatprep.mubr.bf16.mxu0 %v3806_v17 }
 0x87a   :  { %4880 = vmatmul.mubr.bf16.vlgmr.msra.gmra.mxu0 %v3807_v27 }
 0x87c   :  { %v5636_v54 = vpop.eup %5635 }
 0x87d   :  { %v3780_v55 = vadd.f32 1.0, %v5636_v54 }
 0x87e   :  { %v5638_v50 = vpop.eup %5637 }
 0x87f   :  { %v3778_v42 = vadd.f32 1.0, %v5638_v50  ;;  %v3796_v6 = vmul.f32 %v3780_v55, %v3731_v51 }
 0x880   :  { %v5640_v33 = vpop.eup %5639 }
 0x881   :  { %v3781_v38 = vadd.f32 1.0, %v5640_v33  ;;  %v3794_v32 = vmul.f32 %v3778_v42, %v3729_v26 }
 0x882   :  { %v5642_v60 = vpop.eup %5641 }
 0x883   :  { %v3779_v5 = vadd.f32 1.0, %v5642_v60  ;;  %v3797_v1 = vmul.f32 %v3781_v38, %v3732_v22 }
 0x885   :  { %v3795_v15 = vmul.f32 %v3779_v5, %v3730_v61  ;;  %v3809_v25 = vpack.c.bf16 %v3797_v1, %v3796_v6 }
 0x887   :  { %v3808_v23 = vpack.c.bf16 %v3795_v15, %v3794_v32 }
 0x889   :  { %4883 = vmatprep.mubr.bf16.mxu1 %v3808_v23 }
 0x88a   :  { %4884 = vmatmul.mubr.bf16.vlgmr.msra.gmra.mxu1 %v3809_v25 }
 0x8c9   :  { %v4857_v3 = vpop.f32.mrf.mxu0 }
 0x8ca   :  { %v3703_v37 = vadd.f32 %v4857_v3, %v7675_v9 }
 0x8cb   :  { %v3694_v18 = vpop.f32.mrf.mxu0 }
 0x8cc   :  { %v3695_v58 = vadd.f32 %v7675_v9, %v3694_v18  ;;  %v3752_v52 = vmul.f32 0.70710677, %v3703_v37  ;;  %v3735_v22 = vmul.f32 0.5, %v3703_v37 }
 0x8cd   :  { %v4858_v4 = vpop.f32.mrf.mxu0 }
 0x8ce   :  { %v3750_v0 = vmul.f32 0.70710677, %v3695_v58  ;;  %v3706_v13 = vadd.f32 %v4858_v4, %v7675_v9  ;;  %v3733_v42 = vmul.f32 0.5, %v3695_v58 }
 0x8cf   :  { %v3697_v45 = vpop.f32.mrf.mxu0 }
 0x8d0   :  { %5643 = verf.f32 %v3750_v0  ;;  %v3753_v21 = vmul.f32 0.70710677, %v3706_v13  ;;  %v3698_v47 = vadd.f32 %v7675_v9, %v3697_v45  ;;  %v3736_v33 = vmul.f32 0.5, %v3706_v13 }
 0x8d1   :  { %5645 = verf.f32 %v3752_v52  ;;  %v4861_v43 = vpop.f32.mrf.mxu0 }
 0x8d2   :  { %5647 = verf.f32 %v3753_v21  ;;  %v3751_v29 = vmul.f32 0.70710677, %v3698_v47  ;;  %v3719_v8 = vadd.f32 %v4861_v43, %v7675_v9  ;;  %v3734_v60 = vmul.f32 0.5, %v3698_v47 }
 0x8d3   :  { %v3710_v62 = vpop.f32.mrf.mxu0 }
 0x8d4   :  { %5649 = verf.f32 %v3751_v29  ;;  %v3711_v48 = vadd.f32 %v7675_v9, %v3710_v62  ;;  %v3756_v46 = vmul.f32 0.70710677, %v3719_v8  ;;  %v3739_v37 = vmul.f32 0.5, %v3719_v8  ;;  %v7696_v29 = vld [vmem:[%s8022_s10] ss:$0 sm:$0xff] }
 0x8d5   :  { %v4862_v59 = vpop.f32.mrf.mxu0 }
 0x8d6   :  { %v3754_v24 = vmul.f32 0.70710677, %v3711_v48  ;;  %v3722_v35 = vadd.f32 %v4862_v59, %v7675_v9  ;;  %v3737_v58 = vmul.f32 0.5, %v3711_v48 }
 0x8d7   :  { %v3713_v63 = vpop.f32.mrf.mxu0 }
 0x8d8   :  { %5651 = verf.f32 %v3754_v24  ;;  %v3757_v40 = vmul.f32 0.70710677, %v3722_v35  ;;  %v3714_v19 = vadd.f32 %v7675_v9, %v3713_v63  ;;  %v3740_v18 = vmul.f32 0.5, %v3722_v35 }
 0x8d9   :  { %5653 = verf.f32 %v3756_v46 }
 0x8da   :  { %5655 = verf.f32 %v3757_v40  ;;  %v3755_v44 = vmul.f32 0.70710677, %v3714_v19  ;;  %v3738_v52 = vmul.f32 0.5, %v3714_v19 }
 0x8dc   :  { %5657 = verf.f32 %v3755_v44 }
 0x8dd   :  { %v5644_v28 = vpop.eup %5643 }
 0x8de   :  { %v5646_v31 = vpop.eup %5645  ;;  %v3782_v17 = vadd.f32 1.0, %v5644_v28 }
 0x8df   :  { %v5648_v16 = vpop.eup %5647  ;;  %v3784_v50 = vadd.f32 1.0, %v5646_v31 }
 0x8e0   :  { %v3785_v27 = vadd.f32 1.0, %v5648_v16  ;;  %v3798_v26 = vmul.f32 %v3782_v17, %v3733_v42 }
 0x8e1   :  { %v5650_v54 = vpop.eup %5649  ;;  %v3800_v5 = vmul.f32 %v3784_v50, %v3735_v22 }
 0x8e2   :  { %v3783_v55 = vadd.f32 1.0, %v5650_v54  ;;  %v3801_v38 = vmul.f32 %v3785_v27, %v3736_v33 }
 0x8e4   :  { %v3799_v61 = vmul.f32 %v3783_v55, %v3734_v60  ;;  %v3811_v15 = vpack.c.bf16 %v3801_v38, %v3800_v5 }
 0x8e5   :  { %v5652_v9 = vpop.eup %5651 }
 0x8e6   :  { %v5654_v51 = vpop.eup %5653  ;;  %v3810_v1 = vpack.c.bf16 %v3799_v61, %v3798_v26  ;;  %v3786_v6 = vadd.f32 1.0, %v5652_v9 }
 0x8e7   :  { %v5656_v32 = vpop.eup %5655  ;;  %v3788_v3 = vadd.f32 1.0, %v5654_v51 }
 0x8e8   :  { %v3789_v23 = vadd.f32 1.0, %v5656_v32  ;;  %4887 = vmatprep.mubr.bf16.mxu1 %v3810_v1  ;;  %v3802_v13 = vmul.f32 %v3786_v6, %v3737_v58 }
 0x8e9   :  { %v5658_v25 = vpop.eup %5657  ;;  %4888 = vmatmul.mubr.bf16.gmra.mxu1 %v3811_v15  ;;  %v3804_v21 = vmul.f32 %v3788_v3, %v3739_v37 }
 0x8ea   :  { %v3787_v4 = vadd.f32 1.0, %v5658_v25  ;;  %v3805_v0 = vmul.f32 %v3789_v23, %v3740_v18 }
 0x8ec   :  { %v3803_v45 = vmul.f32 %v3787_v4, %v3738_v52  ;;  %v3813_v43 = vpack.c.bf16 %v3805_v0, %v3804_v21 }
 0x8ee   :  { %v3812_v47 = vpack.c.bf16 %v3803_v45, %v3802_v13 }
 0x8f0   :  { %4891 = vmatprep.mubr.bf16.mxu1 %v3812_v47 }
 0x8f1   :  { %4892 = vmatmul.mubr.bf16.gmra.mxu1 %v3813_v43 }
 0x93a   :  { %v4881_v62 = vpop.f32.mrf.mxu0 }
 0x93b   :  { %v3928_v46 = vadd.f32 %v4881_v62, %v7696_v29 }
 0x93c   :  { %v3919_v48 = vpop.f32.mrf.mxu0 }
 0x93d   :  { %v7700_v59 = vadd.f32 %v3928_v46, %v7561_v36  ;;  %v3920_v8 = vadd.f32 %v7696_v29, %v3919_v48 }
 0x93e   :  { %v4882_v24 = vpop.f32.mrf.mxu0 }
 0x93f   :  { %v7704_v35 = vadd.f32 %v3920_v8, %v7552_v2  ;;  %v3931_v63 = vadd.f32 %v4882_v24, %v7696_v29  ;;  %v4006_v40 = vsel %vm129_vm0, %v7700_v59, 0.0 }
 0x940   :  { %4007 = vadd.xlane.f32.xlu1 %v4006_v40  ;;  %v3922_v19 = vpop.f32.mrf.mxu0 }
 0x941   :  { %v7710_v44 = vadd.f32 %v3931_v63, %v7564_v12  ;;  %v3923_v28 = vadd.f32 %v7696_v29, %v3922_v19  ;;  %v4000_v2 = vsel %vm129_vm0, %v7704_v35, 0.0 }
 0x943   :  { %v7714_v36 = vadd.f32 %v3923_v28, %v7555_v20  ;;  %v4009_v31 = vsel %vm129_vm0, %v7710_v44, 0.0 }
 0x944   :  { %4010 = vadd.xlane.f32.xlu0 %v4009_v31  ;;  %4001 = vadd.xlane.f32.xlu1 %v4000_v2 }
 0x945   :  { %v4003_v16 = vsel %vm129_vm0, %v7714_v36, 0.0 }
 0x948   :  { %4004 = vadd.xlane.f32.xlu0 %v4003_v16 }
 0x94a   :  { %v4885_v17 = vpop.f32.mrf.mxu1 }
 0x94b   :  { %v3944_v12 = vadd.f32 %v4885_v17, %v7696_v29 }
 0x94c   :  { %v3935_v27 = vpop.f32.mrf.mxu1 }
 0x94d   :  { %v7724_v54 = vadd.f32 %v3944_v12, %v7587_v56  ;;  %v3936_v20 = vadd.f32 %v7696_v29, %v3935_v27 }
 0x94e   :  { %v4886_v50 = vpop.f32.mrf.mxu1 }
 0x94f   :  { %v7728_v33 = vadd.f32 %v3936_v20, %v7578_v10  ;;  %v3947_v42 = vadd.f32 %v4886_v50, %v7696_v29  ;;  %v4018_v60 = vsel %vm129_vm0, %v7724_v54, 0.0 }
 0x950   :  { %v3938_v55 = vpop.f32.mrf.mxu1  ;;  %4019 = vadd.xlane.f32.xlu1 %v4018_v60 }
 0x951   :  { %v7734_v22 = vadd.f32 %v3947_v42, %v7590_v53  ;;  %v3939_v38 = vadd.f32 %v7696_v29, %v3938_v55  ;;  %v4012_v10 = vsel %vm129_vm0, %v7728_v33, 0.0 }
 0x953   :  { %v7738_v56 = vadd.f32 %v3939_v38, %v7581_v14  ;;  %v4021_v26 = vsel %vm129_vm0, %v7734_v22, 0.0 }
 0x954   :  { %4022 = vadd.xlane.f32.xlu0 %v4021_v26  ;;  %4013 = vadd.xlane.f32.xlu1 %v4012_v10 }
 0x955   :  { %v4015_v61 = vsel %vm129_vm0, %v7738_v56, 0.0 }
 0x958   :  { %4016 = vadd.xlane.f32.xlu0 %v4015_v61 }
 0x9a9   :  { %v4889_v9 = vpop.f32.mrf.mxu1 }
 0x9aa   :  { %v3960_v53 = vadd.f32 %v4889_v9, %v7696_v29 }
 0x9ab   :  { %v3951_v5 = vpop.f32.mrf.mxu1 }
 0x9ac   :  { %v7748_v51 = vadd.f32 %v3960_v53, %v7640_v57  ;;  %v3952_v14 = vadd.f32 %v7696_v29, %v3951_v5 }
 0x9ad   :  { %v4890_v1 = vpop.f32.mrf.mxu1 }
 0x9ae   :  { %v7752_v32 = vadd.f32 %v3952_v14, %v7626_v11  ;;  %v3963_v15 = vadd.f32 %v4890_v1, %v7696_v29  ;;  %v4030_v6 = vsel %vm129_vm0, %v7748_v51, 0.0 }
 0x9af   :  { %v3954_v23 = vpop.f32.mrf.mxu1  ;;  %4031 = vadd.xlane.f32.xlu1 %v4030_v6 }
 0x9b0   :  { %v7758_v25 = vadd.f32 %v3963_v15, %v7643_v34  ;;  %v3955_v3 = vadd.f32 %v7696_v29, %v3954_v23  ;;  %v4024_v58 = vsel %vm129_vm0, %v7752_v32, 0.0 }
 0x9b1   :  { %v4893_v57 = vpop.f32.mrf.mxu1 }
 0x9b2   :  { %v7762_v18 = vadd.f32 %v3955_v3, %v7629_v7  ;;  %v4033_v11 = vsel %vm129_vm0, %v7758_v25, 0.0  ;;  %v3976_v4 = vadd.f32 %v4893_v57, %v7696_v29 }
 0x9b3   :  { %4034 = vadd.xlane.f32.xlu0 %v4033_v11  ;;  %4025 = vadd.xlane.f32.xlu1 %v4024_v58  ;;  %v3967_v52 = vpop.f32.mrf.mxu1 }
 0x9b4   :  { %v3968_v34 = vadd.f32 %v7696_v29, %v3967_v52  ;;  %v4027_v7 = vsel %vm129_vm0, %v7762_v18, 0.0  ;;  %v7776_v45 = vadd.f32 %v3976_v4, %v7663_v49 }
 0x9b5   :  { %v4894_v37 = vpop.f32.mrf.mxu1 }
 0x9b6   :  { %v7771_v0 = vadd.f32 %v3968_v34, %v7654_v39  ;;  %v3979_v21 = vadd.f32 %v4894_v37, %v7696_v29  ;;  %v4042_v49 = vsel %vm129_vm0, %v7776_v45, 0.0 }
 0x9b7   :  { %4028 = vadd.xlane.f32.xlu0 %v4027_v7  ;;  %v3970_v13 = vpop.f32.mrf.mxu1 }
 0x9b8   :  { %v3971_v47 = vadd.f32 %v7696_v29, %v3970_v13  ;;  %v4036_v43 = vsel %vm129_vm0, %v7771_v0, 0.0  ;;  %v7786_v39 = vadd.f32 %v3979_v21, %v7666_v41 }
 0x9b9   :  { %4037 = vadd.xlane.f32.xlu1 %v4036_v43 }
 0x9ba   :  { %v7783_v62 = vadd.f32 %v3971_v47, %v7657_v30  ;;  %v4045_v29 = vsel %vm129_vm0, %v7786_v39, 0.0 }
 0x9bc   :  { %v4039_v46 = vsel %vm129_vm0, %v7783_v62, 0.0 }
 0x9bd   :  { %4040 = vadd.xlane.f32.xlu0 %v4039_v46  ;;  %4043 = vadd.xlane.f32.xlu1 %v4042_v49 }
 0x9c1   :  { %4046 = vadd.xlane.f32.xlu0 %v4045_v29 }
 0x9c9   :  { %v4008_v48 = vpop.xlane.xlu1 %4007 }
 0x9ca   :  { %v4050_v8 = vmul.f32 0.015625, %v4008_v48 }
 0x9cc   :  { %v7795_v30 = vsub.f32 %v7700_v59, %v4050_v8 }
 0x9cd   :  { %v4011_v24 = vpop.xlane.xlu0 %4010  ;;  %v4002_v41 = vpop.xlane.xlu1 %4001 }
 0x9ce   :  { %v4051_v63 = vmul.f32 0.015625, %v4011_v24  ;;  %v4048_v40 = vmul.f32 0.015625, %v4002_v41  ;;  %v4082_v19 = vmul.f32 %v7795_v30, %v7795_v30 }
 0x9d0   :  { %v7800_v28 = vsub.f32 %v7710_v44, %v4051_v63  ;;  %v7803_v31 = vsub.f32 %v7704_v35, %v4048_v40  ;;  %v4102_v2 = vsel %vm129_vm0, %v4082_v19, 0.0 }
 0x9d1   :  { %v4005_v16 = vpop.xlane.xlu0 %4004  ;;  %4103 = vadd.xlane.f32.xlu1 %v4102_v2 }
 0x9d2   :  { %v4049_v17 = vmul.f32 0.015625, %v4005_v16  ;;  %v4083_v59 = vmul.f32 %v7800_v28, %v7800_v28  ;;  %v4080_v12 = vmul.f32 %v7803_v31, %v7803_v31 }
 0x9d4   :  { %v7811_v27 = vsub.f32 %v7714_v36, %v4049_v17  ;;  %v4105_v44 = vsel %vm129_vm0, %v4083_v59, 0.0  ;;  %v4096_v20 = vsel %vm129_vm0, %v4080_v12, 0.0 }
 0x9d5   :  { %4106 = vadd.xlane.f32.xlu0 %v4105_v44  ;;  %4097 = vadd.xlane.f32.xlu1 %v4096_v20 }
 0x9d6   :  { %v4081_v35 = vmul.f32 %v7811_v27, %v7811_v27 }
 0x9d8   :  { %v4099_v50 = vsel %vm129_vm0, %v4081_v35, 0.0 }
 0x9d9   :  { %v4020_v42 = vpop.xlane.xlu1 %4019  ;;  %4100 = vadd.xlane.f32.xlu0 %v4099_v50 }
 0x9da   :  { %v4054_v60 = vmul.f32 0.015625, %v4020_v42 }
 0x9dc   :  { %v7819_v55 = vsub.f32 %v7724_v54, %v4054_v60 }
 0x9dd   :  { %v4023_v38 = vpop.xlane.xlu0 %4022  ;;  %v4014_v36 = vpop.xlane.xlu1 %4013 }
 0x9de   :  { %v4055_v26 = vmul.f32 0.015625, %v4023_v38  ;;  %v4052_v10 = vmul.f32 0.015625, %v4014_v36  ;;  %v4086_v61 = vmul.f32 %v7819_v55, %v7819_v55 }
 0x9e0   :  { %v7824_v9 = vsub.f32 %v7734_v22, %v4055_v26  ;;  %v7827_v53 = vsub.f32 %v7728_v33, %v4052_v10  ;;  %v4114_v5 = vsel %vm129_vm0, %v4086_v61, 0.0 }
 0x9e1   :  { %v4017_v14 = vpop.xlane.xlu0 %4016  ;;  %4115 = vadd.xlane.f32.xlu1 %v4114_v5 }
 0x9e2   :  { %v4053_v1 = vmul.f32 0.015625, %v4017_v14  ;;  %v4087_v54 = vmul.f32 %v7824_v9, %v7824_v9  ;;  %v4084_v15 = vmul.f32 %v7827_v53, %v7827_v53 }
 0x9e4   :  { %v7835_v6 = vsub.f32 %v7738_v56, %v4053_v1  ;;  %v4117_v22 = vsel %vm129_vm0, %v4087_v54, 0.0  ;;  %v4108_v23 = vsel %vm129_vm0, %v4084_v15, 0.0 }
 0x9e5   :  { %4118 = vadd.xlane.f32.xlu0 %v4117_v22  ;;  %4109 = vadd.xlane.f32.xlu1 %v4108_v23 }
 0x9e6   :  { %v4085_v33 = vmul.f32 %v7835_v6, %v7835_v6 }
 0x9e8   :  { %v4111_v3 = vsel %vm129_vm0, %v4085_v33, 0.0 }
 0x9e9   :  { %4112 = vadd.xlane.f32.xlu0 %v4111_v3  ;;  %v7893_v3 = vld [vmem:[%s8023_s11] ss:$0 sm:$0xff] }
 0xa38   :  { %v4032_v57 = vpop.xlane.xlu1 %4031 }
 0xa39   :  { %v4058_v11 = vmul.f32 0.015625, %v4032_v57 }
 0xa3b   :  { %v7843_v58 = vsub.f32 %v7748_v51, %v4058_v11 }
 0xa3c   :  { %v4035_v52 = vpop.xlane.xlu0 %4034  ;;  %v4026_v56 = vpop.xlane.xlu1 %4025 }
 0xa3d   :  { %v4059_v4 = vmul.f32 0.015625, %v4035_v52  ;;  %v4056_v34 = vmul.f32 0.015625, %v4026_v56  ;;  %v4090_v37 = vmul.f32 %v7843_v58, %v7843_v58  ;;  %v7899_v52 = vld [vmem:[%s8024_s12] ss:$0 sm:$0xff] }
 0xa3f   :  { %v7848_v7 = vsub.f32 %v7758_v25, %v4059_v4  ;;  %v7851_v13 = vsub.f32 %v7752_v32, %v4056_v34  ;;  %v4126_v21 = vsel %vm129_vm0, %v4090_v37, 0.0 }
 0xa40   :  { %v4029_v47 = vpop.xlane.xlu0 %4028  ;;  %4127 = vadd.xlane.f32.xlu1 %v4126_v21 }
 0xa41   :  { %v4057_v43 = vmul.f32 0.015625, %v4029_v47  ;;  %v4091_v51 = vmul.f32 %v7848_v7, %v7848_v7  ;;  %v4088_v46 = vmul.f32 %v7851_v13, %v7851_v13 }
 0xa42   :  { %v4038_v49 = vpop.xlane.xlu1 %4037 }
 0xa43   :  { %v7859_v29 = vsub.f32 %v7762_v18, %v4057_v43  ;;  %v4060_v25 = vmul.f32 0.015625, %v4038_v49  ;;  %v4129_v48 = vsel %vm129_vm0, %v4091_v51, 0.0  ;;  %v4120_v32 = vsel %vm129_vm0, %v4088_v46, 0.0 }
 0xa44   :  { %4130 = vadd.xlane.f32.xlu0 %v4129_v48  ;;  %4121 = vadd.xlane.f32.xlu1 %v4120_v32 }
 0xa45   :  { %v7864_v8 = vsub.f32 %v7771_v0, %v4060_v25  ;;  %v4089_v24 = vmul.f32 %v7859_v29, %v7859_v29 }
 0xa46   :  { %v4041_v41 = vpop.xlane.xlu0 %4040  ;;  %v4044_v63 = vpop.xlane.xlu1 %4043 }
 0xa47   :  { %v4061_v40 = vmul.f32 0.015625, %v4041_v41  ;;  %v4062_v19 = vmul.f32 0.015625, %v4044_v63  ;;  %v4123_v18 = vsel %vm129_vm0, %v4089_v24, 0.0  ;;  %v4092_v2 = vmul.f32 %v7864_v8, %v7864_v8 }
 0xa48   :  { %4124 = vadd.xlane.f32.xlu0 %v4123_v18 }
 0xa49   :  { %v7872_v16 = vsub.f32 %v7783_v62, %v4061_v40  ;;  %v7875_v17 = vsub.f32 %v7776_v45, %v4062_v19  ;;  %v4132_v0 = vsel %vm129_vm0, %v4092_v2, 0.0 }
 0xa4a   :  { %v4047_v59 = vpop.xlane.xlu0 %4046  ;;  %4133 = vadd.xlane.f32.xlu1 %v4132_v0 }
 0xa4b   :  { %v4063_v12 = vmul.f32 0.015625, %v4047_v59  ;;  %v4093_v44 = vmul.f32 %v7872_v16, %v7872_v16  ;;  %v4094_v20 = vmul.f32 %v7875_v17, %v7875_v17 }
 0xa4d   :  { %v7883_v35 = vsub.f32 %v7786_v39, %v4063_v12  ;;  %v4135_v62 = vsel %vm129_vm0, %v4093_v44, 0.0  ;;  %v4138_v50 = vsel %vm129_vm0, %v4094_v20, 0.0 }
 0xa4e   :  { %4136 = vadd.xlane.f32.xlu0 %v4135_v62  ;;  %4139 = vadd.xlane.f32.xlu1 %v4138_v50 }
 0xa4f   :  { %v4095_v45 = vmul.f32 %v7883_v35, %v7883_v35 }
 0xa51   :  { %v4141_v42 = vsel %vm129_vm0, %v4095_v45, 0.0 }
 0xa52   :  { %4142 = vadd.xlane.f32.xlu0 %v4141_v42 }
 0xa5a   :  { %v4104_v60 = vpop.xlane.xlu1 %4103 }
 0xa5b   :  { %v4146_v38 = vmul.f32 0.015625, %v4104_v60 }
 0xa5d   :  { %v4162_v36 = vadd.f32 1e-06, %v4146_v38 }
 0xa5e   :  { %v4107_v26 = vpop.xlane.xlu0 %4106  ;;  %v4098_v10 = vpop.xlane.xlu1 %4097 }
 0xa5f   :  { %5659 = vrsqrt.f32 %v4162_v36  ;;  %v4147_v39 = vmul.f32 0.015625, %v4107_v26  ;;  %v4144_v61 = vmul.f32 0.015625, %v4098_v10 }
 0xa61   :  { %v4163_v5 = vadd.f32 1e-06, %v4147_v39  ;;  %v4160_v14 = vadd.f32 1e-06, %v4144_v61 }
 0xa62   :  { %v4101_v1 = vpop.xlane.xlu0 %4100 }
 0xa63   :  { %5661 = vrsqrt.f32 %v4163_v5  ;;  %v4145_v54 = vmul.f32 0.015625, %v4101_v1 }
 0xa64   :  { %5663 = vrsqrt.f32 %v4160_v14 }
 0xa65   :  { %v4161_v15 = vadd.f32 1e-06, %v4145_v54 }
 0xa67   :  { %5665 = vrsqrt.f32 %v4161_v15 }
 0xa6a   :  { %v4116_v22 = vpop.xlane.xlu1 %4115 }
 0xa6b   :  { %v4150_v23 = vmul.f32 0.015625, %v4116_v22 }
 0xa6c   :  { %v5660_v33 = vpop.eup %5659 }
 0xa6d   :  { %v4194_v57 = vmul.f32 %v5660_v33, %v7795_v30  ;;  %v4166_v11 = vadd.f32 1e-06, %v4150_v23 }
 0xa6e   :  { %v4119_v56 = vpop.xlane.xlu0 %4118  ;;  %v4110_v4 = vpop.xlane.xlu1 %4109 }
 0xa6f   :  { %v4216_v34 = vmul.f32 %v7893_v3, %v4194_v57  ;;  %5667 = vrsqrt.f32 %v4166_v11  ;;  %v4151_v37 = vmul.f32 0.015625, %v4119_v56  ;;  %v4148_v21 = vmul.f32 0.015625, %v4110_v4 }
 0xa70   :  { %v5662_v47 = vpop.eup %5661 }
 0xa71   :  { %v5664_v43 = vpop.eup %5663  ;;  %v4238_v51 = vadd.f32 %v7899_v52, %v4216_v34  ;;  %v4195_v46 = vmul.f32 %v5662_v47, %v7800_v28  ;;  %v4167_v30 = vadd.f32 1e-06, %v4151_v37  ;;  %v4164_v49 = vadd.f32 1e-06, %v4148_v21 }
 0xa72   :  { %v4192_v25 = vmul.f32 %v5664_v43, %v7803_v31  ;;  %v4113_v48 = vpop.xlane.xlu0 %4112 }
 0xa73   :  { %4254 = vst.msk [vmem:[%s8025_s13 + $0x10] sm:$0xff] %vm129_vm0, %v4238_v51  ;;  %v4217_v32 = vmul.f32 %v7893_v3, %v4195_v46  ;;  %5669 = vrsqrt.f32 %v4167_v30  ;;  %v4149_v24 = vmul.f32 0.015625, %v4113_v48 }
 0xa74   :  { %v5666_v41 = vpop.eup %5665  ;;  %v4214_v63 = vmul.f32 %v7893_v3, %v4192_v25  ;;  %5671 = vrsqrt.f32 %v4164_v49 }
 0xa75   :  { %v4239_v28 = vadd.f32 %v7899_v52, %v4217_v32  ;;  %v4193_v40 = vmul.f32 %v5666_v41, %v7811_v27  ;;  %v4165_v19 = vadd.f32 1e-06, %v4149_v24 }
 0xa76   :  { %v4236_v31 = vadd.f32 %v7899_v52, %v4214_v63 }
 0xa77   :  { %4255 = vst.msk [vmem:[%s8025_s13 + $0x18] sm:$0xff] %vm129_vm0, %v4239_v28  ;;  %v4215_v18 = vmul.f32 %v7893_v3, %v4193_v40  ;;  %5673 = vrsqrt.f32 %v4165_v19 }
 0xa78   :  { %4252 = vst.msk [vmem:[%s8025_s13] sm:$0xff] %vm129_vm0, %v4236_v31 }
 0xa79   :  { %v4237_v2 = vadd.f32 %v7899_v52, %v4215_v18 }
 0xa7b   :  { %4253 = vst.msk [vmem:[%s8025_s13 + $0x8] sm:$0xff] %vm129_vm0, %v4237_v2 }
 0xa7c   :  { %v5668_v27 = vpop.eup %5667 }
 0xa7d   :  { %v4198_v0 = vmul.f32 %v5668_v27, %v7819_v55 }
 0xa7f   :  { %v4220_v59 = vmul.f32 %v7893_v3, %v4198_v0 }
 0xa80   :  { %v5670_v12 = vpop.eup %5669 }
 0xa81   :  { %v5672_v44 = vpop.eup %5671  ;;  %v4242_v20 = vadd.f32 %v7899_v52, %v4220_v59  ;;  %v4199_v62 = vmul.f32 %v5670_v12, %v7824_v9 }
 0xa82   :  { %v4196_v50 = vmul.f32 %v5672_v44, %v7827_v53 }
 0xa83   :  { %4258 = vst.msk [vmem:[%s8025_s13 + $0x30] sm:$0xff] %vm129_vm0, %v4242_v20  ;;  %v4221_v45 = vmul.f32 %v7893_v3, %v4199_v62 }
 0xa84   :  { %v5674_v42 = vpop.eup %5673  ;;  %v4218_v55 = vmul.f32 %v7893_v3, %v4196_v50 }
 0xa85   :  { %v4243_v60 = vadd.f32 %v7899_v52, %v4221_v45  ;;  %v4197_v38 = vmul.f32 %v5674_v42, %v7835_v6 }
 0xa86   :  { %v4240_v36 = vadd.f32 %v7899_v52, %v4218_v55 }
 0xa87   :  { %4259 = vst.msk [vmem:[%s8025_s13 + $0x38] sm:$0xff] %vm129_vm0, %v4243_v60  ;;  %v4219_v9 = vmul.f32 %v7893_v3, %v4197_v38 }
 0xa88   :  { %4256 = vst.msk [vmem:[%s8025_s13 + $0x20] sm:$0xff] %vm129_vm0, %v4240_v36 }
 0xa89   :  { %v4241_v53 = vadd.f32 %v7899_v52, %v4219_v9 }
 0xa8b   :  { %4257 = vst.msk [vmem:[%s8025_s13 + $0x28] sm:$0xff] %vm129_vm0, %v4241_v53 }
 0xac9   :  { %v4128_v6 = vpop.xlane.xlu1 %4127 }
 0xaca   :  { %v4154_v26 = vmul.f32 0.015625, %v4128_v6 }
 0xacc   :  { %v4170_v10 = vadd.f32 1e-06, %v4154_v26 }
 0xacd   :  { %v4131_v39 = vpop.xlane.xlu0 %4130  ;;  %v4122_v61 = vpop.xlane.xlu1 %4121 }
 0xace   :  { %5675 = vrsqrt.f32 %v4170_v10  ;;  %v4155_v5 = vmul.f32 0.015625, %v4131_v39  ;;  %v4152_v14 = vmul.f32 0.015625, %v4122_v61 }
 0xad0   :  { %v4171_v1 = vadd.f32 1e-06, %v4155_v5  ;;  %v4168_v54 = vadd.f32 1e-06, %v4152_v14 }
 0xad1   :  { %v4125_v15 = vpop.xlane.xlu0 %4124 }
 0xad2   :  { %5677 = vrsqrt.f32 %v4171_v1  ;;  %v4153_v22 = vmul.f32 0.015625, %v4125_v15 }
 0xad3   :  { %5679 = vrsqrt.f32 %v4168_v54  ;;  %v4134_v23 = vpop.xlane.xlu1 %4133 }
 0xad4   :  { %v4169_v33 = vadd.f32 1e-06, %v4153_v22  ;;  %v4156_v57 = vmul.f32 0.015625, %v4134_v23 }
 0xad6   :  { %5681 = vrsqrt.f32 %v4169_v33  ;;  %v4172_v11 = vadd.f32 1e-06, %v4156_v57 }
 0xad7   :  { %v4137_v56 = vpop.xlane.xlu0 %4136  ;;  %v4140_v4 = vpop.xlane.xlu1 %4139 }
 0xad8   :  { %5683 = vrsqrt.f32 %v4172_v11  ;;  %v4157_v34 = vmul.f32 0.015625, %v4137_v56  ;;  %v4158_v37 = vmul.f32 0.015625, %v4140_v4 }
 0xada   :  { %v4173_v21 = vadd.f32 1e-06, %v4157_v34  ;;  %v4174_v47 = vadd.f32 1e-06, %v4158_v37 }
 0xadb   :  { %v5676_v43 = vpop.eup %5675  ;;  %v4143_v51 = vpop.xlane.xlu0 %4142 }
 0xadc   :  { %v4202_v46 = vmul.f32 %v5676_v43, %v7843_v58  ;;  %5685 = vrsqrt.f32 %v4173_v21  ;;  %v4159_v30 = vmul.f32 0.015625, %v4143_v51 }
 0xadd   :  { %5687 = vrsqrt.f32 %v4174_v47 }
 0xade   :  { %v4224_v49 = vmul.f32 %v7893_v3, %v4202_v46  ;;  %v4175_v25 = vadd.f32 1e-06, %v4159_v30 }
 0xadf   :  { %v5678_v48 = vpop.eup %5677 }
 0xae0   :  { %v5680_v32 = vpop.eup %5679  ;;  %v4246_v24 = vadd.f32 %v7899_v52, %v4224_v49  ;;  %v4203_v41 = vmul.f32 %v5678_v48, %v7848_v7  ;;  %5689 = vrsqrt.f32 %v4175_v25 }
 0xae1   :  { %v4200_v63 = vmul.f32 %v5680_v32, %v7851_v13 }
 0xae2   :  { %4262 = vst.msk [vmem:[%s8025_s13 + $0x50] sm:$0xff] %vm129_vm0, %v4246_v24  ;;  %v4225_v58 = vmul.f32 %v7893_v3, %v4203_v41 }
 0xae3   :  { %v5682_v28 = vpop.eup %5681  ;;  %v4222_v40 = vmul.f32 %v7893_v3, %v4200_v63 }
 0xae4   :  { %v4247_v19 = vadd.f32 %v7899_v52, %v4225_v58  ;;  %v4201_v31 = vmul.f32 %v5682_v28, %v7859_v29 }
 0xae5   :  { %v5684_v18 = vpop.eup %5683  ;;  %v4244_v7 = vadd.f32 %v7899_v52, %v4222_v40 }
 0xae6   :  { %4263 = vst.msk [vmem:[%s8025_s13 + $0x58] sm:$0xff] %vm129_vm0, %v4247_v19  ;;  %v4223_v13 = vmul.f32 %v7893_v3, %v4201_v31  ;;  %v4204_v2 = vmul.f32 %v5684_v18, %v7864_v8 }
 0xae7   :  { %4260 = vst.msk [vmem:[%s8025_s13 + $0x40] sm:$0xff] %vm129_vm0, %v4244_v7 }
 0xae8   :  { %v4245_v27 = vadd.f32 %v7899_v52, %v4223_v13  ;;  %v4226_v29 = vmul.f32 %v7893_v3, %v4204_v2 }
 0xae9   :  { %v5686_v0 = vpop.eup %5685 }
 0xaea   :  { %v5688_v59 = vpop.eup %5687  ;;  %4261 = vst.msk [vmem:[%s8025_s13 + $0x48] sm:$0xff] %vm129_vm0, %v4245_v27  ;;  %v4248_v12 = vadd.f32 %v7899_v52, %v4226_v29  ;;  %v4205_v8 = vmul.f32 %v5686_v0, %v7872_v16 }
 0xaeb   :  { %v4206_v44 = vmul.f32 %v5688_v59, %v7875_v17 }
 0xaec   :  { %4264 = vst.msk [vmem:[%s8025_s13 + $0x60] sm:$0xff] %vm129_vm0, %v4248_v12  ;;  %v4227_v20 = vmul.f32 %v7893_v3, %v4205_v8 }
 0xaed   :  { %v5690_v62 = vpop.eup %5689  ;;  %v4228_v50 = vmul.f32 %v7893_v3, %v4206_v44 }
 0xaee   :  { %v4249_v45 = vadd.f32 %v7899_v52, %v4227_v20  ;;  %v4207_v42 = vmul.f32 %v5690_v62, %v7883_v35 }
 0xaef   :  { %v4250_v55 = vadd.f32 %v7899_v52, %v4228_v50 }
 0xaf0   :  { %4265 = vst.msk [vmem:[%s8025_s13 + $0x68] sm:$0xff] %vm129_vm0, %v4249_v45  ;;  %v4229_v16 = vmul.f32 %v7893_v3, %v4207_v42 }
 0xaf1   :  { %4266 = vst.msk [vmem:[%s8025_s13 + $0x70] sm:$0xff] %vm129_vm0, %v4250_v55 }
 0xaf2   :  { %v4251_v17 = vadd.f32 %v7899_v52, %v4229_v16 }
 0xaf4   :  { %4267 = vst.msk [vmem:[%s8025_s13 + $0x78] sm:$0xff] %vm129_vm0, %v4251_v17 }

</bundles_post_ra>
